<compile_context>
chip_gen: v5e
topology: v5e:2x2
jax: 0.10.0
libtpu: 0.0.40
codegen_flags: <defaults>
</compile_context>

<pallas_src>
import functools

import jax
import jax.numpy as jnp
from jax.experimental import pallas as pl
from jax.experimental.pallas import tpu as pltpu


# ---------------------------------------------------------------------------
# Kernel
# ---------------------------------------------------------------------------
def _mlp_gather_kernel(n_hidden, ids_ref, gtab_ref, *rest):
    """rest = (w0, b0, w1, b1, ..., w_last, b_last, o_ref)."""
    o_ref = rest[-1]
    params = rest[:-1]
    blk = ids_ref.shape[0]
    vocab_p = gtab_ref.shape[0]      # nu_p + nm_p
    gdt = gtab_ref.dtype             # f32 gather table (exact gather)

    # Fused embedding gather + concat: a single one-hot with two hot lanes per
    # row (uid in [0, nu_p), nu_p + mid in [nu_p, nu_p+nm_p)) matmul'd against
    # the block-diagonal table -> (blk, 2*lat_p) == concat([u, m], axis=1).
    # TODO(synk): for production vocab sizes (padded table > ~1-2 MiB) switch
    # to scalar-prefetched ids + DMA row-gather from an HBM-resident table
    # instead of this one-hot matmul (keeps the MLP fused, avoids VMEM blowup).
    ids = ids_ref[...]                                     # (blk, 2) int32
    uid = ids[:, 0:1]                                      # (blk, 1)
    mid = ids[:, 1:2]                                      # (blk, 1), pre-offset by nu_p
    iota = jax.lax.broadcasted_iota(jnp.int32, (blk, vocab_p), 1)
    onehot = ((iota == uid) | (iota == mid)).astype(gdt)
    h = jnp.dot(onehot, gtab_ref[...],
                preferred_element_type=jnp.float32)        # (blk, 2*lat_p) f32

    for i in range(n_hidden):
        w = params[2 * i][...]        # bf16 hidden weight (zero-padded)
        b = params[2 * i + 1][...]    # f32 bias row (zero-padded)
        h = jnp.dot(h.astype(w.dtype), w, preferred_element_type=jnp.float32)
        # TODO(synk): nn.Dropout is identity at inference; stochastic dropout
        # (pltpu.prng_*) intentionally omitted for this inference kernel.
        h = jnp.maximum(h + b, 0.0)   # f32 epilogue (v5e-friendly)

    w = params[-2][...]               # f32 final head (tiny, kept exact)
    b = params[-1][...]
    y = jnp.dot(h.astype(w.dtype), w, preferred_element_type=jnp.float32) + b
    # Transpose on the XLU so the HBM writeback is a lane-dense (8, blk) slab
    # instead of a (blk, 128) one (16x less output traffic).
    y_t = jnp.transpose(y)            # (dout_p, blk)
    o_ref[...] = y_t[:o_ref.shape[0], :].astype(o_ref.dtype)


# ---------------------------------------------------------------------------
# Parameter preparation / helpers
# ---------------------------------------------------------------------------
def _round_up(x, m):
    return (x + m - 1) // m * m


def _pad2d(x, rows, cols):
    r, c = x.shape
    return jnp.pad(x, ((0, rows - r), (0, cols - c)))


def _num_tensorcores():
    """Best-effort TensorCore count per chip (2 on v7x / v5p / v4 megacore)."""
    try:
        kind = jax.devices()[0].device_kind.lower()
        if ("v7" in kind) or ("v5p" in kind) or ("v4" in kind):
            return 2
    except Exception:
        pass
    return 1


def _choose_block_b(batch, num_tc):
    """Largest multiple-of-128 divisor of batch, capped at 2048, with at
    least `num_tc` grid steps.  Single block on 1-TC chips (grid is a serial
    loop there, extra steps only add ~0.35us each)."""
    if batch % 128 != 0:
        return batch                      # tiny/odd batch: one (masked) block
    cap = min(2048, batch // max(num_tc, 1))
    cap = max(128, cap - cap % 128)
    for cand in range(cap, 127, -128):
        if batch % cand == 0:
            return cand
    return batch


def prepare_params(user_embed, movie_embed, weights, biases, *,
                   hidden_dtype=jnp.bfloat16):
    """Pad feature dims to multiples of 128 and build the block-diagonal
    gather table.  Hidden weights -> bf16; gather table + final head -> f32
    (exact gather, exact 2-logit head).  Zero padding keeps results exact
    through bias-add (padded bias = 0) and ReLU."""
    n_users, n_lat = user_embed.shape
    n_movies, _ = movie_embed.shape
    lat_p = _round_up(n_lat, 128)
    nu_p = _round_up(n_users, 128)
    nm_p = _round_up(n_movies, 128)

    # Block-diagonal table: rows [0:nu_p) = [utab | 0], rows [nu_p:) = [0 | mtab].
    gtab = jnp.zeros((nu_p + nm_p, 2 * lat_p), jnp.float32)
    gtab = gtab.at[:n_users, :n_lat].set(user_embed)
    gtab = gtab.at[nu_p:nu_p + n_movies, lat_p:lat_p + n_lat].set(movie_embed)

    pw, pb = [], []
    n_total = len(weights)
    for li, (w, b) in enumerate(zip(weights, biases)):
        din, dout = w.shape
        dout_p = _round_up(dout, 128)
        if li == 0:
            # First layer consumes concat([u, m]); each half padded to lat_p
            # lanes, so split / pad the weight rows to match.
            w_u = _pad2d(w[:n_lat], lat_p, dout_p)
            w_m = _pad2d(w[n_lat:], lat_p, dout_p)
            wp = jnp.concatenate([w_u, w_m], axis=0)       # (2*lat_p, dout_p)
        else:
            wp = _pad2d(w, _round_up(din, 128), dout_p)
        dt = jnp.float32 if li == n_total - 1 else hidden_dtype
        pw.append(wp.astype(dt))
        pb.append(_pad2d(b.reshape(1, -1), 1, dout_p).astype(jnp.float32))
    return gtab, nu_p, pw, pb


# ---------------------------------------------------------------------------
# Wrapper
# ---------------------------------------------------------------------------
def implicit_dlcrs_forward(users, movies, gather_tab, nu_offset, weights,
                           biases, *, out_dim=2, block_b=None,
                           single_buffer_params=True):
    batch = users.shape[0]
    # Pack ids into one (batch, 2) int32 array; movie ids pre-offset into the
    # second half of the block-diagonal table's row space.
    ids = jnp.stack([users.astype(jnp.int32),
                     movies.astype(jnp.int32) + jnp.int32(nu_offset)], axis=1)

    num_tc = _num_tensorcores()
    if block_b is None:
        block_b = _choose_block_b(batch, num_tc)
    assert batch % block_b == 0, "batch must be a multiple of block_b"
    grid = (batch // block_b,)

    dout_p = weights[-1].shape[1]
    n_hidden = len(weights) - 1
    out_rows = 8                       # sublane-aligned slab holding the logits

    # Constant-index params: fetched once; single VMEM buffer is enough.
    const_kwargs = {"pipeline_mode": pl.Buffered(1)} if single_buffer_params else {}

    in_specs = [pl.BlockSpec((block_b, 2), lambda i: (i, 0))]       # packed ids
    args = [ids]
    in_specs.append(pl.BlockSpec(gather_tab.shape, lambda i: (0, 0), **const_kwargs))
    args.append(gather_tab)
    for w, b in zip(weights, biases):
        in_specs.append(pl.BlockSpec(w.shape, lambda i: (0, 0), **const_kwargs))
        in_specs.append(pl.BlockSpec(b.shape, lambda i: (0, 0), **const_kwargs))
        args += [w, b]

    # VMEM budget from the actual footprint (+2x headroom), capped below v7x's
    # 64 MiB physical per-TC VMEM.
    param_bytes = sum(int(a.size) * a.dtype.itemsize
                      for a in (gather_tab, *weights, *biases))
    param_bytes *= 1 if single_buffer_params else 2
    stream_bytes = 2 * (block_b * 128 * 4 + out_rows * block_b * 4)
    act_bytes = 6 * block_b * max(gather_tab.shape[1], dout_p) * 4
    vmem_limit = int(min(48 * 1024 * 1024,
                         max(16 * 1024 * 1024,
                             2 * (param_bytes + stream_bytes + act_bytes))))

    # Advisory cost estimate for XLA scheduling.
    flops = 2 * batch * gather_tab.shape[0] * gather_tab.shape[1]
    for w in weights:
        flops += 2 * batch * w.shape[0] * w.shape[1]
    bytes_accessed = int(ids.size) * 4 + batch * out_rows * 4
    for a in (gather_tab, *weights, *biases):
        bytes_accessed += int(a.size) * a.dtype.itemsize

    kernel = functools.partial(_mlp_gather_kernel, n_hidden)

    out_t = pl.pallas_call(
        kernel,
        out_shape=jax.ShapeDtypeStruct((out_rows, batch), jnp.float32),
        grid_spec=pltpu.PrefetchScalarGridSpec(
            num_scalar_prefetch=0,
            grid=grid,
            in_specs=in_specs,
            out_specs=pl.BlockSpec((out_rows, block_b), lambda i: (0, i)),
        ),
        compiler_params=pltpu.CompilerParams(
            dimension_semantics=("parallel",),     # batch axis across TCs
            vmem_limit_bytes=vmem_limit,
        ),
        cost_estimate=pl.CostEstimate(
            flops=int(flops), transcendentals=0,
            bytes_accessed=int(bytes_accessed)),
    )(*args)

    # (out_rows, batch) lane-dense slab -> (batch, out_dim) logits.
    return jnp.transpose(out_t[:out_dim, :])


# ---------------------------------------------------------------------------
# Reference + parameter construction (PyTorch-module shapes)
# ---------------------------------------------------------------------------
def reference_forward(users, movies, user_embed, movie_embed, weights, biases):
    u = user_embed[users]
    m = movie_embed[movies]
    h = jnp.concatenate([u, m], axis=1)
    for w, b in zip(weights[:-1], biases[:-1]):
        h = jnp.maximum(h @ w + b, 0.0)
    return h @ weights[-1] + biases[-1]


def build_params(key, n_users, n_movies, n_latents, n_layers):
    """Deterministic parameter init mimicking the PyTorch module's shapes."""
    keys = jax.random.split(key, 2 + 2 * (n_layers + 1))
    user_embed = jax.random.normal(keys[0], (n_users, n_latents), jnp.float32)
    movie_embed = jax.random.normal(keys[1], (n_movies, n_latents), jnp.float32)

    dims = []
    in_size, out_size = 2 * n_latents, 50 * n_layers
    for _ in range(n_layers):
        dims.append((in_size, out_size))
        in_size = out_size
        out_size -= 50
    dims.append((50, 2))  # final Linear(50, 2)

    weights, biases = [], []
    for li, (din, dout) in enumerate(dims):
        kw = keys[2 + 2 * li]
        kb = keys[3 + 2 * li]
        bound = 1.0 / jnp.sqrt(jnp.float32(din))
        # stored as (in, out): transpose of PyTorch's (out, in) weight
        weights.append(jax.random.uniform(kw, (din, dout), jnp.float32,
                                          -bound, bound))
        biases.append(jax.random.uniform(kb, (1, dout), jnp.float32,
                                         -bound, bound))
    return user_embed, movie_embed, weights, biases


if __name__ == "__main__":
    n_users, n_movies, n_latents, n_layers = 32, 64, 16, 2
    batch = 256

    key = jax.random.PRNGKey(0)
    kparams, ku, km = jax.random.split(key, 3)

    user_embed, movie_embed, weights, biases = build_params(
        kparams, n_users, n_movies, n_latents, n_layers)
    users = jax.random.randint(ku, (batch,), 0, n_users, dtype=jnp.int32)
    movies = jax.random.randint(km, (batch,), 0, n_movies, dtype=jnp.int32)

    ref = reference_forward(users, movies, user_embed, movie_embed,
                            weights, biases)

    gtab, nu_p, wpad, bpad = prepare_params(
        user_embed, movie_embed, weights, biases, hidden_dtype=jnp.bfloat16)

    try:
        out = implicit_dlcrs_forward(users, movies, gtab, nu_p, wpad, bpad,
                                     single_buffer_params=True)
        out = jax.block_until_ready(out)
    except Exception:
        # Fallback for JAX builds without BlockSpec(pipeline_mode=Buffered(1)).
        out = implicit_dlcrs_forward(users, movies, gtab, nu_p, wpad, bpad,
                                     single_buffer_params=False)
        out = jax.block_until_ready(out)

    assert out.shape == (batch, 2), out.shape
    # Only the hidden-layer weights are bf16 (gather + final head are f32).
    assert jnp.allclose(out, ref, atol=3e-2, rtol=3e-2), (
        float(jnp.max(jnp.abs(out - ref))))

    print("KERNEL_OK")
</pallas_src>

<mosaic_0001>
module attributes {stable_mosaic.version = 11 : i64} {
  func.func @_mlp_gather_kernel(%arg0: i32, %arg1: memref<256x2xi32, #tpu.memory_space<vmem>>, %arg2: memref<256x256xf32, #tpu.memory_space<vmem>>, %arg3: memref<256x128xbf16, #tpu.memory_space<vmem>>, %arg4: memref<1x128xf32, #tpu.memory_space<vmem>>, %arg5: memref<128x128xbf16, #tpu.memory_space<vmem>>, %arg6: memref<1x128xf32, #tpu.memory_space<vmem>>, %arg7: memref<128x128xf32, #tpu.memory_space<vmem>>, %arg8: memref<1x128xf32, #tpu.memory_space<vmem>>, %arg9: memref<8x256xf32, #tpu.memory_space<vmem>>) attributes {dimension_semantics = [#tpu.dimension_semantics<parallel>], iteration_bounds = array<i64: 1>, scalar_prefetch = 0 : i64, scratch_operands = 0 : i64, tpu.core_type = #tpu.core_type<tc>, window_params = [{transform_indices = @transform_0, window_bounds = array<i64: 256, 2>}, {pipeline_mode = #tpu.pipeline_mode<synchronous>, transform_indices = @transform_1, window_bounds = array<i64: 256, 256>}, {pipeline_mode = #tpu.pipeline_mode<synchronous>, transform_indices = @transform_2, window_bounds = array<i64: 256, 128>}, {pipeline_mode = #tpu.pipeline_mode<synchronous>, transform_indices = @transform_3, window_bounds = array<i64: 1, 128>}, {pipeline_mode = #tpu.pipeline_mode<synchronous>, transform_indices = @transform_4, window_bounds = array<i64: 128, 128>}, {pipeline_mode = #tpu.pipeline_mode<synchronous>, transform_indices = @transform_5, window_bounds = array<i64: 1, 128>}, {pipeline_mode = #tpu.pipeline_mode<synchronous>, transform_indices = @transform_6, window_bounds = array<i64: 128, 128>}, {pipeline_mode = #tpu.pipeline_mode<synchronous>, transform_indices = @transform_7, window_bounds = array<i64: 1, 128>}, {transform_indices = @transform_8, window_bounds = array<i64: 8, 256>}]} {
    %c0 = arith.constant 0 : index
    %c0_0 = arith.constant 0 : index
    %0 = vector.load %arg1[%c0, %c0_0] : memref<256x2xi32, #tpu.memory_space<vmem>>, vector<256x2xi32>
    %1 = vector.extract_strided_slice %0 {offsets = [0, 0], sizes = [256, 1], strides = [1, 1]} : vector<256x2xi32> to vector<256x1xi32>
    %2 = vector.extract_strided_slice %0 {offsets = [0, 1], sizes = [256, 1], strides = [1, 1]} : vector<256x2xi32> to vector<256x1xi32>
    %3 = tpu.iota {dimensions = array<i32: 1>} : vector<256x256xi32>
    %4 = vector.broadcast %1 : vector<256x1xi32> to vector<256x256xi32>
    %5 = arith.cmpi eq, %3, %4 : vector<256x256xi32>
    %6 = vector.broadcast %2 : vector<256x1xi32> to vector<256x256xi32>
    %7 = arith.cmpi eq, %3, %6 : vector<256x256xi32>
    %8 = arith.ori %5, %7 : vector<256x256xi1>
    %9 = arith.extui %8 : vector<256x256xi1> to vector<256x256xi32>
    %10 = arith.sitofp %9 : vector<256x256xi32> to vector<256x256xf32>
    %c0_1 = arith.constant 0 : index
    %c0_2 = arith.constant 0 : index
    %11 = vector.load %arg2[%c0_1, %c0_2] : memref<256x256xf32, #tpu.memory_space<vmem>>, vector<256x256xf32>
    %cst = arith.constant dense<0.000000e+00> : vector<256x256xf32>
    %12 = tpu.matmul %10, %11, %cst {dimension_numbers = #tpu.dot_dimension_numbers<[1], [0], [0], [1], [0, 0, 1, 1], [], []>} : vector<256x256xf32>, vector<256x256xf32>, vector<256x256xf32> -> vector<256x256xf32>
    %c0_3 = arith.constant 0 : index
    %c0_4 = arith.constant 0 : index
    %13 = vector.load %arg3[%c0_3, %c0_4] : memref<256x128xbf16, #tpu.memory_space<vmem>>, vector<256x128xbf16>
    %c0_5 = arith.constant 0 : index
    %c0_6 = arith.constant 0 : index
    %14 = vector.load %arg4[%c0_5, %c0_6] : memref<1x128xf32, #tpu.memory_space<vmem>>, vector<1x128xf32>
    %15 = arith.truncf %12 : vector<256x256xf32> to vector<256x256xbf16>
    %cst_7 = arith.constant dense<0.000000e+00> : vector<256x128xf32>
    %16 = tpu.matmul %15, %13, %cst_7 {dimension_numbers = #tpu.dot_dimension_numbers<[1], [0], [0], [1], [0, 0, 1, 1], [], []>} : vector<256x256xbf16>, vector<256x128xbf16>, vector<256x128xf32> -> vector<256x128xf32>
    %17 = vector.broadcast %14 : vector<1x128xf32> to vector<256x128xf32>
    %18 = arith.addf %16, %17 : vector<256x128xf32>
    %cst_8 = arith.constant 0.000000e+00 : f32
    %19 = vector.broadcast %cst_8 : f32 to vector<256x128xf32>
    %20 = arith.maximumf %18, %19 : vector<256x128xf32>
    %c0_9 = arith.constant 0 : index
    %c0_10 = arith.constant 0 : index
    %21 = vector.load %arg5[%c0_9, %c0_10] : memref<128x128xbf16, #tpu.memory_space<vmem>>, vector<128x128xbf16>
    %c0_11 = arith.constant 0 : index
    %c0_12 = arith.constant 0 : index
    %22 = vector.load %arg6[%c0_11, %c0_12] : memref<1x128xf32, #tpu.memory_space<vmem>>, vector<1x128xf32>
    %23 = arith.truncf %20 : vector<256x128xf32> to vector<256x128xbf16>
    %cst_13 = arith.constant dense<0.000000e+00> : vector<256x128xf32>
    %24 = tpu.matmul %23, %21, %cst_13 {dimension_numbers = #tpu.dot_dimension_numbers<[1], [0], [0], [1], [0, 0, 1, 1], [], []>} : vector<256x128xbf16>, vector<128x128xbf16>, vector<256x128xf32> -> vector<256x128xf32>
    %25 = vector.broadcast %22 : vector<1x128xf32> to vector<256x128xf32>
    %26 = arith.addf %24, %25 : vector<256x128xf32>
    %cst_14 = arith.constant 0.000000e+00 : f32
    %27 = vector.broadcast %cst_14 : f32 to vector<256x128xf32>
    %28 = arith.maximumf %26, %27 : vector<256x128xf32>
    %c0_15 = arith.constant 0 : index
    %c0_16 = arith.constant 0 : index
    %29 = vector.load %arg7[%c0_15, %c0_16] : memref<128x128xf32, #tpu.memory_space<vmem>>, vector<128x128xf32>
    %c0_17 = arith.constant 0 : index
    %c0_18 = arith.constant 0 : index
    %30 = vector.load %arg8[%c0_17, %c0_18] : memref<1x128xf32, #tpu.memory_space<vmem>>, vector<1x128xf32>
    %cst_19 = arith.constant dense<0.000000e+00> : vector<256x128xf32>
    %31 = tpu.matmul %28, %29, %cst_19 {dimension_numbers = #tpu.dot_dimension_numbers<[1], [0], [0], [1], [0, 0, 1, 1], [], []>} : vector<256x128xf32>, vector<128x128xf32>, vector<256x128xf32> -> vector<256x128xf32>
    %32 = vector.broadcast %30 : vector<1x128xf32> to vector<256x128xf32>
    %33 = arith.addf %31, %32 : vector<256x128xf32>
    %34 = tpu.transpose %33, [1, 0] : vector<256x128xf32> -> vector<128x256xf32>
    %35 = vector.extract_strided_slice %34 {offsets = [0, 0], sizes = [8, 256], strides = [1, 1]} : vector<128x256xf32> to vector<8x256xf32>
    %c0_20 = arith.constant 0 : index
    %c0_21 = arith.constant 0 : index
    %36 = vector.load %arg9[%c0_20, %c0_21] : memref<8x256xf32, #tpu.memory_space<vmem>>, vector<8x256xf32>
    tpu.vector_store %arg9[%c0_20, %c0_21], %35 {strides = array<i32>} : memref<8x256xf32, #tpu.memory_space<vmem>>, vector<8x256xf32>,
    return
  }
  func.func @transform_0(%arg0: i32) -> (i32, i32) {
    %c0_i32 = arith.constant 0 : i32
    %c0_i32_0 = arith.constant 0 : i32
    return %arg0, %c0_i32 : i32, i32
  }
  func.func @transform_1(%arg0: i32) -> (i32, i32) {
    %c0_i32 = arith.constant 0 : i32
    %c0_i32_0 = arith.constant 0 : i32
    %c0_i32_1 = arith.constant 0 : i32
    return %c0_i32, %c0_i32_0 : i32, i32
  }
  func.func @transform_2(%arg0: i32) -> (i32, i32) {
    %c0_i32 = arith.constant 0 : i32
    %c0_i32_0 = arith.constant 0 : i32
    %c0_i32_1 = arith.constant 0 : i32
    return %c0_i32, %c0_i32_0 : i32, i32
  }
  func.func @transform_3(%arg0: i32) -> (i32, i32) {
    %c0_i32 = arith.constant 0 : i32
    %c0_i32_0 = arith.constant 0 : i32
    %c0_i32_1 = arith.constant 0 : i32
    return %c0_i32, %c0_i32_0 : i32, i32
  }
  func.func @transform_4(%arg0: i32) -> (i32, i32) {
    %c0_i32 = arith.constant 0 : i32
    %c0_i32_0 = arith.constant 0 : i32
    %c0_i32_1 = arith.constant 0 : i32
    return %c0_i32, %c0_i32_0 : i32, i32
  }
  func.func @transform_5(%arg0: i32) -> (i32, i32) {
    %c0_i32 = arith.constant 0 : i32
    %c0_i32_0 = arith.constant 0 : i32
    %c0_i32_1 = arith.constant 0 : i32
    return %c0_i32, %c0_i32_0 : i32, i32
  }
  func.func @transform_6(%arg0: i32) -> (i32, i32) {
    %c0_i32 = arith.constant 0 : i32
    %c0_i32_0 = arith.constant 0 : i32
    %c0_i32_1 = arith.constant 0 : i32
    return %c0_i32, %c0_i32_0 : i32, i32
  }
  func.func @transform_7(%arg0: i32) -> (i32, i32) {
    %c0_i32 = arith.constant 0 : i32
    %c0_i32_0 = arith.constant 0 : i32
    %c0_i32_1 = arith.constant 0 : i32
    return %c0_i32, %c0_i32_0 : i32, i32
  }
  func.func @transform_8(%arg0: i32) -> (i32, i32) {
    %c0_i32 = arith.constant 0 : i32
    %c0_i32_0 = arith.constant 0 : i32
    return %c0_i32, %arg0 : i32, i32
  }
}

module attributes {stable_mosaic.version = 11 : i64} {
  func.func @_mlp_gather_kernel(%arg0: i32, %arg1: memref<256x2xi32, #tpu.memory_space<vmem>>, %arg2: memref<256x256xf32, #tpu.memory_space<vmem>>, %arg3: memref<256x128xbf16, #tpu.memory_space<vmem>>, %arg4: memref<1x128xf32, #tpu.memory_space<vmem>>, %arg5: memref<128x128xbf16, #tpu.memory_space<vmem>>, %arg6: memref<1x128xf32, #tpu.memory_space<vmem>>, %arg7: memref<128x128xf32, #tpu.memory_space<vmem>>, %arg8: memref<1x128xf32, #tpu.memory_space<vmem>>, %arg9: memref<8x256xf32, #tpu.memory_space<vmem>>) attributes {dimension_semantics = [#tpu.dimension_semantics<parallel>], iteration_bounds = array<i64: 1>, scalar_prefetch = 0 : i64, scratch_operands = 0 : i64, tpu.core_type = #tpu.core_type<tc>, window_params = [{transform_indices = @transform_0, window_bounds = array<i64: 256, 2>}, {pipeline_mode = #tpu.pipeline_mode<synchronous>, transform_indices = @transform_1, window_bounds = array<i64: 256, 256>}, {pipeline_mode = #tpu.pipeline_mode<synchronous>, transform_indices = @transform_2, window_bounds = array<i64: 256, 128>}, {pipeline_mode = #tpu.pipeline_mode<synchronous>, transform_indices = @transform_3, window_bounds = array<i64: 1, 128>}, {pipeline_mode = #tpu.pipeline_mode<synchronous>, transform_indices = @transform_4, window_bounds = array<i64: 128, 128>}, {pipeline_mode = #tpu.pipeline_mode<synchronous>, transform_indices = @transform_5, window_bounds = array<i64: 1, 128>}, {pipeline_mode = #tpu.pipeline_mode<synchronous>, transform_indices = @transform_6, window_bounds = array<i64: 128, 128>}, {pipeline_mode = #tpu.pipeline_mode<synchronous>, transform_indices = @transform_7, window_bounds = array<i64: 1, 128>}, {transform_indices = @transform_8, window_bounds = array<i64: 8, 256>}]} {
    %c0 = arith.constant 0 : index
    %c0_0 = arith.constant 0 : index
    %0 = vector.load %arg1[%c0, %c0_0] : memref<256x2xi32, #tpu.memory_space<vmem>>, vector<256x2xi32>
    %1 = vector.extract_strided_slice %0 {offsets = [0, 0], sizes = [256, 1], strides = [1, 1]} : vector<256x2xi32> to vector<256x1xi32>
    %2 = vector.extract_strided_slice %0 {offsets = [0, 1], sizes = [256, 1], strides = [1, 1]} : vector<256x2xi32> to vector<256x1xi32>
    %3 = tpu.iota {dimensions = array<i32: 1>} : vector<256x256xi32>
    %4 = vector.broadcast %1 : vector<256x1xi32> to vector<256x256xi32>
    %5 = arith.cmpi eq, %3, %4 : vector<256x256xi32>
    %6 = vector.broadcast %2 : vector<256x1xi32> to vector<256x256xi32>
    %7 = arith.cmpi eq, %3, %6 : vector<256x256xi32>
    %8 = arith.ori %5, %7 : vector<256x256xi1>
    %9 = arith.extui %8 : vector<256x256xi1> to vector<256x256xi32>
    %10 = arith.sitofp %9 : vector<256x256xi32> to vector<256x256xf32>
    %c0_1 = arith.constant 0 : index
    %c0_2 = arith.constant 0 : index
    %11 = vector.load %arg2[%c0_1, %c0_2] : memref<256x256xf32, #tpu.memory_space<vmem>>, vector<256x256xf32>
    %cst = arith.constant dense<0.000000e+00> : vector<256x256xf32>
    %12 = tpu.matmul %10, %11, %cst {dimension_numbers = #tpu.dot_dimension_numbers<[1], [0], [0], [1], [0, 0, 1, 1], [], []>} : vector<256x256xf32>, vector<256x256xf32>, vector<256x256xf32> -> vector<256x256xf32>
    %c0_3 = arith.constant 0 : index
    %c0_4 = arith.constant 0 : index
    %13 = vector.load %arg3[%c0_3, %c0_4] : memref<256x128xbf16, #tpu.memory_space<vmem>>, vector<256x128xbf16>
    %c0_5 = arith.constant 0 : index
    %c0_6 = arith.constant 0 : index
    %14 = vector.load %arg4[%c0_5, %c0_6] : memref<1x128xf32, #tpu.memory_space<vmem>>, vector<1x128xf32>
    %15 = arith.truncf %12 : vector<256x256xf32> to vector<256x256xbf16>
    %cst_7 = arith.constant dense<0.000000e+00> : vector<256x128xf32>
    %16 = tpu.matmul %15, %13, %cst_7 {dimension_numbers = #tpu.dot_dimension_numbers<[1], [0], [0], [1], [0, 0, 1, 1], [], []>} : vector<256x256xbf16>, vector<256x128xbf16>, vector<256x128xf32> -> vector<256x128xf32>
    %17 = vector.broadcast %14 : vector<1x128xf32> to vector<256x128xf32>
    %18 = arith.addf %16, %17 : vector<256x128xf32>
    %cst_8 = arith.constant 0.000000e+00 : f32
    %19 = vector.broadcast %cst_8 : f32 to vector<256x128xf32>
    %20 = arith.maximumf %18, %19 : vector<256x128xf32>
    %c0_9 = arith.constant 0 : index
    %c0_10 = arith.constant 0 : index
    %21 = vector.load %arg5[%c0_9, %c0_10] : memref<128x128xbf16, #tpu.memory_space<vmem>>, vector<128x128xbf16>
    %c0_11 = arith.constant 0 : index
    %c0_12 = arith.constant 0 : index
    %22 = vector.load %arg6[%c0_11, %c0_12] : memref<1x128xf32, #tpu.memory_space<vmem>>, vector<1x128xf32>
    %23 = arith.truncf %20 : vector<256x128xf32> to vector<256x128xbf16>
    %cst_13 = arith.constant dense<0.000000e+00> : vector<256x128xf32>
    %24 = tpu.matmul %23, %21, %cst_13 {dimension_numbers = #tpu.dot_dimension_numbers<[1], [0], [0], [1], [0, 0, 1, 1], [], []>} : vector<256x128xbf16>, vector<128x128xbf16>, vector<256x128xf32> -> vector<256x128xf32>
    %25 = vector.broadcast %22 : vector<1x128xf32> to vector<256x128xf32>
    %26 = arith.addf %24, %25 : vector<256x128xf32>
    %cst_14 = arith.constant 0.000000e+00 : f32
    %27 = vector.broadcast %cst_14 : f32 to vector<256x128xf32>
    %28 = arith.maximumf %26, %27 : vector<256x128xf32>
    %c0_15 = arith.constant 0 : index
    %c0_16 = arith.constant 0 : index
    %29 = vector.load %arg7[%c0_15, %c0_16] : memref<128x128xf32, #tpu.memory_space<vmem>>, vector<128x128xf32>
    %c0_17 = arith.constant 0 : index
    %c0_18 = arith.constant 0 : index
    %30 = vector.load %arg8[%c0_17, %c0_18] : memref<1x128xf32, #tpu.memory_space<vmem>>, vector<1x128xf32>
    %cst_19 = arith.constant dense<0.000000e+00> : vector<256x128xf32>
    %31 = tpu.matmul %28, %29, %cst_19 {dimension_numbers = #tpu.dot_dimension_numbers<[1], [0], [0], [1], [0, 0, 1, 1], [], []>} : vector<256x128xf32>, vector<128x128xf32>, vector<256x128xf32> -> vector<256x128xf32>
    %32 = vector.broadcast %30 : vector<1x128xf32> to vector<256x128xf32>
    %33 = arith.addf %31, %32 : vector<256x128xf32>
    %34 = tpu.transpose %33, [1, 0] : vector<256x128xf32> -> vector<128x256xf32>
    %35 = vector.extract_strided_slice %34 {offsets = [0, 0], sizes = [8, 256], strides = [1, 1]} : vector<128x256xf32> to vector<8x256xf32>
    %c0_20 = arith.constant 0 : index
    %c0_21 = arith.constant 0 : index
    %36 = vector.load %arg9[%c0_20, %c0_21] : memref<8x256xf32, #tpu.memory_space<vmem>>, vector<8x256xf32>
    tpu.vector_store %arg9[%c0_20, %c0_21], %35 {strides = array<i32>} : memref<8x256xf32, #tpu.memory_space<vmem>>, vector<8x256xf32>,
    return
  }
  func.func @transform_0(%arg0: i32) -> (i32, i32) {
    %c0_i32 = arith.constant 0 : i32
    %c0_i32_0 = arith.constant 0 : i32
    return %arg0, %c0_i32 : i32, i32
  }
  func.func @transform_1(%arg0: i32) -> (i32, i32) {
    %c0_i32 = arith.constant 0 : i32
    %c0_i32_0 = arith.constant 0 : i32
    %c0_i32_1 = arith.constant 0 : i32
    return %c0_i32, %c0_i32_0 : i32, i32
  }
  func.func @transform_2(%arg0: i32) -> (i32, i32) {
    %c0_i32 = arith.constant 0 : i32
    %c0_i32_0 = arith.constant 0 : i32
    %c0_i32_1 = arith.constant 0 : i32
    return %c0_i32, %c0_i32_0 : i32, i32
  }
  func.func @transform_3(%arg0: i32) -> (i32, i32) {
    %c0_i32 = arith.constant 0 : i32
    %c0_i32_0 = arith.constant 0 : i32
    %c0_i32_1 = arith.constant 0 : i32
    return %c0_i32, %c0_i32_0 : i32, i32
  }
  func.func @transform_4(%arg0: i32) -> (i32, i32) {
    %c0_i32 = arith.constant 0 : i32
    %c0_i32_0 = arith.constant 0 : i32
    %c0_i32_1 = arith.constant 0 : i32
    return %c0_i32, %c0_i32_0 : i32, i32
  }
  func.func @transform_5(%arg0: i32) -> (i32, i32) {
    %c0_i32 = arith.constant 0 : i32
    %c0_i32_0 = arith.constant 0 : i32
    %c0_i32_1 = arith.constant 0 : i32
    return %c0_i32, %c0_i32_0 : i32, i32
  }
  func.func @transform_6(%arg0: i32) -> (i32, i32) {
    %c0_i32 = arith.constant 0 : i32
    %c0_i32_0 = arith.constant 0 : i32
    %c0_i32_1 = arith.constant 0 : i32
    return %c0_i32, %c0_i32_0 : i32, i32
  }
  func.func @transform_7(%arg0: i32) -> (i32, i32) {
    %c0_i32 = arith.constant 0 : i32
    %c0_i32_0 = arith.constant 0 : i32
    %c0_i32_1 = arith.constant 0 : i32
    return %c0_i32, %c0_i32_0 : i32, i32
  }
  func.func @transform_8(%arg0: i32) -> (i32, i32) {
    %c0_i32 = arith.constant 0 : i32
    %c0_i32_0 = arith.constant 0 : i32
    return %c0_i32, %arg0 : i32, i32
  }
}

</mosaic_0001>

<bundles_post_ra>
// kernel: tpu_custom_call.1
= control target key start
LH: loop header
LB: loop body
LE: loop exit
PB: predicated region body
PF: predicated region fallthrough
CT: control target
= control target key end

     0   :  { %13 = vsyncpa [#allocation3], 0  ;;  %s3264_s0 = inlined_call_operand.vmem [shape: s32[256,2], index: 0, kind: input, shape index: {}]   ;;  %s3265_s1 = inlined_call_operand.hbm [shape: f32[256,256], index: 1, kind: input, shape index: {}]   ;;  %s3266_s2 = inlined_call_operand.vmem [shape: bf16[256,128], index: 2, kind: input, shape index: {}]   ;;  %s3267_s3 = inlined_call_operand.vmem [shape: f32[1,128], index: 3, kind: input, shape index: {}]   ;;  %s3268_s4 = inlined_call_operand.hbm [shape: bf16[128,128], index: 4, kind: input, shape index: {}]   ;;  %s3269_s5 = inlined_call_operand.vmem [shape: f32[1,128], index: 5, kind: input, shape index: {}]   ;;  %s3270_s6 = inlined_call_operand.vmem [shape: f32[128,128], index: 6, kind: input, shape index: {}]   ;;  %s3271_s7 = inlined_call_operand.vmem [shape: f32[1,128], index: 7, kind: input, shape index: {}]   ;;  %s3272_s8 = inlined_call_operand.hbm [shape: f32[8,256], index: 8, kind: output, shape index: {}]  }
   0x1   :  { %14 = vsyncpa [#allocation6], 0 }
   0x2   :  { %15 = vsyncpa [#allocation4], 0  ;;  %s22_s29 = sshll.u32 %s3265_s1, 4  ;;  %s2365_s30 = smov [#allocation2]   ;;  %s23_s29 = int_to_ptr.hbm [resolvable:$true] %s22_s29 }
   0x3   :  { %s24_s9 = sshll.u32 %s2365_s30, 4  ;;  %s39_s12 = sshll.u32 %s3268_s4, 4  ;;  %s25_s9 = int_to_ptr.vmem [resolvable:$true] %s24_s9  ;;  %s40_s12 = int_to_ptr.hbm [resolvable:$true] %s39_s12 }
   0x4   :  { %s2366_s13 = smov 256   ;;  %s2367_s14 = smov 16  }
   0x5   :  { %30 = dma.hbm_to_vmem [thread:$0]  %s23_s29, 8192, %s25_s9, [#allocation3], %s2366_s13, %s2366_s13, %s2367_s14  }
   0x6   :  { %s2368_s15 = smov [#allocation5]   ;;  %s2369_s17 = smov 64  }
   0x7   :  { %s41_s16 = sshll.u32 %s2368_s15, 4  ;;  %s2370_s18 = smov 4   ;;  %s42_s16 = int_to_ptr.vmem [resolvable:$true] %s41_s16 }
   0x8   :  { %47 = dma.hbm_to_vmem [thread:$0]  %s40_s12, 1024, %s42_s16, [#allocation6], %s2369_s17, %s2369_s17, %s2370_s18  }
   0x9   :  { %2359 = dma.done.wait [#allocation3], 8192  }
   0xa   :  { %2360 = vsyncadd [#allocation3], 4294959104 }
   0xb   :  { %2361 = dma.done.wait [#allocation6], 1024  }
   0xc   :  { %2362 = vsyncadd [#allocation6], 4294966272  ;;  %v2371_v0 = vmov 0   ;;  %v63_v1 = vld [vmem:[%s3264_s0 + $0x8] sm:$0xff]  ;;  %v62_v2 = vld [vmem:[%s3264_s0] sm:$0xff]  ;;  %v2372_v4 = vmov 1  }
   0xd   :  { %2245 = vset.pattern.permute.xlu1 %v2371_v0  ;;  %2243 = vset.pattern.permute.xlu0 %v2371_v0  ;;  %v64_v3 = vld [vmem:[%s3264_s0 + $0x10] sm:$0xff]  ;;  %v65_v5 = vld [vmem:[%s3264_s0 + $0x18] sm:$0xff]  ;;  %v66_v6 = vld [vmem:[%s3264_s0 + $0x20] sm:$0xff]  ;;  %s1910_s26 = sshll.u32 %s3272_s8, 4  ;;  %s1911_s26 = int_to_ptr.hbm [resolvable:$true] %s1910_s26 }
   0xe   :  { %2247 = vset.pattern.permute.xlu2 %v2371_v0  ;;  %101 = vperm.xlu1 %2245, %v63_v1   ;;  %v68_v7 = vld [vmem:[%s3264_s0 + $0x30] sm:$0xff]  ;;  %v67_v8 = vld [vmem:[%s3264_s0 + $0x28] sm:$0xff]  ;;  %v640_v12 = vld [vmem:[#allocation2 + $0xf8] sm:$0xff] }
   0xf   :  { %98 = vperm.xlu0 %2243, %v62_v2   ;;  %104 = vperm.xlu2 %2247, %v64_v3   ;;  %v2461_v9 = vld [vmem:[%s3264_s0 + $0x48] sm:$0xff]  ;;  %v639_v10 = vld [vmem:[#allocation2 + $0xf0] sm:$0xff]  ;;  %v672_v13 = vld [vmem:[#allocation2 + $0x1f8] sm:$0xff] }
  0x10   :  { %v671_v11 = vld [vmem:[#allocation2 + $0x1f0] sm:$0xff]  ;;  %673 = vmatpush.msra.mxu0 %v639_v10  ;;  %899 = vmatpush.msra.mxu2 %v640_v12  ;;  %v69_v14 = vld [vmem:[%s3264_s0 + $0x38] sm:$0xff]  ;;  %v637_v16 = vld [vmem:[#allocation2 + $0xe0] sm:$0xff] }
  0x11   :  { %786 = vmatpush.msra.mxu1 %v671_v11  ;;  %1012 = vmatpush.msra.mxu3 %v672_v13  ;;  %v2471_v15 = vld [vmem:[%s3264_s0 + $0x58] sm:$0xff]  ;;  %v669_v17 = vld [vmem:[#allocation2 + $0x1e0] sm:$0xff]  ;;  %v638_v18 = vld [vmem:[#allocation2 + $0xe8] sm:$0xff] }
  0x12   :  { %674 = vmatpush.msra.mxu0 %v637_v16  ;;  %v670_v19 = vld [vmem:[#allocation2 + $0x1e8] sm:$0xff]  ;;  %v635_v20 = vld [vmem:[#allocation2 + $0xd0] sm:$0xff]  ;;  %900 = vmatpush.msra.mxu2 %v638_v18  ;;  %v636_v22 = vld [vmem:[#allocation2 + $0xd8] sm:$0xff] }
  0x13   :  { %787 = vmatpush.msra.mxu1 %v669_v17  ;;  %v667_v21 = vld [vmem:[#allocation2 + $0x1d0] sm:$0xff]  ;;  %1013 = vmatpush.msra.mxu3 %v670_v19  ;;  %v668_v23 = vld [vmem:[#allocation2 + $0x1d8] sm:$0xff]  ;;  %v633_v24 = vld [vmem:[#allocation2 + $0xc0] sm:$0xff] }
  0x14   :  { %v70_v25 = vld [vmem:[%s3264_s0 + $0x40] sm:$0xff]  ;;  %675 = vmatpush.msra.mxu0 %v635_v20  ;;  %v634_v27 = vld [vmem:[#allocation2 + $0xc8] sm:$0xff]  ;;  %901 = vmatpush.msra.mxu2 %v636_v22  ;;  %v631_v29 = vld [vmem:[#allocation2 + $0xb0] sm:$0xff] }
  0x15   :  { %788 = vmatpush.msra.mxu1 %v667_v21  ;;  %v665_v26 = vld [vmem:[#allocation2 + $0x1c0] sm:$0xff]  ;;  %1014 = vmatpush.msra.mxu3 %v668_v23  ;;  %v666_v28 = vld [vmem:[#allocation2 + $0x1c8] sm:$0xff]  ;;  %v663_v30 = vld [vmem:[#allocation2 + $0x1b0] sm:$0xff] }
  0x16   :  { %2246 = vset.pattern.permute.xlu1 %v2372_v4  ;;  %676 = vmatpush.msra.mxu0 %v633_v24  ;;  %v632_v31 = vld [vmem:[#allocation2 + $0xb8] sm:$0xff]  ;;  %v629_v33 = vld [vmem:[#allocation2 + $0xa0] sm:$0xff]  ;;  %v630_v35 = vld [vmem:[#allocation2 + $0xa8] sm:$0xff]  ;;  %v94_v24 = vlaneseq }
  0x17   :  { %2244 = vset.pattern.permute.xlu0 %v2372_v4  ;;  %261 = vperm.xlu1 %2246, %v63_v1   ;;  %v664_v32 = vld [vmem:[#allocation2 + $0x1b8] sm:$0xff]  ;;  %v661_v34 = vld [vmem:[#allocation2 + $0x1a0] sm:$0xff]  ;;  %v662_v36 = vld [vmem:[#allocation2 + $0x1a8] sm:$0xff] }
  0x18   :  { %258 = vperm.xlu0 %2244, %v62_v2   ;;  %2248 = vset.pattern.permute.xlu2 %v2372_v4  ;;  %v627_v37 = vld [vmem:[#allocation2 + $0x90] sm:$0xff]  ;;  %v628_v39 = vld [vmem:[#allocation2 + $0x98] sm:$0xff]  ;;  %v625_v41 = vld [vmem:[#allocation2 + $0x80] sm:$0xff] }
  0x19   :  { %264 = vperm.xlu2 %2248, %v64_v3   ;;  %789 = vmatpush.msra.mxu1 %v665_v26  ;;  %v659_v38 = vld [vmem:[#allocation2 + $0x190] sm:$0xff]  ;;  %v660_v40 = vld [vmem:[#allocation2 + $0x198] sm:$0xff]  ;;  %v657_v42 = vld [vmem:[#allocation2 + $0x180] sm:$0xff]  ;;  %v2519_v26 = vand.u32 127, %v94_v24 }
  0x1a   :  { %902 = vmatpush.msra.mxu2 %v634_v27  ;;  %1015 = vmatpush.msra.mxu3 %v666_v28  ;;  %v626_v43 = vld [vmem:[#allocation2 + $0x88] sm:$0xff]  ;;  %v623_v45 = vld [vmem:[#allocation2 + $0x70] sm:$0xff]  ;;  %v624_v48 = vld [vmem:[#allocation2 + $0x78] sm:$0xff] }
  0x1b   :  { %677 = vmatpush.msra.mxu0 %v631_v29  ;;  %790 = vmatpush.msra.mxu1 %v663_v30  ;;  %v658_v44 = vld [vmem:[#allocation2 + $0x188] sm:$0xff]  ;;  %v655_v46 = vld [vmem:[#allocation2 + $0x170] sm:$0xff]  ;;  %v656_v49 = vld [vmem:[#allocation2 + $0x178] sm:$0xff] }
  0x1c   :  { %903 = vmatpush.msra.mxu2 %v632_v31  ;;  %1016 = vmatpush.msra.mxu3 %v664_v32  ;;  %v72_v47 = vld [vmem:[%s3264_s0 + $0x50] sm:$0xff]  ;;  %v621_v50 = vld [vmem:[#allocation2 + $0x60] sm:$0xff]  ;;  %v622_v52 = vld [vmem:[#allocation2 + $0x68] sm:$0xff]  ;;  %v2531_v31 = vadd.s32 128, %v2519_v26 }
  0x1d   :  { %678 = vmatpush.msra.mxu0 %v629_v33  ;;  %791 = vmatpush.msra.mxu1 %v661_v34  ;;  %v653_v51 = vld [vmem:[#allocation2 + $0x160] sm:$0xff]  ;;  %v654_v53 = vld [vmem:[#allocation2 + $0x168] sm:$0xff]  ;;  %v76_v54 = vld [vmem:[%s3264_s0 + $0x70] sm:$0xff]  ;;  %v2373_v34 = vmov 1.0  }
  0x1e   :  { %904 = vmatpush.msra.mxu2 %v630_v35  ;;  %1017 = vmatpush.msra.mxu3 %v662_v36  ;;  %v74_v55 = vld [vmem:[%s3264_s0 + $0x60] sm:$0xff]  ;;  %v75_v56 = vld [vmem:[%s3264_s0 + $0x68] sm:$0xff]  ;;  %v619_v57 = vld [vmem:[#allocation2 + $0x50] sm:$0xff] }
  0x1f   :  { %2249 = vset.pattern.permute.xlu1 %v2371_v0  ;;  %679 = vmatpush.msra.mxu0 %v627_v37  ;;  %v651_v58 = vld [vmem:[#allocation2 + $0x150] sm:$0xff]  ;;  %v620_v59 = vld [vmem:[#allocation2 + $0x58] sm:$0xff]  ;;  %v617_v61 = vld [vmem:[#allocation2 + $0x40] sm:$0xff] }
  0x20   :  { %2250 = vset.pattern.permute.xlu0 %v2371_v0  ;;  %107 = vperm.xlu1 %2249, %v65_v5   ;;  %v652_v60 = vld [vmem:[#allocation2 + $0x158] sm:$0xff]  ;;  %v649_v62 = vld [vmem:[#allocation2 + $0x140] sm:$0xff]  ;;  %v618_v63 = vld [vmem:[#allocation2 + $0x48] sm:$0xff] }
  0x21   :  { %110 = vperm.xlu0 %2250, %v66_v6   ;;  %267 = vperm.xlu2 %2248, %v65_v5   ;;  %v650_v1 = vld [vmem:[#allocation2 + $0x148] sm:$0xff]  ;;  %v615_v2 = vld [vmem:[#allocation2 + $0x30] sm:$0xff]  ;;  %v616_v5 = vld [vmem:[#allocation2 + $0x38] sm:$0xff] }
  0x22   :  { %792 = vmatpush.msra.mxu1 %v659_v38  ;;  %905 = vmatpush.msra.mxu2 %v628_v39  ;;  %v647_v3 = vld [vmem:[#allocation2 + $0x130] sm:$0xff]  ;;  %v646_v10 = vld [vmem:[#allocation2 + $0x128] sm:$0xff]  ;;  %v612_v13 = vld [vmem:[#allocation2 + $0x18] sm:$0xff] }
  0x23   :  { %1018 = vmatpush.msra.mxu3 %v660_v40  ;;  %680 = vmatpush.msra.mxu0 %v625_v41  ;;  %v611_v11 = vld [vmem:[#allocation2 + $0x10] sm:$0xff]  ;;  %v641_v16 = vld [vmem:[#allocation2 + $0x100] sm:$0xff]  ;;  %v610_v17 = vld [vmem:[#allocation2 + $0x8] sm:$0xff] }
  0x24   :  { %793 = vmatpush.msra.mxu1 %v657_v42  ;;  %906 = vmatpush.msra.mxu2 %v626_v43  ;;  %v643_v12 = vld [vmem:[#allocation2 + $0x110] sm:$0xff]  ;;  %v642_v18 = vld [vmem:[#allocation2 + $0x108] sm:$0xff]  ;;  %v2216_v19 = vld [vmem:[%s3266_s2 + $0x38] sm:$0xff] }
  0x25   :  { %1019 = vmatpush.msra.mxu3 %v658_v44  ;;  %681 = vmatpush.msra.mxu0 %v623_v45  ;;  %v2224_v20 = vld [vmem:[%s3266_s2 + $0x78] sm:$0xff]  ;;  %v78_v21 = vld [vmem:[%s3264_s0 + $0x80] sm:$0xff]  ;;  %v79_v23 = vld [vmem:[%s3264_s0 + $0x88] sm:$0xff] }
  0x26   :  { %794 = vmatpush.msra.mxu1 %v655_v46  ;;  %907 = vmatpush.msra.mxu2 %v624_v48  ;;  %v77_v22 = vld [vmem:[%s3264_s0 + $0x78] sm:$0xff]  ;;  %v80_v28 = vld [vmem:[%s3264_s0 + $0x90] sm:$0xff]  ;;  %v82_v38 = vld [vmem:[%s3264_s0 + $0xa0] sm:$0xff] }
  0x27   :  { %1020 = vmatpush.msra.mxu3 %v656_v49  ;;  %682 = vmatpush.msra.mxu0 %v621_v50  ;;  %v81_v29 = vld [vmem:[%s3264_s0 + $0x98] sm:$0xff]  ;;  %v2215_v30 = vld [vmem:[%s3266_s2 + $0x30] sm:$0xff]  ;;  %v83_v39 = vld [vmem:[%s3264_s0 + $0xa8] sm:$0xff] }
  0x28   :  { %2251 = vset.pattern.permute.xlu1 %v2372_v4  ;;  %795 = vmatpush.msra.mxu1 %v653_v51  ;;  %v2223_v36 = vld [vmem:[%s3266_s2 + $0x70] sm:$0xff]  ;;  %v85_v45 = vld [vmem:[%s3264_s0 + $0xb8] sm:$0xff]  ;;  %v2214_v48 = vld [vmem:[%s3266_s2 + $0x28] sm:$0xff] }
  0x29   :  { %2253 = vset.pattern.permute.xlu0 %v2372_v4  ;;  %270 = vperm.xlu1 %2251, %v66_v6   ;;  %v648_v6 = vld [vmem:[#allocation2 + $0x138] sm:$0xff]  ;;  %v84_v42 = vld [vmem:[%s3264_s0 + $0xb0] sm:$0xff]  ;;  %v2222_v49 = vld [vmem:[%s3266_s2 + $0x68] sm:$0xff] }
  0x2a   :  { %276 = vperm.xlu0 %2253, %v68_v7   ;;  %2252 = vset.pattern.permute.xlu2 %v2371_v0  ;;  %v86_v50 = vld [vmem:[%s3264_s0 + $0xc0] sm:$0xff] }
  0x2b   :  { %113 = vperm.xlu2 %2252, %v67_v8   ;;  %908 = vmatpush.msra.mxu2 %v622_v52 }
  0x2c   :  { %1021 = vmatpush.msra.mxu3 %v654_v53  ;;  %683 = vmatpush.msra.mxu0 %v619_v57  ;;  %v87_v53 = vld [vmem:[%s3264_s0 + $0xc8] sm:$0xff] }
  0x2d   :  { %796 = vmatpush.msra.mxu1 %v651_v58  ;;  %909 = vmatpush.msra.mxu2 %v620_v59  ;;  %v89_v59 = vld [vmem:[%s3264_s0 + $0xd8] sm:$0xff] }
  0x2e   :  { %1022 = vmatpush.msra.mxu3 %v652_v60  ;;  %684 = vmatpush.msra.mxu0 %v617_v61  ;;  %v2213_v60 = vld [vmem:[%s3266_s2 + $0x20] sm:$0xff] }
  0x2f   :  { %797 = vmatpush.msra.mxu1 %v649_v62  ;;  %910 = vmatpush.msra.mxu2 %v618_v63  ;;  %v2221_v63 = vld [vmem:[%s3266_s2 + $0x60] sm:$0xff] }
  0x30   :  { %1023 = vmatpush.msra.mxu3 %v650_v1  ;;  %685 = vmatpush.msra.mxu0 %v615_v2  ;;  %v90_v1 = vld [vmem:[%s3264_s0 + $0xe0] sm:$0xff] }
  0x31   :  { %273 = vperm.xlu1 %2251, %v67_v8   ;;  %v645_v8 = vld [vmem:[#allocation2 + $0x120] sm:$0xff]  ;;  %798 = vmatpush.msra.mxu1 %v647_v3 }
  0x32   :  { %2256 = vset.pattern.permute.xlu0 %v2371_v0  ;;  %911 = vmatpush.msra.mxu2 %v616_v5  ;;  %v91_v5 = vld [vmem:[%s3264_s0 + $0xe8] sm:$0xff] }
  0x33   :  { %125 = vperm.xlu0 %2256, %v2461_v9   ;;  %116 = vperm.xlu2 %2252, %v68_v7   ;;  %v613_v7 = vld [vmem:[#allocation2 + $0x20] sm:$0xff] }
  0x34   :  { %1024 = vmatpush.msra.mxu3 %v648_v6  ;;  %686 = vmatpush.msra.mxu0 %v613_v7 }
  0x35   :  { %799 = vmatpush.msra.mxu1 %v645_v8  ;;  %v92_v8 = vld [vmem:[%s3264_s0 + $0xf0] sm:$0xff] }
  0x36   :  { %1025 = vmatpush.msra.mxu3 %v646_v10  ;;  %687 = vmatpush.msra.mxu0 %v611_v11 }
  0x37   :  { %800 = vmatpush.msra.mxu1 %v643_v12  ;;  %v2212_v12 = vld [vmem:[%s3266_s2 + $0x18] sm:$0xff] }
  0x39   :  { %2254 = vset.pattern.permute.xlu1 %v2371_v0  ;;  %801 = vmatpush.msra.mxu1 %v641_v16 }
  0x3a   :  { %119 = vperm.xlu1 %2254, %v69_v14  }
  0x3b   :  { %2259 = vset.pattern.permute.xlu0 %v2372_v4  ;;  %2255 = vset.pattern.permute.xlu2 %v2372_v4 }
  0x3c   :  { %291 = vperm.xlu0 %2259, %v2471_v15   ;;  %279 = vperm.xlu2 %2255, %v69_v14   ;;  %v644_v14 = vld [vmem:[#allocation2 + $0x118] sm:$0xff] }
  0x3d   :  { %1026 = vmatpush.msra.mxu3 %v644_v14  ;;  %1378 = vmatpush.bf16.msrb.mxu1 %v2224_v20 }
  0x3f   :  { %1027 = vmatpush.msra.mxu3 %v642_v18 }
  0x41   :  { %1379 = vmatpush.bf16.msrb.mxu1 %v2223_v36 }
  0x42   :  { %122 = vperm.xlu1 %2254, %v70_v25  }
  0x44   :  { %282 = vperm.xlu2 %2255, %v70_v25   ;;  %2262 = vset.pattern.permute.xlu0 %v2371_v0 }
  0x45   :  { %140 = vperm.xlu0 %2262, %v76_v54   ;;  %1380 = vmatpush.bf16.msrb.mxu1 %v2222_v49 }
  0x49   :  { %1381 = vmatpush.bf16.msrb.mxu1 %v2221_v63 }
  0x4a   :  { %2257 = vset.pattern.permute.xlu1 %v2372_v4 }
  0x4b   :  { %285 = vperm.xlu1 %2257, %v2461_v9   ;;  %v614_v9 = vld [vmem:[#allocation2 + $0x28] sm:$0xff] }
  0x4c   :  { %2258 = vset.pattern.permute.xlu2 %v2371_v0  ;;  %912 = vmatpush.msra.mxu2 %v614_v9 }
  0x4d   :  { %128 = vperm.xlu2 %2258, %v72_v47   ;;  %2265 = vset.pattern.permute.xlu0 %v2372_v4 }
  0x4e   :  { %913 = vmatpush.msra.mxu2 %v612_v13  ;;  %306 = vperm.xlu0 %2265, %v78_v21   ;;  %v2220_v13 = vld [vmem:[%s3266_s2 + $0x58] sm:$0xff] }
  0x4f   :  { %1382 = vmatpush.bf16.msrb.mxu1 %v2220_v13 }
  0x50   :  { %914 = vmatpush.msra.mxu2 %v610_v17  ;;  %v2232_v17 = vld [vmem:[#allocation5 + $0x38] sm:$0xff] }
  0x52   :  { %1583 = vmatpush.bf16.msrb.mxu2 %v2232_v17 }
  0x53   :  { %288 = vperm.xlu1 %2257, %v72_v47  }
  0x55   :  { %131 = vperm.xlu2 %2258, %v2471_v15   ;;  %v609_v15 = vld [vmem:[#allocation2] sm:$0xff] }
  0x56   :  { %688 = vmatpush.msra.mxu0 %v609_v15  ;;  %2268 = vset.pattern.permute.xlu0 %v2371_v0 }
  0x57   :  { %155 = vperm.xlu0 %2268, %v81_v29  }
  0x58   :  { %1289 = vmatpush.bf16.msrb.mxu0 %v2216_v19 }
  0x5b   :  { %2260 = vset.pattern.permute.xlu1 %v2371_v0 }
  0x5c   :  { %134 = vperm.xlu1 %2260, %v74_v55   ;;  %1290 = vmatpush.bf16.msrb.mxu0 %v2215_v30 }
  0x5d   :  { %2261 = vset.pattern.permute.xlu2 %v2372_v4 }
  0x5e   :  { %294 = vperm.xlu2 %2261, %v74_v55  }
  0x5f   :  { %2271 = vset.pattern.permute.xlu0 %v2372_v4 }
  0x60   :  { %321 = vperm.xlu0 %2271, %v83_v39   ;;  %1291 = vmatpush.bf16.msrb.mxu0 %v2214_v48  ;;  %v2218_v48 = vld [vmem:[%s3266_s2 + $0x48] sm:$0xff] }
  0x64   :  { %137 = vperm.xlu1 %2260, %v75_v56   ;;  %1292 = vmatpush.bf16.msrb.mxu0 %v2213_v60 }
  0x66   :  { %297 = vperm.xlu2 %2261, %v75_v56   ;;  %v88_v56 = vld [vmem:[%s3264_s0 + $0xd0] sm:$0xff] }
  0x68   :  { %2274 = vset.pattern.permute.xlu0 %v2371_v0  ;;  %1293 = vmatpush.bf16.msrb.mxu0 %v2212_v12 }
  0x69   :  { %v105_v32 = vpop.permute.xlu2 %104  ;;  %170 = vperm.xlu0 %2274, %v86_v50  }
  0x6a   :  { %vm197_vm12 = vcmp.eq.s32.totalorder %v2519_v26, %v105_v32  ;;  %vm198_vm14 = vcmp.eq.s32.totalorder %v2531_v31, %v105_v32 }
  0x6c   :  { %2263 = vset.pattern.permute.xlu1 %v2372_v4 }
  0x6d   :  { %300 = vperm.xlu1 %2263, %v76_v54  }
  0x6e   :  { %2264 = vset.pattern.permute.xlu2 %v2371_v0 }
  0x6f   :  { %143 = vperm.xlu2 %2264, %v77_v22  }
  0x71   :  { %2277 = vset.pattern.permute.xlu0 %v2372_v4 }
  0x72   :  { %336 = vperm.xlu0 %2277, %v88_v56  }
  0x73   :  { %v265_v37 = vpop.permute.xlu2 %264 }
  0x74   :  { %vm357_vm13 = vcmp.eq.s32.totalorder %v2519_v26, %v265_v37  ;;  %vm358_vm15 = vcmp.eq.s32.totalorder %v2531_v31, %v265_v37 }
  0x75   :  { %303 = vperm.xlu1 %2263, %v77_v22  }
  0x77   :  { %146 = vperm.xlu2 %2264, %v78_v21  }
  0x7a   :  { %2280 = vset.pattern.permute.xlu0 %v2371_v0 }
  0x7b   :  { %v268_v41 = vpop.permute.xlu2 %267  ;;  %185 = vperm.xlu0 %2280, %v91_v5  }
  0x7d   :  { %2266 = vset.pattern.permute.xlu1 %v2371_v0 }
  0x7e   :  { %149 = vperm.xlu1 %2266, %v79_v23  }
  0x7f   :  { %2267 = vset.pattern.permute.xlu2 %v2372_v4 }
  0x80   :  { %v102_v27 = vpop.permute.xlu1 %101  ;;  %309 = vperm.xlu2 %2267, %v79_v23  }
  0x81   :  { %v99_v25 = vpop.permute.xlu0 %98  ;;  %vm195_vm6 = vcmp.eq.s32.totalorder %v2519_v26, %v102_v27  ;;  %vm196_vm8 = vcmp.eq.s32.totalorder %v2531_v31, %v102_v27  ;;  %v2219_v27 = vld [vmem:[%s3266_s2 + $0x50] sm:$0xff] }
  0x82   :  { %vm193_vm0 = vcmp.eq.s32.totalorder %v2519_v26, %v99_v25  ;;  %vm194_vm3 = vcmp.eq.s32.totalorder %v2531_v31, %v99_v25  ;;  %v2211_v25 = vld [vmem:[%s3266_s2 + $0x10] sm:$0xff]  ;;  %1383 = vmatpush.bf16.msrb.mxu1 %v2219_v27 }
  0x83   :  { %2283 = vset.pattern.permute.xlu0 %v2372_v4  ;;  %1294 = vmatpush.bf16.msrb.mxu0 %v2211_v25  ;;  %v2229_v25 = vld [vmem:[#allocation5 + $0x20] sm:$0xff] }
  0x85   :  { %v114_v46 = vpop.permute.xlu2 %113 }
  0x86   :  { %152 = vperm.xlu1 %2266, %v80_v28   ;;  %1384 = vmatpush.bf16.msrb.mxu1 %v2218_v48 }
  0x88   :  { %312 = vperm.xlu2 %2267, %v80_v28  }
  0x89   :  { %v262_v35 = vpop.permute.xlu1 %261 }
  0x8a   :  { %v259_v33 = vpop.permute.xlu0 %258  ;;  %vm355_vm7 = vcmp.eq.s32.totalorder %v2519_v26, %v262_v35  ;;  %vm356_vm9 = vcmp.eq.s32.totalorder %v2531_v31, %v262_v35 }
  0x8b   :  { %vm353_vm1 = vcmp.eq.s32.totalorder %v2519_v26, %v259_v33  ;;  %vm354_vm2 = vcmp.eq.s32.totalorder %v2531_v31, %v259_v33  ;;  %vm419_vm10 = vmor %vm195_vm6, %vm355_vm7 }
  0x8c   :  { %vm417_vm4 = vmor %vm193_vm0, %vm353_vm1 }
  0x8d   :  { %1985 = vmatmul.msk.f32.vlgmr.msra.gmra.mxu0 %vm417_vm4, %v2373_v34  ;;  %vm418_vm5 = vmor %vm194_vm3, %vm354_vm2  ;;  %2049 = vmatmul.msk.f32.vlgmr.msra.gmra.mxu2 %vm417_vm4, %v2373_v34  ;;  %vm359_vm2 = vcmp.eq.s32.totalorder %v2519_v26, %v268_v41  ;;  %vm360_vm4 = vcmp.eq.s32.totalorder %v2531_v31, %v268_v41  ;;  %v117_v51 = vpop.permute.xlu2 %116 }
  0x8e   :  { %2017 = vmatmul.msk.f32.vlgmr.msra.gmra.mxu1 %vm418_vm5, %v2373_v34  ;;  %2081 = vmatmul.msk.f32.vlgmr.msra.gmra.mxu3 %vm418_vm5, %v2373_v34  ;;  %vm420_vm11 = vmor %vm196_vm8, %vm356_vm9 }
  0x8f   :  { %2269 = vset.pattern.permute.xlu1 %v2372_v4  ;;  %vm421_vm0 = vmor %vm197_vm12, %vm357_vm13 }
  0x90   :  { %315 = vperm.xlu1 %2269, %v81_v29   ;;  %2270 = vset.pattern.permute.xlu2 %v2371_v0  ;;  %vm422_vm1 = vmor %vm198_vm14, %vm358_vm15  ;;  %vm203_vm14 = vcmp.eq.s32.totalorder %v2519_v26, %v114_v46 }
  0x91   :  { %158 = vperm.xlu2 %2270, %v82_v38  }
  0x92   :  { %v108_v40 = vpop.permute.xlu1 %107 }
  0x93   :  { %vm199_vm3 = vcmp.eq.s32.totalorder %v2519_v26, %v108_v40  ;;  %vm200_vm5 = vcmp.eq.s32.totalorder %v2531_v31, %v108_v40  ;;  %v111_v44 = vpop.permute.xlu0 %110 }
  0x94   :  { %vm423_vm6 = vmor %vm199_vm3, %vm359_vm2  ;;  %vm201_vm9 = vcmp.eq.s32.totalorder %v2519_v26, %v111_v44 }
  0x95   :  { %1986 = vmatmul.msk.f32.gmra.mxu0 %vm419_vm10, %v2373_v34  ;;  %2050 = vmatmul.msk.f32.gmra.mxu2 %vm419_vm10, %v2373_v34  ;;  %vm424_vm7 = vmor %vm200_vm5, %vm360_vm4  ;;  %vm205_vm4 = vcmp.eq.s32.totalorder %v2519_v26, %v117_v51 }
  0x96   :  { %2018 = vmatmul.msk.f32.gmra.mxu1 %vm420_vm11, %v2373_v34  ;;  %2082 = vmatmul.msk.f32.gmra.mxu3 %vm420_vm11, %v2373_v34  ;;  %vm202_vm11 = vcmp.eq.s32.totalorder %v2531_v31, %v111_v44  ;;  %v280_v55 = vpop.permute.xlu2 %279 }
  0x98   :  { %318 = vperm.xlu1 %2269, %v82_v38   ;;  %v2231_v38 = vld [vmem:[#allocation5 + $0x30] sm:$0xff] }
  0x99   :  { %161 = vperm.xlu2 %2270, %v83_v39   ;;  %1584 = vmatpush.bf16.msrb.mxu2 %v2231_v38 }
  0x9b   :  { %v271_v43 = vpop.permute.xlu1 %270 }
  0x9c   :  { %vm361_vm8 = vcmp.eq.s32.totalorder %v2519_v26, %v271_v43  ;;  %vm362_vm10 = vcmp.eq.s32.totalorder %v2531_v31, %v271_v43  ;;  %v277_v52 = vpop.permute.xlu0 %276 }
  0x9d   :  { %1987 = vmatmul.msk.f32.gmra.mxu0 %vm421_vm0, %v2373_v34  ;;  %2051 = vmatmul.msk.f32.gmra.mxu2 %vm421_vm0, %v2373_v34  ;;  %vm425_vm12 = vmor %vm201_vm9, %vm361_vm8  ;;  %vm204_vm0 = vcmp.eq.s32.totalorder %v2531_v31, %v114_v46  ;;  %vm365_vm5 = vcmp.eq.s32.totalorder %v2519_v26, %v277_v52 }
  0x9e   :  { %2019 = vmatmul.msk.f32.gmra.mxu1 %vm422_vm1, %v2373_v34  ;;  %2083 = vmatmul.msk.f32.gmra.mxu3 %vm422_vm1, %v2373_v34  ;;  %vm426_vm13 = vmor %vm202_vm11, %vm362_vm10  ;;  %vm367_vm10 = vcmp.eq.s32.totalorder %v2519_v26, %v280_v55  ;;  %v283_v58 = vpop.permute.xlu2 %282 }
  0x9f   :  { %vm429_vm8 = vmor %vm205_vm4, %vm365_vm5 }
  0xa0   :  { %2272 = vset.pattern.permute.xlu1 %v2371_v0 }
  0xa1   :  { %164 = vperm.xlu1 %2272, %v84_v42   ;;  %2273 = vset.pattern.permute.xlu2 %v2372_v4 }
  0xa2   :  { %324 = vperm.xlu2 %2273, %v84_v42  }
  0xa3   :  { %v274_v47 = vpop.permute.xlu1 %273 }
  0xa4   :  { %vm363_vm15 = vcmp.eq.s32.totalorder %v2519_v26, %v274_v47  ;;  %vm364_vm1 = vcmp.eq.s32.totalorder %v2531_v31, %v274_v47  ;;  %v2210_v47 = vld [vmem:[%s3266_s2 + $0x8] sm:$0xff] }
  0xa5   :  { %1988 = vmatmul.msk.f32.gmra.mxu0 %vm423_vm6, %v2373_v34  ;;  %2052 = vmatmul.msk.f32.gmra.mxu2 %vm423_vm6, %v2373_v34  ;;  %vm427_vm2 = vmor %vm203_vm14, %vm363_vm15  ;;  %vm206_vm6 = vcmp.eq.s32.totalorder %v2531_v31, %v117_v51  ;;  %v126_v62 = vpop.permute.xlu0 %125 }
  0xa6   :  { %2020 = vmatmul.msk.f32.gmra.mxu1 %vm424_vm7, %v2373_v34  ;;  %2084 = vmatmul.msk.f32.gmra.mxu3 %vm424_vm7, %v2373_v34  ;;  %vm428_vm3 = vmor %vm204_vm0, %vm364_vm1  ;;  %vm366_vm7 = vcmp.eq.s32.totalorder %v2531_v31, %v277_v52  ;;  %vm369_vm0 = vcmp.eq.s32.totalorder %v2519_v26, %v283_v58 }
  0xa7   :  { %vm430_vm9 = vmor %vm206_vm6, %vm366_vm7  ;;  %vm211_vm7 = vcmp.eq.s32.totalorder %v2519_v26, %v126_v62  ;;  %v129_v2 = vpop.permute.xlu2 %128  ;;  %1295 = vmatpush.bf16.msrb.mxu0 %v2210_v47 }
  0xa9   :  { %167 = vperm.xlu1 %2272, %v85_v45  }
  0xaa   :  { %327 = vperm.xlu2 %2273, %v85_v45  }
  0xac   :  { %v120_v54 = vpop.permute.xlu1 %119 }
  0xad   :  { %1989 = vmatmul.msk.f32.gmra.mxu0 %vm425_vm12, %v2373_v34  ;;  %2053 = vmatmul.msk.f32.gmra.mxu2 %vm425_vm12, %v2373_v34  ;;  %vm207_vm11 = vcmp.eq.s32.totalorder %v2519_v26, %v120_v54  ;;  %vm368_vm12 = vcmp.eq.s32.totalorder %v2531_v31, %v280_v55 }
  0xae   :  { %2021 = vmatmul.msk.f32.gmra.mxu1 %vm426_vm13, %v2373_v34  ;;  %2085 = vmatmul.msk.f32.gmra.mxu3 %vm426_vm13, %v2373_v34  ;;  %vm208_vm13 = vcmp.eq.s32.totalorder %v2531_v31, %v120_v54  ;;  %vm431_vm14 = vmor %vm207_vm11, %vm367_vm10  ;;  %v292_v7 = vpop.permute.xlu0 %291 }
  0xaf   :  { %vm432_vm15 = vmor %vm208_vm13, %vm368_vm12  ;;  %vm213_vm12 = vcmp.eq.s32.totalorder %v2519_v26, %v129_v2  ;;  %v132_v6 = vpop.permute.xlu2 %131 }
  0xb1   :  { %2275 = vset.pattern.permute.xlu1 %v2372_v4 }
  0xb2   :  { %330 = vperm.xlu1 %2275, %v86_v50   ;;  %2276 = vset.pattern.permute.xlu2 %v2371_v0 }
  0xb3   :  { %173 = vperm.xlu2 %2276, %v87_v53  }
  0xb4   :  { %v123_v57 = vpop.permute.xlu1 %122 }
  0xb5   :  { %1990 = vmatmul.msk.f32.gmra.mxu0 %vm427_vm2, %v2373_v34  ;;  %2054 = vmatmul.msk.f32.gmra.mxu2 %vm427_vm2, %v2373_v34  ;;  %vm209_vm1 = vcmp.eq.s32.totalorder %v2519_v26, %v123_v57  ;;  %vm370_vm2 = vcmp.eq.s32.totalorder %v2531_v31, %v283_v58 }
  0xb6   :  { %2022 = vmatmul.msk.f32.gmra.mxu1 %vm428_vm3, %v2373_v34  ;;  %2086 = vmatmul.msk.f32.gmra.mxu3 %vm428_vm3, %v2373_v34  ;;  %vm210_vm3 = vcmp.eq.s32.totalorder %v2531_v31, %v123_v57  ;;  %vm433_vm4 = vmor %vm209_vm1, %vm369_vm0 }
  0xb7   :  { %vm434_vm5 = vmor %vm210_vm3, %vm370_vm2  ;;  %vm215_vm2 = vcmp.eq.s32.totalorder %v2519_v26, %v132_v6  ;;  %vm375_vm3 = vcmp.eq.s32.totalorder %v2519_v26, %v292_v7  ;;  %v141_v15 = vpop.permute.xlu0 %140 }
  0xb8   :  { %v295_v10 = vpop.permute.xlu2 %294 }
  0xba   :  { %333 = vperm.xlu1 %2275, %v87_v53  }
  0xbb   :  { %176 = vperm.xlu2 %2276, %v88_v56   ;;  %v2230_v56 = vld [vmem:[#allocation5 + $0x28] sm:$0xff] }
  0xbc   :  { %1585 = vmatpush.bf16.msrb.mxu2 %v2230_v56 }
  0xbd   :  { %1991 = vmatmul.msk.f32.gmra.mxu0 %vm429_vm8, %v2373_v34  ;;  %2055 = vmatmul.msk.f32.gmra.mxu2 %vm429_vm8, %v2373_v34  ;;  %v286_v61 = vpop.permute.xlu1 %285 }
  0xbe   :  { %2023 = vmatmul.msk.f32.gmra.mxu1 %vm430_vm9, %v2373_v34  ;;  %2087 = vmatmul.msk.f32.gmra.mxu3 %vm430_vm9, %v2373_v34  ;;  %vm371_vm6 = vcmp.eq.s32.totalorder %v2519_v26, %v286_v61  ;;  %vm372_vm8 = vcmp.eq.s32.totalorder %v2531_v31, %v286_v61  ;;  %vm212_vm9 = vcmp.eq.s32.totalorder %v2531_v31, %v126_v62 }
  0xbf   :  { %vm435_vm10 = vmor %vm211_vm7, %vm371_vm6 }
  0xc0   :  { %vm436_vm11 = vmor %vm212_vm9, %vm372_vm8  ;;  %vm377_vm8 = vcmp.eq.s32.totalorder %v2519_v26, %v295_v10  ;;  %v298_v11 = vpop.permute.xlu2 %297  ;;  %v307_v20 = vpop.permute.xlu0 %306  ;;  %1586 = vmatpush.bf16.msrb.mxu2 %v2229_v25 }
  0xc1   :  { %vm439_vm6 = vmor %vm215_vm2, %vm375_vm3 }
  0xc2   :  { %2278 = vset.pattern.permute.xlu1 %v2371_v0 }
  0xc3   :  { %179 = vperm.xlu1 %2278, %v89_v59   ;;  %2279 = vset.pattern.permute.xlu2 %v2372_v4 }
  0xc4   :  { %339 = vperm.xlu2 %2279, %v89_v59  }
  0xc5   :  { %1992 = vmatmul.msk.f32.gmra.mxu0 %vm431_vm14, %v2373_v34  ;;  %2056 = vmatmul.msk.f32.gmra.mxu2 %vm431_vm14, %v2373_v34  ;;  %v289_v3 = vpop.permute.xlu1 %288  ;;  %vm214_vm14 = vcmp.eq.s32.totalorder %v2531_v31, %v129_v2 }
  0xc6   :  { %2024 = vmatmul.msk.f32.gmra.mxu1 %vm432_vm15, %v2373_v34  ;;  %2088 = vmatmul.msk.f32.gmra.mxu3 %vm432_vm15, %v2373_v34  ;;  %vm373_vm13 = vcmp.eq.s32.totalorder %v2519_v26, %v289_v3  ;;  %vm374_vm15 = vcmp.eq.s32.totalorder %v2531_v31, %v289_v3 }
  0xc7   :  { %vm437_vm0 = vmor %vm213_vm12, %vm373_vm13 }
  0xc8   :  { %vm438_vm1 = vmor %vm214_vm14, %vm374_vm15  ;;  %vm379_vm14 = vcmp.eq.s32.totalorder %v2519_v26, %v298_v11 }
  0xc9   :  { %v144_v16 = vpop.permute.xlu2 %143  ;;  %v156_v37 = vpop.permute.xlu0 %155 }
  0xcb   :  { %182 = vperm.xlu1 %2278, %v90_v1  }
  0xcc   :  { %342 = vperm.xlu2 %2279, %v90_v1  }
  0xcd   :  { %1993 = vmatmul.msk.f32.gmra.mxu0 %vm433_vm4, %v2373_v34  ;;  %2057 = vmatmul.msk.f32.gmra.mxu2 %vm433_vm4, %v2373_v34  ;;  %vm216_vm4 = vcmp.eq.s32.totalorder %v2531_v31, %v132_v6 }
  0xce   :  { %2025 = vmatmul.msk.f32.gmra.mxu1 %vm434_vm5, %v2373_v34  ;;  %2089 = vmatmul.msk.f32.gmra.mxu3 %vm434_vm5, %v2373_v34  ;;  %v135_v9 = vpop.permute.xlu1 %134  ;;  %vm376_vm5 = vcmp.eq.s32.totalorder %v2531_v31, %v292_v7 }
  0xcf   :  { %vm440_vm7 = vmor %vm216_vm4, %vm376_vm5  ;;  %vm217_vm9 = vcmp.eq.s32.totalorder %v2519_v26, %v135_v9  ;;  %vm221_vm5 = vcmp.eq.s32.totalorder %v2519_v26, %v141_v15 }
  0xd0   :  { %vm441_vm12 = vmor %vm217_vm9, %vm377_vm8 }
  0xd1   :  { %v147_v19 = vpop.permute.xlu2 %146 }
  0xd2   :  { %v322_v46 = vpop.permute.xlu0 %321 }
  0xd3   :  { %2281 = vset.pattern.permute.xlu1 %v2372_v4 }
  0xd4   :  { %345 = vperm.xlu1 %2281, %v91_v5   ;;  %2282 = vset.pattern.permute.xlu2 %v2371_v0  ;;  %v93_v0 = vld [vmem:[%s3264_s0 + $0xf8] sm:$0xff] }
  0xd5   :  { %1994 = vmatmul.msk.f32.gmra.mxu0 %vm435_vm10, %v2373_v34  ;;  %2058 = vmatmul.msk.f32.gmra.mxu2 %vm435_vm10, %v2373_v34  ;;  %vm378_vm10 = vcmp.eq.s32.totalorder %v2531_v31, %v295_v10  ;;  %v2217_v10 = vld [vmem:[%s3266_s2 + $0x40] sm:$0xff] }
  0xd6   :  { %2026 = vmatmul.msk.f32.gmra.mxu1 %vm436_vm11, %v2373_v34  ;;  %2090 = vmatmul.msk.f32.gmra.mxu3 %vm436_vm11, %v2373_v34  ;;  %vm218_vm11 = vcmp.eq.s32.totalorder %v2531_v31, %v135_v9  ;;  %v138_v4 = vpop.permute.xlu1 %137  ;;  %v2209_v9 = vld [vmem:[%s3266_s2] sm:$0xff] }
  0xd7   :  { %188 = vperm.xlu2 %2282, %v92_v8   ;;  %351 = vperm.xlu0 %2283, %v93_v0   ;;  %vm442_vm13 = vmor %vm218_vm11, %vm378_vm10  ;;  %vm219_vm15 = vcmp.eq.s32.totalorder %v2519_v26, %v138_v4  ;;  %vm223_vm10 = vcmp.eq.s32.totalorder %v2519_v26, %v144_v16 }
  0xd8   :  { %vm443_vm2 = vmor %vm219_vm15, %vm379_vm14  ;;  %1296 = vmatpush.bf16.msrb.mxu0 %v2209_v9  ;;  %1385 = vmatpush.bf16.msrb.mxu1 %v2217_v10 }
  0xda   :  { %v310_v24 = vpop.permute.xlu2 %309 }
  0xdb   :  { %v171_v63 = vpop.permute.xlu0 %170 }
  0xdc   :  { %348 = vperm.xlu1 %2281, %v92_v8  }
  0xdd   :  { %1995 = vmatmul.msk.f32.gmra.mxu0 %vm437_vm0, %v2373_v34  ;;  %2059 = vmatmul.msk.f32.gmra.mxu2 %vm437_vm0, %v2373_v34  ;;  %vm380_vm0 = vcmp.eq.s32.totalorder %v2531_v31, %v298_v11 }
  0xde   :  { %2027 = vmatmul.msk.f32.gmra.mxu1 %vm438_vm1, %v2373_v34  ;;  %2091 = vmatmul.msk.f32.gmra.mxu3 %vm438_vm1, %v2373_v34  ;;  %vm220_vm1 = vcmp.eq.s32.totalorder %v2531_v31, %v138_v4 }
  0xdf   :  { %191 = vperm.xlu2 %2282, %v93_v0   ;;  %v301_v14 = vpop.permute.xlu1 %300  ;;  %vm444_vm3 = vmor %vm220_vm1, %vm380_vm0  ;;  %vm225_vm0 = vcmp.eq.s32.totalorder %v2519_v26, %v147_v19  ;;  %vm385_vm1 = vcmp.eq.s32.totalorder %v2519_v26, %v307_v20 }
  0xe0   :  { %vm381_vm4 = vcmp.eq.s32.totalorder %v2519_v26, %v301_v14 }
  0xe1   :  { %vm445_vm8 = vmor %vm221_vm5, %vm381_vm4 }
  0xe2   :  { %vm449_vm4 = vmor %vm225_vm0, %vm385_vm1  ;;  %v313_v32 = vpop.permute.xlu2 %312 }
  0xe5   :  { %1996 = vmatmul.msk.f32.gmra.mxu0 %vm439_vm6, %v2373_v34  ;;  %2060 = vmatmul.msk.f32.gmra.mxu2 %vm439_vm6, %v2373_v34  ;;  %vm382_vm6 = vcmp.eq.s32.totalorder %v2531_v31, %v301_v14 }
  0xe6   :  { %2028 = vmatmul.msk.f32.gmra.mxu1 %vm440_vm7, %v2373_v34  ;;  %2092 = vmatmul.msk.f32.gmra.mxu3 %vm440_vm7, %v2373_v34  ;;  %vm222_vm7 = vcmp.eq.s32.totalorder %v2531_v31, %v141_v15  ;;  %v337_v15 = vpop.permute.xlu0 %336 }
  0xe7   :  { %vm446_vm9 = vmor %vm222_vm7, %vm382_vm6  ;;  %v304_v18 = vpop.permute.xlu1 %303  ;;  %vm387_vm6 = vcmp.eq.s32.totalorder %v2519_v26, %v310_v24 }
  0xe8   :  { %vm383_vm11 = vcmp.eq.s32.totalorder %v2519_v26, %v304_v18 }
  0xe9   :  { %vm447_vm14 = vmor %vm223_vm10, %vm383_vm11 }
  0xeb   :  { %v159_v39 = vpop.permute.xlu2 %158 }
  0xed   :  { %1997 = vmatmul.msk.f32.gmra.mxu0 %vm441_vm12, %v2373_v34  ;;  %2061 = vmatmul.msk.f32.gmra.mxu2 %vm441_vm12, %v2373_v34  ;;  %vm224_vm12 = vcmp.eq.s32.totalorder %v2531_v31, %v144_v16 }
  0xee   :  { %2029 = vmatmul.msk.f32.gmra.mxu1 %vm442_vm13, %v2373_v34  ;;  %2093 = vmatmul.msk.f32.gmra.mxu3 %vm442_vm13, %v2373_v34  ;;  %vm384_vm13 = vcmp.eq.s32.totalorder %v2531_v31, %v304_v18 }
  0xef   :  { %vm448_vm15 = vmor %vm224_vm12, %vm384_vm13  ;;  %vm389_vm12 = vcmp.eq.s32.totalorder %v2519_v26, %v313_v32 }
  0xf0   :  { %v150_v21 = vpop.permute.xlu1 %149 }
  0xf1   :  { %vm227_vm7 = vcmp.eq.s32.totalorder %v2519_v26, %v150_v21 }
  0xf2   :  { %vm451_vm10 = vmor %vm227_vm7, %vm387_vm6 }
  0xf3   :  { %v162_v43 = vpop.permute.xlu2 %161 }
  0xf5   :  { %1998 = vmatmul.msk.f32.gmra.mxu0 %vm443_vm2, %v2373_v34  ;;  %2062 = vmatmul.msk.f32.gmra.mxu2 %vm443_vm2, %v2373_v34  ;;  %vm226_vm2 = vcmp.eq.s32.totalorder %v2531_v31, %v147_v19 }
  0xf6   :  { %2030 = vmatmul.msk.f32.gmra.mxu1 %vm444_vm3, %v2373_v34  ;;  %2094 = vmatmul.msk.f32.gmra.mxu3 %vm444_vm3, %v2373_v34  ;;  %vm386_vm3 = vcmp.eq.s32.totalorder %v2531_v31, %v307_v20 }
  0xf7   :  { %vm450_vm5 = vmor %vm226_vm2, %vm386_vm3  ;;  %vm231_vm3 = vcmp.eq.s32.totalorder %v2519_v26, %v156_v37 }
  0xf8   :  { %v153_v28 = vpop.permute.xlu1 %152 }
  0xf9   :  { %vm229_vm13 = vcmp.eq.s32.totalorder %v2519_v26, %v153_v28 }
  0xfa   :  { %vm453_vm0 = vmor %vm229_vm13, %vm389_vm12 }
  0xfc   :  { %v325_v52 = vpop.permute.xlu2 %324 }
  0xfd   :  { %1999 = vmatmul.msk.f32.gmra.mxu0 %vm445_vm8, %v2373_v34  ;;  %2063 = vmatmul.msk.f32.gmra.mxu2 %vm445_vm8, %v2373_v34  ;;  %vm388_vm8 = vcmp.eq.s32.totalorder %v2531_v31, %v310_v24 }
  0xfe   :  { %2031 = vmatmul.msk.f32.gmra.mxu1 %vm446_vm9, %v2373_v34  ;;  %2095 = vmatmul.msk.f32.gmra.mxu3 %vm446_vm9, %v2373_v34  ;;  %vm228_vm9 = vcmp.eq.s32.totalorder %v2531_v31, %v150_v21 }
  0xff   :  { %vm452_vm11 = vmor %vm228_vm9, %vm388_vm8  ;;  %vm233_vm8 = vcmp.eq.s32.totalorder %v2519_v26, %v159_v39 }
 0x102   :  { %v316_v36 = vpop.permute.xlu1 %315 }
 0x103   :  { %vm391_vm2 = vcmp.eq.s32.totalorder %v2519_v26, %v316_v36 }
 0x104   :  { %vm455_vm6 = vmor %vm231_vm3, %vm391_vm2  ;;  %v328_v58 = vpop.permute.xlu2 %327 }
 0x105   :  { %2000 = vmatmul.msk.f32.gmra.mxu0 %vm447_vm14, %v2373_v34  ;;  %2064 = vmatmul.msk.f32.gmra.mxu2 %vm447_vm14, %v2373_v34  ;;  %vm390_vm14 = vcmp.eq.s32.totalorder %v2531_v31, %v313_v32 }
 0x106   :  { %2032 = vmatmul.msk.f32.gmra.mxu1 %vm448_vm15, %v2373_v34  ;;  %2096 = vmatmul.msk.f32.gmra.mxu3 %vm448_vm15, %v2373_v34  ;;  %vm230_vm15 = vcmp.eq.s32.totalorder %v2531_v31, %v153_v28 }
 0x107   :  { %vm454_vm1 = vmor %vm230_vm15, %vm390_vm14  ;;  %vm235_vm14 = vcmp.eq.s32.totalorder %v2519_v26, %v162_v43  ;;  %vm395_vm15 = vcmp.eq.s32.totalorder %v2519_v26, %v322_v46 }
 0x108   :  { %vm459_vm2 = vmor %vm235_vm14, %vm395_vm15 }
 0x10a   :  { %v2738_v22 = vpop.f32.mrf.mxu0  ;;  %v319_v42 = vpop.permute.xlu1 %318 }
 0x10b   :  { %v2740_v23 = vpop.f32.mrf.mxu1  ;;  %vm393_vm9 = vcmp.eq.s32.totalorder %v2519_v26, %v319_v42 }
 0x10c   :  { %vm457_vm12 = vmor %vm233_vm8, %vm393_vm9 }
 0x10d   :  { %2001 = vmatmul.msk.f32.gmra.mxu0 %vm449_vm4, %v2373_v34  ;;  %2065 = vmatmul.msk.f32.gmra.mxu2 %vm449_vm4, %v2373_v34  ;;  %vm392_vm4 = vcmp.eq.s32.totalorder %v2531_v31, %v316_v36  ;;  %v174_v2 = vpop.permute.xlu2 %173 }
 0x10e   :  { %2033 = vmatmul.msk.f32.gmra.mxu1 %vm450_vm5, %v2373_v34  ;;  %2097 = vmatmul.msk.f32.gmra.mxu3 %vm450_vm5, %v2373_v34  ;;  %vm232_vm5 = vcmp.eq.s32.totalorder %v2531_v31, %v156_v37 }
 0x10f   :  { %vm456_vm7 = vmor %vm232_vm5, %vm392_vm4  ;;  %vm397_vm4 = vcmp.eq.s32.totalorder %v2519_v26, %v325_v52 }
 0x110   :  { %v2826_v57 = vpop.f32.mrf.mxu2 }
 0x111   :  { %v2832_v59 = vpop.f32.mrf.mxu3 }
 0x112   :  { %v2756_v29 = vpop.f32.mrf.mxu0 }
 0x113   :  { %v2758_v30 = vpop.f32.mrf.mxu1  ;;  %v165_v49 = vpop.permute.xlu1 %164 }
 0x114   :  { %vm237_vm5 = vcmp.eq.s32.totalorder %v2519_v26, %v165_v49 }
 0x115   :  { %2002 = vmatmul.msk.f32.gmra.mxu0 %vm451_vm10, %v2373_v34  ;;  %2066 = vmatmul.msk.f32.gmra.mxu2 %vm451_vm10, %v2373_v34  ;;  %vm234_vm10 = vcmp.eq.s32.totalorder %v2531_v31, %v159_v39  ;;  %vm461_vm8 = vmor %vm237_vm5, %vm397_vm4  ;;  %v177_v4 = vpop.permute.xlu2 %176 }
 0x116   :  { %2034 = vmatmul.msk.f32.gmra.mxu1 %vm452_vm11, %v2373_v34  ;;  %2098 = vmatmul.msk.f32.gmra.mxu3 %vm452_vm11, %v2373_v34  ;;  %vm394_vm11 = vcmp.eq.s32.totalorder %v2531_v31, %v319_v42 }
 0x117   :  { %vm458_vm13 = vmor %vm234_vm10, %vm394_vm11  ;;  %vm399_vm10 = vcmp.eq.s32.totalorder %v2519_v26, %v328_v58 }
 0x118   :  { %v2846_v1 = vpop.f32.mrf.mxu2 }
 0x119   :  { %v2852_v3 = vpop.f32.mrf.mxu3 }
 0x11a   :  { %v2768_v33 = vpop.f32.mrf.mxu0 }
 0x11b   :  { %v2770_v35 = vpop.f32.mrf.mxu1  ;;  %v168_v53 = vpop.permute.xlu1 %167 }
 0x11c   :  { %vm239_vm11 = vcmp.eq.s32.totalorder %v2519_v26, %v168_v53 }
 0x11d   :  { %2003 = vmatmul.msk.f32.gmra.mxu0 %vm453_vm0, %v2373_v34  ;;  %2067 = vmatmul.msk.f32.gmra.mxu2 %vm453_vm0, %v2373_v34  ;;  %vm236_vm0 = vcmp.eq.s32.totalorder %v2531_v31, %v162_v43  ;;  %vm463_vm14 = vmor %vm239_vm11, %vm399_vm10 }
 0x11e   :  { %2035 = vmatmul.msk.f32.gmra.mxu1 %vm454_vm1, %v2373_v34  ;;  %2099 = vmatmul.msk.f32.gmra.mxu3 %vm454_vm1, %v2373_v34  ;;  %vm396_vm1 = vcmp.eq.s32.totalorder %v2531_v31, %v322_v46  ;;  %v340_v21 = vpop.permute.xlu2 %339 }
 0x11f   :  { %vm460_vm3 = vmor %vm236_vm0, %vm396_vm1  ;;  %vm241_vm1 = vcmp.eq.s32.totalorder %v2519_v26, %v171_v63 }
 0x120   :  { %v2866_v0 = vpop.f32.mrf.mxu2 }
 0x121   :  { %v2872_v12 = vpop.f32.mrf.mxu3 }
 0x122   :  { %v2780_v40 = vpop.f32.mrf.mxu0 }
 0x123   :  { %v2782_v41 = vpop.f32.mrf.mxu1 }
 0x124   :  { %v331_v62 = vpop.permute.xlu1 %330 }
 0x125   :  { %2004 = vmatmul.msk.f32.gmra.mxu0 %vm455_vm6, %v2373_v34  ;;  %2068 = vmatmul.msk.f32.gmra.mxu2 %vm455_vm6, %v2373_v34  ;;  %vm398_vm6 = vcmp.eq.s32.totalorder %v2531_v31, %v325_v52  ;;  %vm401_vm0 = vcmp.eq.s32.totalorder %v2519_v26, %v331_v62  ;;  %v186_v52 = vpop.permute.xlu0 %185 }
 0x126   :  { %2036 = vmatmul.msk.f32.gmra.mxu1 %vm456_vm7, %v2373_v34  ;;  %2100 = vmatmul.msk.f32.gmra.mxu3 %vm456_vm7, %v2373_v34  ;;  %vm238_vm7 = vcmp.eq.s32.totalorder %v2531_v31, %v165_v49  ;;  %vm465_vm4 = vmor %vm241_vm1, %vm401_vm0  ;;  %v343_v39 = vpop.permute.xlu2 %342 }
 0x127   :  { %vm462_vm9 = vmor %vm238_vm7, %vm398_vm6  ;;  %vm243_vm6 = vcmp.eq.s32.totalorder %v2519_v26, %v174_v2 }
 0x128   :  { %v2886_v20 = vpop.f32.mrf.mxu2 }
 0x129   :  { %v2890_v27 = vpop.f32.mrf.mxu3 }
 0x12a   :  { %v2792_v44 = vpop.f32.mrf.mxu0 }
 0x12b   :  { %v2794_v45 = vpop.f32.mrf.mxu1 }
 0x12c   :  { %v334_v8 = vpop.permute.xlu1 %333 }
 0x12d   :  { %2005 = vmatmul.msk.f32.gmra.mxu0 %vm457_vm12, %v2373_v34  ;;  %2069 = vmatmul.msk.f32.gmra.mxu2 %vm457_vm12, %v2373_v34  ;;  %vm400_vm12 = vcmp.eq.s32.totalorder %v2531_v31, %v328_v58  ;;  %vm403_vm7 = vcmp.eq.s32.totalorder %v2519_v26, %v334_v8 }
 0x12e   :  { %2037 = vmatmul.msk.f32.gmra.mxu1 %vm458_vm13, %v2373_v34  ;;  %2101 = vmatmul.msk.f32.gmra.mxu3 %vm458_vm13, %v2373_v34  ;;  %vm240_vm13 = vcmp.eq.s32.totalorder %v2531_v31, %v168_v53  ;;  %vm467_vm10 = vmor %vm243_vm6, %vm403_vm7 }
 0x12f   :  { %vm464_vm15 = vmor %vm240_vm13, %vm400_vm12  ;;  %vm245_vm12 = vcmp.eq.s32.totalorder %v2519_v26, %v177_v4  ;;  %vm405_vm13 = vcmp.eq.s32.totalorder %v2519_v26, %v337_v15 }
 0x130   :  { %vm469_vm0 = vmor %vm245_vm12, %vm405_vm13  ;;  %v2904_v38 = vpop.f32.mrf.mxu2 }
 0x131   :  { %v2910_v43 = vpop.f32.mrf.mxu3 }
 0x132   :  { %v2810_v50 = vpop.f32.mrf.mxu0 }
 0x133   :  { %v2812_v51 = vpop.f32.mrf.mxu1 }
 0x135   :  { %2006 = vmatmul.msk.f32.gmra.mxu0 %vm459_vm2, %v2373_v34  ;;  %2070 = vmatmul.msk.f32.gmra.mxu2 %vm459_vm2, %v2373_v34  ;;  %vm402_vm2 = vcmp.eq.s32.totalorder %v2531_v31, %v331_v62  ;;  %v180_v17 = vpop.permute.xlu1 %179 }
 0x136   :  { %2038 = vmatmul.msk.f32.gmra.mxu1 %vm460_vm3, %v2373_v34  ;;  %2102 = vmatmul.msk.f32.gmra.mxu3 %vm460_vm3, %v2373_v34  ;;  %vm242_vm3 = vcmp.eq.s32.totalorder %v2531_v31, %v171_v63  ;;  %v189_v63 = vpop.permute.xlu2 %188 }
 0x137   :  { %vm466_vm5 = vmor %vm242_vm3, %vm402_vm2  ;;  %vm407_vm2 = vcmp.eq.s32.totalorder %v2519_v26, %v340_v21  ;;  %vm247_vm3 = vcmp.eq.s32.totalorder %v2519_v26, %v180_v17 }
 0x138   :  { %vm471_vm6 = vmor %vm247_vm3, %vm407_vm2  ;;  %v2924_v53 = vpop.f32.mrf.mxu2 }
 0x139   :  { %v2928_v56 = vpop.f32.mrf.mxu3 }
 0x13a   :  { %v2822_v54 = vpop.f32.mrf.mxu0 }
 0x13b   :  { %v2824_v55 = vpop.f32.mrf.mxu1 }
 0x13d   :  { %2007 = vmatmul.msk.f32.gmra.mxu0 %vm461_vm8, %v2373_v34  ;;  %2071 = vmatmul.msk.f32.gmra.mxu2 %vm461_vm8, %v2373_v34  ;;  %vm244_vm8 = vcmp.eq.s32.totalorder %v2531_v31, %v174_v2  ;;  %v183_v28 = vpop.permute.xlu1 %182 }
 0x13e   :  { %2039 = vmatmul.msk.f32.gmra.mxu1 %vm462_vm9, %v2373_v34  ;;  %2103 = vmatmul.msk.f32.gmra.mxu3 %vm462_vm9, %v2373_v34  ;;  %vm404_vm9 = vcmp.eq.s32.totalorder %v2531_v31, %v334_v8 }
 0x13f   :  { %vm468_vm11 = vmor %vm244_vm8, %vm404_vm9  ;;  %vm409_vm8 = vcmp.eq.s32.totalorder %v2519_v26, %v343_v39  ;;  %vm249_vm9 = vcmp.eq.s32.totalorder %v2519_v26, %v183_v28 }
 0x140   :  { %vm473_vm12 = vmor %vm249_vm9, %vm409_vm8  ;;  %v2940_v8 = vpop.f32.mrf.mxu2 }
 0x141   :  { %v2944_v10 = vpop.f32.mrf.mxu3 }
 0x142   :  { %v2838_v60 = vpop.f32.mrf.mxu0 }
 0x143   :  { %v2840_v61 = vpop.f32.mrf.mxu1 }
 0x145   :  { %2008 = vmatmul.msk.f32.gmra.mxu0 %vm463_vm14, %v2373_v34  ;;  %2072 = vmatmul.msk.f32.gmra.mxu2 %vm463_vm14, %v2373_v34  ;;  %vm246_vm14 = vcmp.eq.s32.totalorder %v2531_v31, %v177_v4 }
 0x146   :  { %2040 = vmatmul.msk.f32.gmra.mxu1 %vm464_vm15, %v2373_v34  ;;  %2104 = vmatmul.msk.f32.gmra.mxu3 %vm464_vm15, %v2373_v34  ;;  %vm406_vm15 = vcmp.eq.s32.totalorder %v2531_v31, %v337_v15  ;;  %v346_v48 = vpop.permute.xlu1 %345  ;;  %v192_v15 = vpop.permute.xlu2 %191 }
 0x147   :  { %vm470_vm1 = vmor %vm246_vm14, %vm406_vm15  ;;  %vm411_vm14 = vcmp.eq.s32.totalorder %v2519_v26, %v346_v48  ;;  %vm251_vm15 = vcmp.eq.s32.totalorder %v2519_v26, %v186_v52 }
 0x148   :  { %vm475_vm2 = vmor %vm251_vm15, %vm411_vm14 }
 0x14a   :  { %v714_v5 = vpop.f32.mrf.mxu0 }
 0x14b   :  { %v827_v6 = vpop.f32.mrf.mxu1 }
 0x14c   :  { %v2854_v7 = vadd.f32 %v827_v6, %v714_v5 }
 0x14d   :  { %2009 = vmatmul.msk.f32.gmra.mxu0 %vm465_vm4, %v2373_v34  ;;  %2073 = vmatmul.msk.f32.gmra.mxu2 %vm465_vm4, %v2373_v34  ;;  %vm408_vm4 = vcmp.eq.s32.totalorder %v2531_v31, %v340_v21  ;;  %v2956_v21 = vpop.f32.mrf.mxu2 }
 0x14e   :  { %2041 = vmatmul.msk.f32.gmra.mxu1 %vm466_vm5, %v2373_v34  ;;  %2105 = vmatmul.msk.f32.gmra.mxu3 %vm466_vm5, %v2373_v34  ;;  %vm248_vm5 = vcmp.eq.s32.totalorder %v2531_v31, %v180_v17  ;;  %v349_v5 = vpop.permute.xlu1 %348  ;;  %v352_v17 = vpop.permute.xlu0 %351 }
 0x14f   :  { %vm472_vm7 = vmor %vm248_vm5, %vm408_vm4  ;;  %vm253_vm4 = vcmp.eq.s32.totalorder %v2519_v26, %v189_v63  ;;  %vm413_vm5 = vcmp.eq.s32.totalorder %v2519_v26, %v349_v5 }
 0x150   :  { %vm477_vm8 = vmor %vm253_vm4, %vm413_vm5 }
 0x152   :  { %v717_v11 = vpop.f32.mrf.mxu0 }
 0x153   :  { %v830_v13 = vpop.f32.mrf.mxu1 }
 0x154   :  { %v2874_v14 = vadd.f32 %v830_v13, %v717_v11  ;;  %v2228_v13 = vld [vmem:[#allocation5 + $0x18] sm:$0xff] }
 0x155   :  { %2010 = vmatmul.msk.f32.gmra.mxu0 %vm467_vm10, %v2373_v34  ;;  %2074 = vmatmul.msk.f32.gmra.mxu2 %vm467_vm10, %v2373_v34  ;;  %vm410_vm10 = vcmp.eq.s32.totalorder %v2531_v31, %v343_v39  ;;  %v804_v39 = vadd.f32 %v2740_v23, %v2738_v22  ;;  %v1718_v23 = vld [vmem:[%s3270_s6 + $0x70] sm:$0xff] }
 0x156   :  { %v1166_v16 = vpack.c.bf16 %v2874_v14, %v2854_v7  ;;  %2042 = vmatmul.msk.f32.gmra.mxu1 %vm468_vm11, %v2373_v34  ;;  %2106 = vmatmul.msk.f32.gmra.mxu3 %vm468_vm11, %v2373_v34  ;;  %vm250_vm11 = vcmp.eq.s32.totalorder %v2531_v31, %v183_v28  ;;  %v2960_v28 = vpop.f32.mrf.mxu3 }
 0x157   :  { %vm474_vm13 = vmor %vm250_vm11, %vm410_vm10  ;;  %1587 = vmatpush.bf16.msrb.mxu2 %v2228_v13  ;;  %vm255_vm10 = vcmp.eq.s32.totalorder %v2519_v26, %v192_v15  ;;  %vm415_vm11 = vcmp.eq.s32.totalorder %v2519_v26, %v352_v17 }
 0x158   :  { %vm479_vm14 = vmor %vm255_vm10, %vm415_vm11 }
 0x15a   :  { %v720_v18 = vpop.f32.mrf.mxu0 }
 0x15b   :  { %v833_v19 = vpop.f32.mrf.mxu1 }
 0x15c   :  { %v2888_v24 = vadd.f32 %v833_v19, %v720_v18 }
 0x15d   :  { %2011 = vmatmul.msk.f32.gmra.mxu0 %vm469_vm0, %v2373_v34  ;;  %2075 = vmatmul.msk.f32.gmra.mxu2 %vm469_vm0, %v2373_v34  ;;  %vm412_vm0 = vcmp.eq.s32.totalorder %v2531_v31, %v346_v48 }
 0x15e   :  { %2043 = vmatmul.msk.f32.gmra.mxu1 %vm470_vm1, %v2373_v34  ;;  %2107 = vmatmul.msk.f32.gmra.mxu3 %vm470_vm1, %v2373_v34  ;;  %vm252_vm1 = vcmp.eq.s32.totalorder %v2531_v31, %v186_v52 }
 0x15f   :  { %vm476_vm3 = vmor %vm252_vm1, %vm412_vm0 }
 0x162   :  { %v723_v32 = vpop.f32.mrf.mxu0 }
 0x163   :  { %v836_v36 = vpop.f32.mrf.mxu1 }
 0x164   :  { %v2900_v37 = vadd.f32 %v836_v36, %v723_v32  ;;  %v807_v32 = vadd.f32 %v2758_v30, %v2756_v29  ;;  %v1033_v36 = vadd.f32 %v2852_v3, %v2846_v1  ;;  %v2983_v29 = vpop.f32.mrf.mxu3 }
 0x165   :  { %2012 = vmatmul.msk.f32.gmra.mxu0 %vm471_vm6, %v2373_v34  ;;  %2076 = vmatmul.msk.f32.gmra.mxu2 %vm471_vm6, %v2373_v34  ;;  %vm254_vm6 = vcmp.eq.s32.totalorder %v2531_v31, %v189_v63 }
 0x166   :  { %v1168_v42 = vpack.c.bf16 %v2900_v37, %v2888_v24  ;;  %2044 = vmatmul.msk.f32.gmra.mxu1 %vm472_vm7, %v2373_v34  ;;  %2108 = vmatmul.msk.f32.gmra.mxu3 %vm472_vm7, %v2373_v34  ;;  %vm414_vm7 = vcmp.eq.s32.totalorder %v2531_v31, %v349_v5  ;;  %v1158_v48 = vpack.c.bf16 %v807_v32, %v804_v39 }
 0x167   :  { %vm478_vm9 = vmor %vm254_vm6, %vm414_vm7  ;;  %v810_v5 = vadd.f32 %v2770_v35, %v2768_v33  ;;  %v1045_v32 = vadd.f32 %v2928_v56, %v2924_v53  ;;  %v1042_v39 = vadd.f32 %v2910_v43, %v2904_v38  ;;  %v825_v38 = vadd.f32 %v2840_v61, %v2838_v60 }
 0x168   :  { %v1051_v56 = vadd.f32 %v2960_v28, %v2956_v21 }
 0x16a   :  { %v726_v46 = vpop.f32.mrf.mxu0 }
 0x16b   :  { %v839_v47 = vpop.f32.mrf.mxu1 }
 0x16c   :  { %v2916_v49 = vadd.f32 %v839_v47, %v726_v46  ;;  %v1030_v46 = vadd.f32 %v2832_v59, %v2826_v57  ;;  %v813_v57 = vadd.f32 %v2782_v41, %v2780_v40  ;;  %v1039_v59 = vadd.f32 %v2890_v27, %v2886_v20  ;;  %v2227_v40 = vld [vmem:[#allocation5 + $0x10] sm:$0xff] }
 0x16d   :  { %2013 = vmatmul.msk.f32.gmra.mxu0 %vm473_vm12, %v2373_v34  ;;  %2077 = vmatmul.msk.f32.gmra.mxu2 %vm473_vm12, %v2373_v34  ;;  %vm256_vm12 = vcmp.eq.s32.totalorder %v2531_v31, %v192_v15 }
 0x16e   :  { %2045 = vmatmul.msk.f32.gmra.mxu1 %vm474_vm13, %v2373_v34  ;;  %2109 = vmatmul.msk.f32.gmra.mxu3 %vm474_vm13, %v2373_v34  ;;  %vm416_vm13 = vcmp.eq.s32.totalorder %v2531_v31, %v352_v17  ;;  %v1719_v31 = vld [vmem:[%s3270_s6 + $0x78] sm:$0xff]  ;;  %v1159_v52 = vpack.c.bf16 %v1033_v36, %v1030_v46  ;;  %v1160_v15 = vpack.c.bf16 %v813_v57, %v810_v5 }
 0x16f   :  { %vm480_vm15 = vmor %vm256_vm12, %vm416_vm13  ;;  %1724 = vmatpush.msrb.mxu3 %v1719_v31  ;;  %1588 = vmatpush.bf16.msrb.mxu2 %v2227_v40  ;;  %v819_v31 = vadd.f32 %v2812_v51, %v2810_v50  ;;  %v816_v36 = vadd.f32 %v2794_v45, %v2792_v44  ;;  %v1716_v45 = vld [vmem:[%s3270_s6 + $0x60] sm:$0xff]  ;;  %v822_v57 = vadd.f32 %v2824_v55, %v2822_v54  ;;  %v1715_v55 = vld [vmem:[%s3270_s6 + $0x58] sm:$0xff] }
 0x171   :  { %1725 = vmatpush.msrb.mxu3 %v1718_v23 }
 0x172   :  { %v729_v58 = vpop.f32.mrf.mxu0 }
 0x173   :  { %v842_v62 = vpop.f32.mrf.mxu1 }
 0x174   :  { %v2930_v2 = vadd.f32 %v842_v62, %v729_v58  ;;  %v2981_v62 = vpop.f32.mrf.mxu2 }
 0x175   :  { %2014 = vmatmul.msk.f32.gmra.mxu0 %vm475_vm2, %v2373_v34  ;;  %2078 = vmatmul.msk.f32.gmra.mxu2 %vm475_vm2, %v2373_v34 }
 0x176   :  { %v1170_v6 = vpack.c.bf16 %v2930_v2, %v2916_v49  ;;  %2046 = vmatmul.msk.f32.gmra.mxu1 %vm476_vm3, %v2373_v34  ;;  %2110 = vmatmul.msk.f32.gmra.mxu3 %vm476_vm3, %v2373_v34 }
 0x17a   :  { %v732_v9 = vpop.f32.mrf.mxu0 }
 0x17b   :  { %v845_v4 = vpop.f32.mrf.mxu1 }
 0x17c   :  { %v2946_v11 = vadd.f32 %v845_v4, %v732_v9  ;;  %v2996_v63 = vpop.f32.mrf.mxu2  ;;  %v1056_v9 = vpop.f32.mrf.mxu3  ;;  %v1036_v4 = vadd.f32 %v2872_v12, %v2866_v0  ;;  %v1717_v12 = vld [vmem:[%s3270_s6 + $0x68] sm:$0xff] }
 0x17d   :  { %2015 = vmatmul.msk.f32.gmra.mxu0 %vm477_vm8, %v2373_v34  ;;  %2079 = vmatmul.msk.f32.gmra.mxu2 %vm477_vm8, %v2373_v34 }
 0x17e   :  { %2047 = vmatmul.msk.f32.gmra.mxu1 %vm478_vm9, %v2373_v34  ;;  %2111 = vmatmul.msk.f32.gmra.mxu3 %vm478_vm9, %v2373_v34 }
 0x17f   :  { %1726 = vmatpush.msrb.mxu3 %v1717_v12 }
 0x181   :  { %1727 = vmatpush.msrb.mxu3 %v1716_v45 }
 0x182   :  { %v735_v18 = vpop.f32.mrf.mxu0 }
 0x183   :  { %v848_v19 = vpop.f32.mrf.mxu1  ;;  %1728 = vmatpush.msrb.mxu3 %v1715_v55 }
 0x184   :  { %v2958_v25 = vadd.f32 %v848_v19, %v735_v18  ;;  %v1161_v18 = vpack.c.bf16 %v1039_v59, %v1036_v4  ;;  %v3004_v41 = vpop.f32.mrf.mxu2  ;;  %v3006_v27 = vpop.f32.mrf.mxu3  ;;  %v1048_v59 = vadd.f32 %v2944_v10, %v2940_v8  ;;  %v1164_v4 = vpack.c.bf16 %v825_v38, %v822_v57 }
 0x185   :  { %2016 = vmatmul.msk.f32.gmra.mxu0 %vm479_vm14, %v2373_v34  ;;  %2080 = vmatmul.msk.f32.gmra.mxu2 %vm479_vm14, %v2373_v34  ;;  %v1057_v8 = vadd.f32 %v1056_v9, %v2996_v63  ;;  %v1054_v10 = vadd.f32 %v2983_v29, %v2981_v62  ;;  %v1714_v29 = vld [vmem:[%s3270_s6 + $0x50] sm:$0xff]  ;;  %v1060_v7 = vadd.f32 %v3006_v27, %v3004_v41  ;;  %v1713_v27 = vld [vmem:[%s3270_s6 + $0x48] sm:$0xff] }
 0x186   :  { %v1172_v26 = vpack.c.bf16 %v2958_v25, %v2946_v11  ;;  %2048 = vmatmul.msk.f32.gmra.mxu1 %vm480_vm15, %v2373_v34  ;;  %2112 = vmatmul.msk.f32.gmra.mxu3 %vm480_vm15, %v2373_v34  ;;  %v3108_v11 = vld [vmem:[%s3267_s3] ss:$0 sm:$0xff] }
 0x187   :  { %1729 = vmatpush.msrb.mxu3 %v1714_v29 }
 0x189   :  { %1730 = vmatpush.msrb.mxu3 %v1713_v27 }
 0x18a   :  { %v738_v47 = vpop.f32.mrf.mxu0 }
 0x18b   :  { %v851_v34 = vpop.f32.mrf.mxu1 }
 0x18c   :  { %v2979_v58 = vadd.f32 %v851_v34, %v738_v47  ;;  %v1162_v47 = vpack.c.bf16 %v819_v31, %v816_v36  ;;  %v1163_v34 = vpack.c.bf16 %v1045_v32, %v1042_v39  ;;  %v1167_v32 = vpack.c.bf16 %v1057_v8, %v1054_v10 }
 0x18d   :  { %1297 = vmatmul.bf16.vlgmr.msrb.gmra.mxu0 %v1158_v48 }
 0x18e   :  { %1386 = vmatmul.bf16.vlgmr.msrb.gmra.mxu1 %v1159_v52  ;;  %v949_v52 = vpop.f32.mrf.mxu2 }
 0x192   :  { %v741_v30 = vpop.f32.mrf.mxu0 }
 0x193   :  { %v854_v1 = vpop.f32.mrf.mxu1 }
 0x194   :  { %v2985_v3 = vadd.f32 %v854_v1, %v741_v30  ;;  %v1062_v1 = vpop.f32.mrf.mxu3 }
 0x195   :  { %v1063_v9 = vadd.f32 %v1062_v1, %v949_v52 }
 0x196   :  { %v1174_v22 = vpack.c.bf16 %v2985_v3, %v2979_v58  ;;  %v3027_v53 = vpop.f32.mrf.mxu2 }
 0x19a   :  { %v744_v13 = vpop.f32.mrf.mxu0 }
 0x19b   :  { %v857_v17 = vpop.f32.mrf.mxu1 }
 0x19c   :  { %v3002_v19 = vadd.f32 %v857_v17, %v744_v13  ;;  %v1065_v43 = vpop.f32.mrf.mxu3 }
 0x19d   :  { %1302 = vmatmul.bf16.gmra.mxu0 %v1160_v15  ;;  %v1165_v15 = vpack.c.bf16 %v1051_v56, %v1048_v59  ;;  %v1066_v37 = vadd.f32 %v1065_v43, %v3027_v53  ;;  %v1712_v43 = vld [vmem:[%s3270_s6 + $0x40] sm:$0xff] }
 0x19e   :  { %1391 = vmatmul.bf16.gmra.mxu1 %v1161_v18  ;;  %v2226_v18 = vld [vmem:[#allocation5 + $0x8] sm:$0xff]  ;;  %v955_v60 = vpop.f32.mrf.mxu2  ;;  %1731 = vmatpush.msrb.mxu3 %v1712_v43 }
 0x19f   :  { %1589 = vmatpush.bf16.msrb.mxu2 %v2226_v18 }
 0x1a2   :  { %v747_v20 = vpop.f32.mrf.mxu0 }
 0x1a3   :  { %v860_v33 = vpop.f32.mrf.mxu1 }
 0x1a4   :  { %v3008_v35 = vadd.f32 %v860_v33, %v747_v20  ;;  %v1068_v61 = vpop.f32.mrf.mxu3 }
 0x1a5   :  { %v1069_v1 = vadd.f32 %v1068_v61, %v955_v60 }
 0x1a6   :  { %v1176_v0 = vpack.c.bf16 %v3008_v35, %v3002_v19  ;;  %v958_v20 = vpop.f32.mrf.mxu2 }
 0x1aa   :  { %v750_v46 = vpop.f32.mrf.mxu0 }
 0x1ab   :  { %v863_v48 = vpop.f32.mrf.mxu1 }
 0x1ac   :  { %v3023_v30 = vadd.f32 %v863_v48, %v750_v46  ;;  %v1071_v12 = vpop.f32.mrf.mxu3 }
 0x1ad   :  { %1307 = vmatmul.bf16.gmra.mxu0 %v1162_v47  ;;  %v1072_v61 = vadd.f32 %v1071_v12, %v958_v20 }
 0x1ae   :  { %1396 = vmatmul.bf16.gmra.mxu1 %v1163_v34  ;;  %v961_v47 = vpop.f32.mrf.mxu2  ;;  %v1169_v34 = vpack.c.bf16 %v1063_v9, %v1060_v7 }
 0x1b2   :  { %v753_v50 = vpop.f32.mrf.mxu0 }
 0x1b3   :  { %v866_v51 = vpop.f32.mrf.mxu1 }
 0x1b4   :  { %v3025_v23 = vadd.f32 %v866_v51, %v753_v50  ;;  %v1074_v63 = vpop.f32.mrf.mxu3  ;;  %v2225_v51 = vld [vmem:[#allocation5] sm:$0xff] }
 0x1b5   :  { %1590 = vmatpush.bf16.msrb.mxu2 %v2225_v51  ;;  %v1075_v53 = vadd.f32 %v1074_v63, %v961_v47  ;;  %v1711_v47 = vld [vmem:[%s3270_s6 + $0x38] sm:$0xff] }
 0x1b6   :  { %v1178_v44 = vpack.c.bf16 %v3025_v23, %v3023_v30  ;;  %v964_v45 = vpop.f32.mrf.mxu2  ;;  %1732 = vmatpush.msrb.mxu3 %v1711_v47  ;;  %v1708_v30 = vld [vmem:[%s3270_s6 + $0x20] sm:$0xff] }
 0x1b7   :  { %v1173_v2 = vpack.c.bf16 %v1075_v53, %v1072_v61 }
 0x1ba   :  { %v756_v5 = vpop.f32.mrf.mxu0 }
 0x1bb   :  { %v869_v13 = vpop.f32.mrf.mxu1 }
 0x1bc   :  { %v3042_v17 = vadd.f32 %v869_v13, %v756_v5  ;;  %v1077_v38 = vpop.f32.mrf.mxu3 }
 0x1bd   :  { %1312 = vmatmul.bf16.gmra.mxu0 %v1164_v4  ;;  %v1171_v4 = vpack.c.bf16 %v1069_v1, %v1066_v37  ;;  %v1078_v29 = vadd.f32 %v1077_v38, %v964_v45  ;;  %v1710_v1 = vld [vmem:[%s3270_s6 + $0x30] sm:$0xff] }
 0x1be   :  { %1401 = vmatmul.bf16.gmra.mxu1 %v1165_v15  ;;  %v967_v59 = vpop.f32.mrf.mxu2  ;;  %1733 = vmatpush.msrb.mxu3 %v1710_v1 }
 0x1c2   :  { %v759_v40 = vpop.f32.mrf.mxu0 }
 0x1c3   :  { %v872_v21 = vpop.f32.mrf.mxu1 }
 0x1c4   :  { %v3044_v28 = vadd.f32 %v872_v21, %v759_v40  ;;  %v1080_v24 = vpop.f32.mrf.mxu3 }
 0x1c5   :  { %v1081_v63 = vadd.f32 %v1080_v24, %v967_v59 }
 0x1c6   :  { %v1180_v54 = vpack.c.bf16 %v3044_v28, %v3042_v17  ;;  %v970_v15 = vpop.f32.mrf.mxu2  ;;  %v1707_v17 = vld [vmem:[%s3270_s6 + $0x18] sm:$0xff] }
 0x1ca   :  { %v762_v33 = vpop.f32.mrf.mxu0 }
 0x1cb   :  { %v875_v31 = vpop.f32.mrf.mxu1 }
 0x1cc   :  { %v3054_v36 = vadd.f32 %v875_v31, %v762_v33  ;;  %v1083_v40 = vpop.f32.mrf.mxu3 }
 0x1cd   :  { %1317 = vmatmul.bf16.gmra.mxu0 %v1166_v16  ;;  %v1084_v3 = vadd.f32 %v1083_v40, %v970_v15 }
 0x1ce   :  { %1406 = vmatmul.bf16.gmra.mxu1 %v1167_v32 }
 0x1d2   :  { %v765_v39 = vpop.f32.mrf.mxu0 }
 0x1d3   :  { %v878_v46 = vpop.f32.mrf.mxu1 }
 0x1d4   :  { %v3059_v48 = vadd.f32 %v878_v46, %v765_v39  ;;  %v1086_v33 = vpop.f32.mrf.mxu3 }
 0x1d6   :  { %v1182_v62 = vpack.c.bf16 %v3059_v48, %v3054_v36  ;;  %v1706_v36 = vld [vmem:[%s3270_s6 + $0x10] sm:$0xff] }
 0x1da   :  { %v768_v14 = vpop.f32.mrf.mxu0 }
 0x1db   :  { %v881_v16 = vpop.f32.mrf.mxu1 }
 0x1dc   :  { %v3068_v50 = vadd.f32 %v881_v16, %v768_v14  ;;  %v1089_v12 = vpop.f32.mrf.mxu3 }
 0x1dd   :  { %1322 = vmatmul.bf16.gmra.mxu0 %v1168_v42 }
 0x1de   :  { %1411 = vmatmul.bf16.gmra.mxu1 %v1169_v34 }
 0x1e2   :  { %v771_v56 = vpop.f32.mrf.mxu0 }
 0x1e3   :  { %v884_v57 = vpop.f32.mrf.mxu1 }
 0x1e4   :  { %v3073_v52 = vadd.f32 %v884_v57, %v771_v56  ;;  %v1092_v16 = vpop.f32.mrf.mxu3 }
 0x1e6   :  { %v1184_v41 = vpack.c.bf16 %v3073_v52, %v3068_v50  ;;  %v1705_v50 = vld [vmem:[%s3270_s6 + $0x8] sm:$0xff] }
 0x1ea   :  { %v774_v42 = vpop.f32.mrf.mxu0 }
 0x1eb   :  { %v887_v5 = vpop.f32.mrf.mxu1 }
 0x1ec   :  { %v3081_v13 = vadd.f32 %v887_v5, %v774_v42  ;;  %v1095_v37 = vpop.f32.mrf.mxu3 }
 0x1ed   :  { %1327 = vmatmul.bf16.gmra.mxu0 %v1170_v6  ;;  %v973_v6 = vpop.f32.mrf.mxu2 }
 0x1ee   :  { %1416 = vmatmul.bf16.gmra.mxu1 %v1171_v4  ;;  %v1087_v59 = vadd.f32 %v1086_v33, %v973_v6 }
 0x1f0   :  { %v1177_v5 = vpack.c.bf16 %v1087_v59, %v1084_v3 }
 0x1f2   :  { %v777_v18 = vpop.f32.mrf.mxu0 }
 0x1f3   :  { %v890_v21 = vpop.f32.mrf.mxu1 }
 0x1f4   :  { %v3086_v55 = vadd.f32 %v890_v21, %v777_v18  ;;  %v1098_v15 = vpop.f32.mrf.mxu3 }
 0x1f5   :  { %v976_v46 = vpop.f32.mrf.mxu2 }
 0x1f6   :  { %v1186_v60 = vpack.c.bf16 %v3086_v55, %v3081_v13  ;;  %v1090_v35 = vadd.f32 %v1089_v12, %v976_v46  ;;  %v1704_v13 = vld [vmem:[%s3270_s6] sm:$0xff] }
 0x1fa   :  { %v780_v8 = vpop.f32.mrf.mxu0 }
 0x1fb   :  { %v893_v49 = vpop.f32.mrf.mxu1 }
 0x1fc   :  { %v3093_v10 = vadd.f32 %v893_v49, %v780_v8  ;;  %v1101_v47 = vpop.f32.mrf.mxu3 }
 0x1fd   :  { %1332 = vmatmul.bf16.gmra.mxu0 %v1172_v26  ;;  %v1175_v26 = vpack.c.bf16 %v1081_v63, %v1078_v29  ;;  %v979_v14 = vpop.f32.mrf.mxu2 }
 0x1fe   :  { %1421 = vmatmul.bf16.gmra.mxu1 %v1173_v2  ;;  %v1709_v2 = vld [vmem:[%s3270_s6 + $0x28] sm:$0xff]  ;;  %v1093_v6 = vadd.f32 %v1092_v16, %v979_v14 }
 0x1ff   :  { %1734 = vmatpush.msrb.mxu3 %v1709_v2 }
 0x201   :  { %1735 = vmatpush.msrb.mxu3 %v1708_v30 }
 0x202   :  { %v783_v31 = vpop.f32.mrf.mxu0 }
 0x203   :  { %v896_v32 = vpop.f32.mrf.mxu1  ;;  %1736 = vmatpush.msrb.mxu3 %v1707_v17 }
 0x204   :  { %v3098_v39 = vadd.f32 %v896_v32, %v783_v31  ;;  %v1179_v31 = vpack.c.bf16 %v1093_v6, %v1090_v35 }
 0x205   :  { %1737 = vmatpush.msrb.mxu3 %v1706_v36  ;;  %v3176_v36 = vld [vmem:[%s3269_s5] ss:$0 sm:$0xff] }
 0x206   :  { %v1188_v20 = vpack.c.bf16 %v3098_v39, %v3093_v10 }
 0x207   :  { %1738 = vmatpush.msrb.mxu3 %v1705_v50 }
 0x209   :  { %1739 = vmatpush.msrb.mxu3 %v1704_v13 }
 0x20a   :  { %v1298_v9 = vpop.f32.mrf.mxu0 }
 0x20b   :  { %v1387_v25 = vpop.f32.mrf.mxu1  ;;  %v1299_v7 = vadd.f32 %v3108_v11, %v1298_v9 }
 0x20d   :  { %1337 = vmatmul.bf16.gmra.mxu0 %v1174_v22  ;;  %v1388_v51 = vadd.f32 %v1387_v25, %v1299_v7  ;;  %v982_v22 = vpop.f32.mrf.mxu2 }
 0x20e   :  { %1426 = vmatmul.bf16.gmra.mxu1 %v1175_v26  ;;  %v1096_v23 = vadd.f32 %v1095_v37, %v982_v22 }
 0x20f   :  { %v1467_v57 = vmax.f32 %v1388_v51, 0.0 }
 0x212   :  { %v1300_v34 = vpop.f32.mrf.mxu0 }
 0x213   :  { %v1301_v45 = vadd.f32 %v3108_v11, %v1300_v34  ;;  %v1389_v38 = vpop.f32.mrf.mxu1  ;;  %v1104_v34 = vpop.f32.mrf.mxu3 }
 0x215   :  { %v1390_v56 = vadd.f32 %v1389_v38, %v1301_v45  ;;  %v985_v61 = vpop.f32.mrf.mxu2 }
 0x216   :  { %v1099_v14 = vadd.f32 %v1098_v15, %v985_v61 }
 0x217   :  { %v1468_v27 = vmax.f32 %v1390_v56, 0.0 }
 0x218   :  { %v1181_v38 = vpack.c.bf16 %v1099_v14, %v1096_v23 }
 0x219   :  { %v1516_v58 = vpack.c.bf16 %v1468_v27, %v1467_v57 }
 0x21a   :  { %v1303_v24 = vpop.f32.mrf.mxu0 }
 0x21b   :  { %v1392_v42 = vpop.f32.mrf.mxu1  ;;  %1591 = vmatmul.bf16.vlgmr.msrb.gmra.mxu2 %v1516_v58  ;;  %v1304_v4 = vadd.f32 %v3108_v11, %v1303_v24  ;;  %v1107_v1 = vpop.f32.mrf.mxu3 }
 0x21d   :  { %1342 = vmatmul.bf16.gmra.mxu0 %v1176_v0  ;;  %v1393_v21 = vadd.f32 %v1392_v42, %v1304_v4  ;;  %v988_v32 = vpop.f32.mrf.mxu2 }
 0x21e   :  { %1431 = vmatmul.bf16.gmra.mxu1 %v1177_v5  ;;  %v1102_v28 = vadd.f32 %v1101_v47, %v988_v32 }
 0x21f   :  { %v1469_v8 = vmax.f32 %v1393_v21, 0.0 }
 0x222   :  { %v1305_v18 = vpop.f32.mrf.mxu0 }
 0x223   :  { %v1306_v53 = vadd.f32 %v3108_v11, %v1305_v18  ;;  %v1394_v43 = vpop.f32.mrf.mxu1 }
 0x225   :  { %v1395_v40 = vadd.f32 %v1394_v43, %v1306_v53  ;;  %v991_v16 = vpop.f32.mrf.mxu2  ;;  %v1110_v53 = vpop.f32.mrf.mxu3 }
 0x226   :  { %v1105_v42 = vadd.f32 %v1104_v34, %v991_v16 }
 0x227   :  { %v1470_v49 = vmax.f32 %v1395_v40, 0.0 }
 0x228   :  { %v1183_v18 = vpack.c.bf16 %v1105_v42, %v1102_v28 }
 0x229   :  { %v1517_v19 = vpack.c.bf16 %v1470_v49, %v1469_v8 }
 0x22a   :  { %v1308_v0 = vpop.f32.mrf.mxu0 }
 0x22b   :  { %v1397_v33 = vpop.f32.mrf.mxu1  ;;  %1596 = vmatmul.bf16.gmra.mxu2 %v1517_v19  ;;  %v1309_v63 = vadd.f32 %v3108_v11, %v1308_v0 }
 0x22d   :  { %1347 = vmatmul.bf16.gmra.mxu0 %v1178_v44  ;;  %v1398_v9 = vadd.f32 %v1397_v33, %v1309_v63  ;;  %v994_v57 = vpop.f32.mrf.mxu2  ;;  %v1113_v6 = vpop.f32.mrf.mxu3 }
 0x22e   :  { %1436 = vmatmul.bf16.gmra.mxu1 %v1179_v31  ;;  %v1108_v48 = vadd.f32 %v1107_v1, %v994_v57 }
 0x22f   :  { %v1471_v46 = vmax.f32 %v1398_v9, 0.0 }
 0x232   :  { %v1310_v29 = vpop.f32.mrf.mxu0 }
 0x233   :  { %v1311_v25 = vadd.f32 %v3108_v11, %v1310_v29  ;;  %v1399_v26 = vpop.f32.mrf.mxu1 }
 0x235   :  { %v1400_v7 = vadd.f32 %v1399_v26, %v1311_v25  ;;  %v997_v21 = vpop.f32.mrf.mxu2  ;;  %v1116_v29 = vpop.f32.mrf.mxu3 }
 0x236   :  { %v1111_v0 = vadd.f32 %v1110_v53, %v997_v21 }
 0x237   :  { %v1472_v12 = vmax.f32 %v1400_v7, 0.0 }
 0x238   :  { %v1185_v32 = vpack.c.bf16 %v1111_v0, %v1108_v48 }
 0x239   :  { %v1518_v51 = vpack.c.bf16 %v1472_v12, %v1471_v46 }
 0x23a   :  { %v1313_v44 = vpop.f32.mrf.mxu0 }
 0x23b   :  { %v1402_v45 = vpop.f32.mrf.mxu1  ;;  %1601 = vmatmul.bf16.gmra.mxu2 %v1518_v51  ;;  %v1314_v56 = vadd.f32 %v3108_v11, %v1313_v44 }
 0x23d   :  { %1352 = vmatmul.bf16.gmra.mxu0 %v1180_v54  ;;  %v1403_v59 = vadd.f32 %v1402_v45, %v1314_v56  ;;  %v1000_v2 = vpop.f32.mrf.mxu2  ;;  %v1119_v30 = vpop.f32.mrf.mxu3 }
 0x23e   :  { %1441 = vmatmul.bf16.gmra.mxu1 %v1181_v38  ;;  %v1114_v52 = vadd.f32 %v1113_v6, %v1000_v2 }
 0x23f   :  { %v1473_v24 = vmax.f32 %v1403_v59, 0.0 }
 0x242   :  { %v1315_v27 = vpop.f32.mrf.mxu0 }
 0x243   :  { %v1316_v58 = vadd.f32 %v3108_v11, %v1315_v27  ;;  %v1404_v3 = vpop.f32.mrf.mxu1 }
 0x245   :  { %v1405_v22 = vadd.f32 %v1404_v3, %v1316_v58  ;;  %v1003_v63 = vpop.f32.mrf.mxu2  ;;  %v1122_v59 = vpop.f32.mrf.mxu3 }
 0x246   :  { %v1117_v16 = vadd.f32 %v1116_v29, %v1003_v63 }
 0x247   :  { %v1474_v37 = vmax.f32 %v1405_v22, 0.0 }
 0x248   :  { %v1187_v44 = vpack.c.bf16 %v1117_v16, %v1114_v52 }
 0x249   :  { %v1519_v5 = vpack.c.bf16 %v1474_v37, %v1473_v24 }
 0x24a   :  { %v1318_v54 = vpop.f32.mrf.mxu0 }
 0x24b   :  { %v1407_v4 = vpop.f32.mrf.mxu1  ;;  %1606 = vmatmul.bf16.gmra.mxu2 %v1519_v5  ;;  %v1319_v43 = vadd.f32 %v3108_v11, %v1318_v54 }
 0x24d   :  { %1357 = vmatmul.bf16.gmra.mxu0 %v1182_v62  ;;  %v1408_v15 = vadd.f32 %v1407_v4, %v1319_v43 }
 0x24e   :  { %1446 = vmatmul.bf16.gmra.mxu1 %v1183_v18 }
 0x24f   :  { %v1475_v19 = vmax.f32 %v1408_v15, 0.0 }
 0x252   :  { %v1320_v61 = vpop.f32.mrf.mxu0 }
 0x253   :  { %v1321_v40 = vadd.f32 %v3108_v11, %v1320_v61  ;;  %v1409_v8 = vpop.f32.mrf.mxu1 }
 0x255   :  { %v1410_v49 = vadd.f32 %v1409_v8, %v1321_v40 }
 0x257   :  { %v1476_v35 = vmax.f32 %v1410_v49, 0.0 }
 0x259   :  { %v1520_v33 = vpack.c.bf16 %v1476_v35, %v1475_v19 }
 0x25a   :  { %v1323_v62 = vpop.f32.mrf.mxu0 }
 0x25b   :  { %v1412_v31 = vpop.f32.mrf.mxu1  ;;  %1611 = vmatmul.bf16.gmra.mxu2 %v1520_v33  ;;  %v1324_v47 = vadd.f32 %v3108_v11, %v1323_v62 }
 0x25d   :  { %1362 = vmatmul.bf16.gmra.mxu0 %v1184_v41  ;;  %v1413_v25 = vadd.f32 %v1412_v31, %v1324_v47  ;;  %v1006_v41 = vpop.f32.mrf.mxu2 }
 0x25e   :  { %1451 = vmatmul.bf16.gmra.mxu1 %v1185_v32  ;;  %v1120_v55 = vadd.f32 %v1119_v30, %v1006_v41 }
 0x25f   :  { %v1477_v12 = vmax.f32 %v1413_v25, 0.0 }
 0x262   :  { %v1325_v9 = vpop.f32.mrf.mxu0 }
 0x263   :  { %v1326_v26 = vadd.f32 %v3108_v11, %v1325_v9  ;;  %v1414_v7 = vpop.f32.mrf.mxu1 }
 0x265   :  { %v1415_v46 = vadd.f32 %v1414_v7, %v1326_v26  ;;  %v1009_v1 = vpop.f32.mrf.mxu2 }
 0x266   :  { %v1123_v24 = vadd.f32 %v1122_v59, %v1009_v1 }
 0x267   :  { %v1478_v14 = vmax.f32 %v1415_v46, 0.0 }
 0x268   :  { %v1189_v5 = vpack.c.bf16 %v1123_v24, %v1120_v55 }
 0x269   :  { %v1521_v34 = vpack.c.bf16 %v1478_v14, %v1477_v12 }
 0x26a   :  { %v1328_v51 = vpop.f32.mrf.mxu0 }
 0x26b   :  { %v1417_v23 = vpop.f32.mrf.mxu1  ;;  %1616 = vmatmul.bf16.gmra.mxu2 %v1521_v34  ;;  %v1329_v45 = vadd.f32 %v3108_v11, %v1328_v51 }
 0x26d   :  { %1367 = vmatmul.bf16.gmra.mxu0 %v1186_v60  ;;  %v1418_v56 = vadd.f32 %v1417_v23, %v1329_v45 }
 0x26e   :  { %1456 = vmatmul.bf16.gmra.mxu1 %v1187_v44 }
 0x26f   :  { %v1479_v3 = vmax.f32 %v1418_v56, 0.0 }
 0x272   :  { %v1330_v38 = vpop.f32.mrf.mxu0 }
 0x273   :  { %v1331_v57 = vadd.f32 %v3108_v11, %v1330_v38  ;;  %v1419_v27 = vpop.f32.mrf.mxu1 }
 0x275   :  { %v1420_v58 = vadd.f32 %v1419_v27, %v1331_v57 }
 0x277   :  { %v1480_v22 = vmax.f32 %v1420_v58, 0.0 }
 0x279   :  { %v1522_v37 = vpack.c.bf16 %v1480_v22, %v1479_v3 }
 0x27a   :  { %v1333_v60 = vpop.f32.mrf.mxu0 }
 0x27b   :  { %v1422_v42 = vpop.f32.mrf.mxu1  ;;  %1621 = vmatmul.bf16.gmra.mxu2 %v1522_v37  ;;  %v1334_v17 = vadd.f32 %v3108_v11, %v1333_v60 }
 0x27d   :  { %1372 = vmatmul.bf16.gmra.mxu0 %v1188_v20  ;;  %v1423_v54 = vadd.f32 %v1422_v42, %v1334_v17 }
 0x27e   :  { %1461 = vmatmul.bf16.gmra.mxu1 %v1189_v5 }
 0x27f   :  { %v1481_v53 = vmax.f32 %v1423_v54, 0.0 }
 0x282   :  { %v1335_v28 = vpop.f32.mrf.mxu0 }
 0x283   :  { %v1336_v4 = vadd.f32 %v3108_v11, %v1335_v28  ;;  %v1424_v18 = vpop.f32.mrf.mxu1 }
 0x285   :  { %v1425_v21 = vadd.f32 %v1424_v18, %v1336_v4 }
 0x287   :  { %v1482_v43 = vmax.f32 %v1425_v21, 0.0 }
 0x289   :  { %v1523_v61 = vpack.c.bf16 %v1482_v43, %v1481_v53 }
 0x28a   :  { %v1338_v15 = vpop.f32.mrf.mxu0 }
 0x28b   :  { %v1427_v40 = vpop.f32.mrf.mxu1  ;;  %1626 = vmatmul.bf16.gmra.mxu2 %v1523_v61  ;;  %v1339_v8 = vadd.f32 %v3108_v11, %v1338_v15 }
 0x28d   :  { %v1428_v10 = vadd.f32 %v1427_v40, %v1339_v8 }
 0x28f   :  { %v1483_v6 = vmax.f32 %v1428_v10, 0.0 }
 0x292   :  { %v1340_v49 = vpop.f32.mrf.mxu0 }
 0x293   :  { %v1341_v39 = vadd.f32 %v3108_v11, %v1340_v49  ;;  %v1429_v20 = vpop.f32.mrf.mxu1 }
 0x295   :  { %v1430_v2 = vadd.f32 %v1429_v20, %v1341_v39 }
 0x297   :  { %v1484_v19 = vmax.f32 %v1430_v2, 0.0 }
 0x299   :  { %v1524_v35 = vpack.c.bf16 %v1484_v19, %v1483_v6 }
 0x29a   :  { %v1343_v0 = vpop.f32.mrf.mxu0 }
 0x29b   :  { %v1432_v33 = vpop.f32.mrf.mxu1  ;;  %1631 = vmatmul.bf16.gmra.mxu2 %v1524_v35  ;;  %v1344_v62 = vadd.f32 %v3108_v11, %v1343_v0 }
 0x29d   :  { %v1433_v63 = vadd.f32 %v1432_v33, %v1344_v62 }
 0x29e   :  { %v1592_v48 = vpop.f32.mrf.mxu2 }
 0x29f   :  { %v1593_v31 = vadd.f32 %v3176_v36, %v1592_v48  ;;  %v1485_v7 = vmax.f32 %v1433_v63, 0.0 }
 0x2a1   :  { %v1672_v32 = vmax.f32 %v1593_v31, 0.0 }
 0x2a2   :  { %v1345_v47 = vpop.f32.mrf.mxu0 }
 0x2a3   :  { %v1346_v29 = vadd.f32 %v3108_v11, %v1345_v47  ;;  %v1434_v9 = vpop.f32.mrf.mxu1  ;;  %1740 = vmatmul.f32.vlgmr.msrb.gmra.mxu3 %v1672_v32 }
 0x2a5   :  { %v1435_v25 = vadd.f32 %v1434_v9, %v1346_v29 }
 0x2a6   :  { %v1594_v26 = vpop.f32.mrf.mxu2 }
 0x2a7   :  { %v1486_v46 = vmax.f32 %v1435_v25, 0.0  ;;  %v1595_v12 = vadd.f32 %v3176_v36, %v1594_v26 }
 0x2a9   :  { %v1525_v14 = vpack.c.bf16 %v1486_v46, %v1485_v7  ;;  %v1673_v16 = vmax.f32 %v1595_v12, 0.0 }
 0x2aa   :  { %v1348_v34 = vpop.f32.mrf.mxu0 }
 0x2ab   :  { %v1437_v50 = vpop.f32.mrf.mxu1  ;;  %1636 = vmatmul.bf16.gmra.mxu2 %v1525_v14  ;;  %1743 = vmatmul.f32.gmra.mxu3 %v1673_v16  ;;  %v1349_v41 = vadd.f32 %v3108_v11, %v1348_v34 }
 0x2ad   :  { %v1438_v44 = vadd.f32 %v1437_v50, %v1349_v41 }
 0x2ae   :  { %v1597_v52 = vpop.f32.mrf.mxu2 }
 0x2af   :  { %v1598_v51 = vadd.f32 %v3176_v36, %v1597_v52  ;;  %v1487_v27 = vmax.f32 %v1438_v44, 0.0 }
 0x2b1   :  { %v1674_v30 = vmax.f32 %v1598_v51, 0.0 }
 0x2b2   :  { %v1350_v23 = vpop.f32.mrf.mxu0 }
 0x2b3   :  { %v1351_v45 = vadd.f32 %v3108_v11, %v1350_v23  ;;  %v1439_v38 = vpop.f32.mrf.mxu1  ;;  %1746 = vmatmul.f32.gmra.mxu3 %v1674_v30 }
 0x2b5   :  { %v1440_v56 = vadd.f32 %v1439_v38, %v1351_v45 }
 0x2b6   :  { %v1599_v57 = vpop.f32.mrf.mxu2 }
 0x2b7   :  { %v1488_v1 = vmax.f32 %v1440_v56, 0.0  ;;  %v1600_v59 = vadd.f32 %v3176_v36, %v1599_v57 }
 0x2b9   :  { %v1526_v58 = vpack.c.bf16 %v1488_v1, %v1487_v27  ;;  %v1675_v3 = vmax.f32 %v1600_v59, 0.0 }
 0x2ba   :  { %v1353_v22 = vpop.f32.mrf.mxu0 }
 0x2bb   :  { %v1442_v24 = vpop.f32.mrf.mxu1  ;;  %1641 = vmatmul.bf16.gmra.mxu2 %v1526_v58  ;;  %1749 = vmatmul.f32.gmra.mxu3 %v1675_v3  ;;  %v1354_v13 = vadd.f32 %v3108_v11, %v1353_v22 }
 0x2bd   :  { %v1443_v5 = vadd.f32 %v1442_v24, %v1354_v13 }
 0x2be   :  { %v1602_v37 = vpop.f32.mrf.mxu2 }
 0x2bf   :  { %v1603_v55 = vadd.f32 %v3176_v36, %v1602_v37  ;;  %v1489_v18 = vmax.f32 %v1443_v5, 0.0 }
 0x2c1   :  { %v1676_v60 = vmax.f32 %v1603_v55, 0.0 }
 0x2c2   :  { %v1355_v42 = vpop.f32.mrf.mxu0 }
 0x2c3   :  { %v1356_v17 = vadd.f32 %v3108_v11, %v1355_v42  ;;  %v1444_v28 = vpop.f32.mrf.mxu1  ;;  %1752 = vmatmul.f32.gmra.mxu3 %v1676_v60 }
 0x2c5   :  { %v1445_v54 = vadd.f32 %v1444_v28, %v1356_v17 }
 0x2c6   :  { %v1604_v4 = vpop.f32.mrf.mxu2 }
 0x2c7   :  { %v1490_v21 = vmax.f32 %v1445_v54, 0.0  ;;  %v1605_v53 = vadd.f32 %v3176_v36, %v1604_v4 }
 0x2c9   :  { %v1527_v43 = vpack.c.bf16 %v1490_v21, %v1489_v18  ;;  %v1677_v61 = vmax.f32 %v1605_v53, 0.0 }
 0x2ca   :  { %v1358_v15 = vpop.f32.mrf.mxu0 }
 0x2cb   :  { %v1447_v40 = vpop.f32.mrf.mxu1  ;;  %1646 = vmatmul.bf16.gmra.mxu2 %v1527_v43  ;;  %1755 = vmatmul.f32.gmra.mxu3 %v1677_v61  ;;  %v1359_v49 = vadd.f32 %v3108_v11, %v1358_v15 }
 0x2cd   :  { %v1448_v2 = vadd.f32 %v1447_v40, %v1359_v49 }
 0x2ce   :  { %v1607_v8 = vpop.f32.mrf.mxu2 }
 0x2cf   :  { %v1608_v10 = vadd.f32 %v3176_v36, %v1607_v8  ;;  %v1491_v33 = vmax.f32 %v1448_v2, 0.0 }
 0x2d1   :  { %v1678_v39 = vmax.f32 %v1608_v10, 0.0 }
 0x2d2   :  { %v1360_v20 = vpop.f32.mrf.mxu0 }
 0x2d3   :  { %v1361_v6 = vadd.f32 %v3108_v11, %v1360_v20  ;;  %v1449_v19 = vpop.f32.mrf.mxu1  ;;  %1758 = vmatmul.f32.gmra.mxu3 %v1678_v39 }
 0x2d5   :  { %v1450_v35 = vadd.f32 %v1449_v19, %v1361_v6 }
 0x2d6   :  { %v1609_v0 = vpop.f32.mrf.mxu2 }
 0x2d7   :  { %v1492_v48 = vmax.f32 %v1450_v35, 0.0  ;;  %v1610_v62 = vadd.f32 %v3176_v36, %v1609_v0 }
 0x2d9   :  { %v1528_v31 = vpack.c.bf16 %v1492_v48, %v1491_v33  ;;  %v1679_v32 = vmax.f32 %v1610_v62, 0.0  ;;  %v3212_v62 = vld [vmem:[%s3271_s7] ss:$0 sm:$0xff]  ;;  %s2374_s7 = smov [#allocation7]  }
 0x2da   :  { %v1363_v47 = vpop.f32.mrf.mxu0  ;;  %s1908_s24 = sshll.u32 %s2374_s7, 4  ;;  %s1909_s24 = int_to_ptr.vmem [resolvable:$true] %s1908_s24 }
 0x2db   :  { %v1452_v63 = vpop.f32.mrf.mxu1  ;;  %1651 = vmatmul.bf16.gmra.mxu2 %v1528_v31  ;;  %1761 = vmatmul.f32.gmra.mxu3 %v1679_v32  ;;  %v1364_v9 = vadd.f32 %v3108_v11, %v1363_v47 }
 0x2dd   :  { %v1453_v46 = vadd.f32 %v1452_v63, %v1364_v9 }
 0x2de   :  { %v1612_v29 = vpop.f32.mrf.mxu2 }
 0x2df   :  { %v1613_v25 = vadd.f32 %v3176_v36, %v1612_v29  ;;  %v1493_v50 = vmax.f32 %v1453_v46, 0.0 }
 0x2e1   :  { %v1680_v26 = vmax.f32 %v1613_v25, 0.0 }
 0x2e2   :  { %v1365_v7 = vpop.f32.mrf.mxu0 }
 0x2e3   :  { %v1366_v12 = vadd.f32 %v3108_v11, %v1365_v7  ;;  %v1454_v14 = vpop.f32.mrf.mxu1  ;;  %1764 = vmatmul.f32.gmra.mxu3 %v1680_v26 }
 0x2e5   :  { %v1455_v16 = vadd.f32 %v1454_v14, %v1366_v12 }
 0x2e6   :  { %v1614_v34 = vpop.f32.mrf.mxu2 }
 0x2e7   :  { %v1494_v52 = vmax.f32 %v1455_v16, 0.0  ;;  %v1615_v41 = vadd.f32 %v3176_v36, %v1614_v34 }
 0x2e9   :  { %v1529_v51 = vpack.c.bf16 %v1494_v52, %v1493_v50  ;;  %v1681_v30 = vmax.f32 %v1615_v41, 0.0 }
 0x2ea   :  { %v1368_v23 = vpop.f32.mrf.mxu0 }
 0x2eb   :  { %v1457_v44 = vpop.f32.mrf.mxu1  ;;  %1656 = vmatmul.bf16.gmra.mxu2 %v1529_v51  ;;  %1767 = vmatmul.f32.gmra.mxu3 %v1681_v30  ;;  %v1369_v38 = vadd.f32 %v3108_v11, %v1368_v23 }
 0x2ed   :  { %v1458_v1 = vadd.f32 %v1457_v44, %v1369_v38 }
 0x2ee   :  { %v1617_v45 = vpop.f32.mrf.mxu2 }
 0x2ef   :  { %v1618_v56 = vadd.f32 %v3176_v36, %v1617_v45  ;;  %v1495_v24 = vmax.f32 %v1458_v1, 0.0 }
 0x2f1   :  { %v1682_v57 = vmax.f32 %v1618_v56, 0.0 }
 0x2f2   :  { %v1370_v27 = vpop.f32.mrf.mxu0 }
 0x2f3   :  { %v1371_v59 = vadd.f32 %v3108_v11, %v1370_v27  ;;  %v1459_v58 = vpop.f32.mrf.mxu1  ;;  %1770 = vmatmul.f32.gmra.mxu3 %v1682_v57 }
 0x2f5   :  { %v1460_v3 = vadd.f32 %v1459_v58, %v1371_v59 }
 0x2f6   :  { %v1619_v22 = vpop.f32.mrf.mxu2 }
 0x2f7   :  { %v1496_v37 = vmax.f32 %v1460_v3, 0.0  ;;  %v1620_v13 = vadd.f32 %v3176_v36, %v1619_v22 }
 0x2f9   :  { %v1530_v55 = vpack.c.bf16 %v1496_v37, %v1495_v24  ;;  %v1683_v60 = vmax.f32 %v1620_v13, 0.0 }
 0x2fa   :  { %v1373_v42 = vpop.f32.mrf.mxu0 }
 0x2fb   :  { %v1462_v5 = vpop.f32.mrf.mxu1  ;;  %1661 = vmatmul.bf16.gmra.mxu2 %v1530_v55  ;;  %1773 = vmatmul.f32.gmra.mxu3 %v1683_v60  ;;  %v1374_v28 = vadd.f32 %v3108_v11, %v1373_v42 }
 0x2fd   :  { %v1463_v21 = vadd.f32 %v1462_v5, %v1374_v28 }
 0x2fe   :  { %v1622_v17 = vpop.f32.mrf.mxu2 }
 0x2ff   :  { %v1623_v54 = vadd.f32 %v3176_v36, %v1622_v17  ;;  %v1497_v40 = vmax.f32 %v1463_v21, 0.0 }
 0x301   :  { %v1684_v4 = vmax.f32 %v1623_v54, 0.0 }
 0x302   :  { %v1375_v18 = vpop.f32.mrf.mxu0 }
 0x303   :  { %v1376_v53 = vadd.f32 %v3108_v11, %v1375_v18  ;;  %1776 = vmatmul.f32.gmra.mxu3 %v1684_v4  ;;  %v1464_v43 = vpop.f32.mrf.mxu1 }
 0x305   :  { %v1465_v61 = vadd.f32 %v1464_v43, %v1376_v53 }
 0x306   :  { %v1624_v15 = vpop.f32.mrf.mxu2 }
 0x307   :  { %v1498_v8 = vmax.f32 %v1465_v61, 0.0  ;;  %v1625_v49 = vadd.f32 %v3176_v36, %v1624_v15 }
 0x309   :  { %v1531_v10 = vpack.c.bf16 %v1498_v8, %v1497_v40  ;;  %v1685_v39 = vmax.f32 %v1625_v49, 0.0 }
 0x30b   :  { %1666 = vmatmul.bf16.gmra.mxu2 %v1531_v10  ;;  %1779 = vmatmul.f32.gmra.mxu3 %v1685_v39 }
 0x30e   :  { %v1627_v20 = vpop.f32.mrf.mxu2 }
 0x30f   :  { %v1628_v2 = vadd.f32 %v3176_v36, %v1627_v20 }
 0x311   :  { %v1686_v6 = vmax.f32 %v1628_v2, 0.0 }
 0x313   :  { %1782 = vmatmul.f32.gmra.mxu3 %v1686_v6 }
 0x316   :  { %v1629_v19 = vpop.f32.mrf.mxu2 }
 0x317   :  { %v1630_v11 = vadd.f32 %v3176_v36, %v1629_v19 }
 0x319   :  { %v1687_v35 = vmax.f32 %v1630_v11, 0.0 }
 0x31b   :  { %1785 = vmatmul.f32.gmra.mxu3 %v1687_v35 }
 0x31e   :  { %v1632_v0 = vpop.f32.mrf.mxu2 }
 0x31f   :  { %v1633_v33 = vadd.f32 %v3176_v36, %v1632_v0 }
 0x321   :  { %v1688_v48 = vmax.f32 %v1633_v33, 0.0 }
 0x323   :  { %1788 = vmatmul.f32.gmra.mxu3 %v1688_v48 }
 0x326   :  { %v1634_v31 = vpop.f32.mrf.mxu2  ;;  %v1741_v32 = vpop.f32.mrf.mxu3 }
 0x327   :  { %v1635_v47 = vadd.f32 %v3176_v36, %v1634_v31  ;;  %v1742_v63 = vadd.f32 %v3212_v62, %v1741_v32 }
 0x329   :  { %v1689_v29 = vmax.f32 %v1635_v47, 0.0  ;;  %1837 = vxpose.xlu1.b32.start [1/16] (narrow) %v1742_v63, 8 }
 0x32b   :  { %1791 = vmatmul.f32.gmra.mxu3 %v1689_v29 }
 0x32e   :  { %v1637_v9 = vpop.f32.mrf.mxu2  ;;  %v1744_v25 = vpop.f32.mrf.mxu3 }
 0x32f   :  { %v1638_v26 = vadd.f32 %v3176_v36, %v1637_v9  ;;  %v1745_v7 = vadd.f32 %v3212_v62, %v1744_v25 }
 0x331   :  { %v1690_v46 = vmax.f32 %v1638_v26, 0.0  ;;  %1838 = vxpose.xlu1.b32.cont [2/16] (narrow) %v1745_v7, 8 }
 0x333   :  { %1794 = vmatmul.f32.gmra.mxu3 %v1690_v46 }
 0x336   :  { %v1639_v12 = vpop.f32.mrf.mxu2  ;;  %v1747_v14 = vpop.f32.mrf.mxu3 }
 0x337   :  { %v1640_v16 = vadd.f32 %v3176_v36, %v1639_v12  ;;  %v1748_v34 = vadd.f32 %v3212_v62, %v1747_v14 }
 0x339   :  { %v1691_v50 = vmax.f32 %v1640_v16, 0.0  ;;  %1839 = vxpose.xlu1.b32.cont [3/16] (narrow) %v1748_v34, 8 }
 0x33b   :  { %1797 = vmatmul.f32.gmra.mxu3 %v1691_v50 }
 0x33e   :  { %v1642_v52 = vpop.f32.mrf.mxu2  ;;  %v1750_v41 = vpop.f32.mrf.mxu3 }
 0x33f   :  { %v1643_v51 = vadd.f32 %v3176_v36, %v1642_v52  ;;  %v1751_v30 = vadd.f32 %v3212_v62, %v1750_v41 }
 0x341   :  { %v1692_v23 = vmax.f32 %v1643_v51, 0.0  ;;  %1840 = vxpose.xlu1.b32.cont [4/16] (narrow) %v1751_v30, 8 }
 0x343   :  { %1800 = vmatmul.f32.gmra.mxu3 %v1692_v23 }
 0x346   :  { %v1644_v44 = vpop.f32.mrf.mxu2  ;;  %v1753_v45 = vpop.f32.mrf.mxu3 }
 0x347   :  { %v1645_v38 = vadd.f32 %v3176_v36, %v1644_v44  ;;  %v1754_v56 = vadd.f32 %v3212_v62, %v1753_v45 }
 0x349   :  { %v1693_v57 = vmax.f32 %v1645_v38, 0.0  ;;  %1841 = vxpose.xlu1.b32.cont [5/16] (narrow) %v1754_v56, 8 }
 0x34b   :  { %1803 = vmatmul.f32.gmra.mxu3 %v1693_v57 }
 0x34e   :  { %v1647_v27 = vpop.f32.mrf.mxu2  ;;  %v1756_v1 = vpop.f32.mrf.mxu3 }
 0x34f   :  { %v1648_v59 = vadd.f32 %v3176_v36, %v1647_v27  ;;  %v1757_v58 = vadd.f32 %v3212_v62, %v1756_v1 }
 0x351   :  { %v1694_v3 = vmax.f32 %v1648_v59, 0.0  ;;  %1842 = vxpose.xlu1.b32.cont [6/16] (narrow) %v1757_v58, 8 }
 0x353   :  { %1806 = vmatmul.f32.gmra.mxu3 %v1694_v3 }
 0x356   :  { %v1649_v22 = vpop.f32.mrf.mxu2  ;;  %v1759_v24 = vpop.f32.mrf.mxu3 }
 0x357   :  { %v1650_v37 = vadd.f32 %v3176_v36, %v1649_v22  ;;  %v1760_v13 = vadd.f32 %v3212_v62, %v1759_v24 }
 0x359   :  { %v1695_v55 = vmax.f32 %v1650_v37, 0.0  ;;  %1843 = vxpose.xlu1.b32.cont [7/16] (narrow) %v1760_v13, 8 }
 0x35b   :  { %1809 = vmatmul.f32.gmra.mxu3 %v1695_v55 }
 0x35e   :  { %v1652_v60 = vpop.f32.mrf.mxu2  ;;  %v1762_v42 = vpop.f32.mrf.mxu3 }
 0x35f   :  { %v1653_v5 = vadd.f32 %v3176_v36, %v1652_v60  ;;  %v1763_v17 = vadd.f32 %v3212_v62, %v1762_v42 }
 0x361   :  { %v1696_v28 = vmax.f32 %v1653_v5, 0.0  ;;  %1844 = vxpose.xlu1.b32.cont [8/16] (narrow) %v1763_v17, 8 }
 0x363   :  { %1812 = vmatmul.f32.gmra.mxu3 %v1696_v28 }
 0x366   :  { %v1654_v54 = vpop.f32.mrf.mxu2  ;;  %v1765_v4 = vpop.f32.mrf.mxu3 }
 0x367   :  { %v1655_v18 = vadd.f32 %v3176_v36, %v1654_v54  ;;  %v1766_v21 = vadd.f32 %v3212_v62, %v1765_v4 }
 0x369   :  { %v1697_v53 = vmax.f32 %v1655_v18, 0.0  ;;  %1845 = vxpose.xlu1.b32.cont [9/16] (narrow) %v1766_v21, 8 }
 0x36b   :  { %1815 = vmatmul.f32.gmra.mxu3 %v1697_v53 }
 0x36e   :  { %v1657_v43 = vpop.f32.mrf.mxu2  ;;  %v1768_v61 = vpop.f32.mrf.mxu3 }
 0x36f   :  { %v1658_v15 = vadd.f32 %v3176_v36, %v1657_v43  ;;  %v1769_v40 = vadd.f32 %v3212_v62, %v1768_v61 }
 0x371   :  { %v1698_v8 = vmax.f32 %v1658_v15, 0.0  ;;  %1846 = vxpose.xlu1.b32.cont [10/16] (narrow) %v1769_v40, 8 }
 0x373   :  { %1818 = vmatmul.f32.gmra.mxu3 %v1698_v8 }
 0x376   :  { %v1659_v49 = vpop.f32.mrf.mxu2  ;;  %v1771_v10 = vpop.f32.mrf.mxu3 }
 0x377   :  { %v1660_v39 = vadd.f32 %v3176_v36, %v1659_v49  ;;  %v1772_v20 = vadd.f32 %v3212_v62, %v1771_v10 }
 0x379   :  { %v1699_v2 = vmax.f32 %v1660_v39, 0.0  ;;  %1847 = vxpose.xlu1.b32.cont [11/16] (narrow) %v1772_v20, 8 }
 0x37b   :  { %1821 = vmatmul.f32.gmra.mxu3 %v1699_v2 }
 0x37e   :  { %v1662_v6 = vpop.f32.mrf.mxu2  ;;  %v1774_v19 = vpop.f32.mrf.mxu3 }
 0x37f   :  { %v1663_v11 = vadd.f32 %v3176_v36, %v1662_v6  ;;  %v1775_v35 = vadd.f32 %v3212_v62, %v1774_v19 }
 0x381   :  { %v1700_v0 = vmax.f32 %v1663_v11, 0.0  ;;  %1848 = vxpose.xlu1.b32.cont [12/16] (narrow) %v1775_v35, 8 }
 0x383   :  { %1824 = vmatmul.f32.gmra.mxu3 %v1700_v0 }
 0x386   :  { %v1664_v33 = vpop.f32.mrf.mxu2  ;;  %v1777_v48 = vpop.f32.mrf.mxu3 }
 0x387   :  { %v1665_v31 = vadd.f32 %v3176_v36, %v1664_v33  ;;  %v1778_v32 = vadd.f32 %v3212_v62, %v1777_v48 }
 0x389   :  { %v1701_v47 = vmax.f32 %v1665_v31, 0.0  ;;  %1849 = vxpose.xlu1.b32.cont [13/16] (narrow) %v1778_v32, 8 }
 0x38b   :  { %1827 = vmatmul.f32.gmra.mxu3 %v1701_v47 }
 0x38e   :  { %v1667_v63 = vpop.f32.mrf.mxu2  ;;  %v1780_v29 = vpop.f32.mrf.mxu3 }
 0x38f   :  { %v1668_v9 = vadd.f32 %v3176_v36, %v1667_v63  ;;  %v1781_v25 = vadd.f32 %v3212_v62, %v1780_v29 }
 0x391   :  { %v1702_v26 = vmax.f32 %v1668_v9, 0.0  ;;  %1850 = vxpose.xlu1.b32.cont [14/16] (narrow) %v1781_v25, 8 }
 0x393   :  { %1830 = vmatmul.f32.gmra.mxu3 %v1702_v26 }
 0x396   :  { %v1669_v7 = vpop.f32.mrf.mxu2  ;;  %v1783_v46 = vpop.f32.mrf.mxu3 }
 0x397   :  { %v1670_v12 = vadd.f32 %v3176_v36, %v1669_v7  ;;  %v1784_v14 = vadd.f32 %v3212_v62, %v1783_v46 }
 0x399   :  { %v1703_v16 = vmax.f32 %v1670_v12, 0.0  ;;  %1851 = vxpose.xlu1.b32.cont [15/16] (narrow) %v1784_v14, 8 }
 0x39b   :  { %1833 = vmatmul.f32.gmra.mxu3 %v1703_v16 }
 0x39e   :  { %v1786_v34 = vpop.f32.mrf.mxu3 }
 0x39f   :  { %v1787_v50 = vadd.f32 %v3212_v62, %v1786_v34 }
 0x3a1   :  { %1852 = vxpose.xlu1.b32.end [16/16] (narrow) %v1787_v50, 8 }
 0x3a6   :  { %v1789_v52 = vpop.f32.mrf.mxu3 }
 0x3a7   :  { %v1790_v41 = vadd.f32 %v3212_v62, %v1789_v52 }
 0x3a9   :  { %1869 = vxpose.xlu2.b32.start [1/16] (narrow) %v1790_v41, 8 }
 0x3ae   :  { %v1792_v51 = vpop.f32.mrf.mxu3 }
 0x3af   :  { %v1793_v30 = vadd.f32 %v3212_v62, %v1792_v51 }
 0x3b1   :  { %1870 = vxpose.xlu2.b32.cont [2/16] (narrow) %v1793_v30, 8 }
 0x3b6   :  { %v1795_v23 = vpop.f32.mrf.mxu3 }
 0x3b7   :  { %v1796_v36 = vadd.f32 %v3212_v62, %v1795_v23 }
 0x3b9   :  { %1871 = vxpose.xlu2.b32.cont [3/16] (narrow) %v1796_v36, 8 }
 0x3be   :  { %v1798_v44 = vpop.f32.mrf.mxu3 }
 0x3bf   :  { %v1799_v45 = vadd.f32 %v3212_v62, %v1798_v44 }
 0x3c1   :  { %1872 = vxpose.xlu2.b32.cont [4/16] (narrow) %v1799_v45, 8 }
 0x3c6   :  { %v1801_v38 = vpop.f32.mrf.mxu3 }
 0x3c7   :  { %v1802_v56 = vadd.f32 %v3212_v62, %v1801_v38 }
 0x3c9   :  { %1873 = vxpose.xlu2.b32.cont [5/16] (narrow) %v1802_v56, 8 }
 0x3cd   :  { %v1853_v17 = vpop.trf.xlu1 }
 0x3ce   :  { %v1804_v57 = vpop.f32.mrf.mxu3  ;;  %1901 = vst [vmem:[#allocation7] sm:$0xff] %v1853_v17 }
 0x3cf   :  { %v1805_v27 = vadd.f32 %v3212_v62, %v1804_v57 }
 0x3d1   :  { %1874 = vxpose.xlu2.b32.cont [6/16] (narrow) %v1805_v27, 8 }
 0x3d6   :  { %v1807_v1 = vpop.f32.mrf.mxu3 }
 0x3d7   :  { %v1808_v59 = vadd.f32 %v3212_v62, %v1807_v1 }
 0x3d9   :  { %1875 = vxpose.xlu2.b32.cont [7/16] (narrow) %v1808_v59, 8 }
 0x3de   :  { %v1810_v58 = vpop.f32.mrf.mxu3 }
 0x3df   :  { %v1811_v3 = vadd.f32 %v3212_v62, %v1810_v58 }
 0x3e1   :  { %1876 = vxpose.xlu2.b32.cont [8/16] (narrow) %v1811_v3, 8 }
 0x3e6   :  { %v1813_v22 = vpop.f32.mrf.mxu3 }
 0x3e7   :  { %v1814_v24 = vadd.f32 %v3212_v62, %v1813_v22 }
 0x3e9   :  { %1877 = vxpose.xlu2.b32.cont [9/16] (narrow) %v1814_v24, 8 }
 0x3ee   :  { %v1816_v37 = vpop.f32.mrf.mxu3 }
 0x3ef   :  { %v1817_v13 = vadd.f32 %v3212_v62, %v1816_v37 }
 0x3f1   :  { %1878 = vxpose.xlu2.b32.cont [10/16] (narrow) %v1817_v13, 8 }
 0x3f6   :  { %v1819_v55 = vpop.f32.mrf.mxu3 }
 0x3f7   :  { %v1820_v60 = vadd.f32 %v3212_v62, %v1819_v55 }
 0x3f9   :  { %1879 = vxpose.xlu2.b32.cont [11/16] (narrow) %v1820_v60, 8 }
 0x3fe   :  { %v1822_v42 = vpop.f32.mrf.mxu3 }
 0x3ff   :  { %v1823_v5 = vadd.f32 %v3212_v62, %v1822_v42 }
 0x401   :  { %1880 = vxpose.xlu2.b32.cont [12/16] (narrow) %v1823_v5, 8 }
 0x406   :  { %v1825_v28 = vpop.f32.mrf.mxu3 }
 0x407   :  { %v1826_v54 = vadd.f32 %v3212_v62, %v1825_v28 }
 0x409   :  { %1881 = vxpose.xlu2.b32.cont [13/16] (narrow) %v1826_v54, 8 }
 0x40e   :  { %v1828_v4 = vpop.f32.mrf.mxu3 }
 0x40f   :  { %v1829_v18 = vadd.f32 %v3212_v62, %v1828_v4 }
 0x411   :  { %1882 = vxpose.xlu2.b32.cont [14/16] (narrow) %v1829_v18, 8 }
 0x416   :  { %v1831_v21 = vpop.f32.mrf.mxu3 }
 0x417   :  { %v1832_v53 = vadd.f32 %v3212_v62, %v1831_v21 }
 0x419   :  { %1883 = vxpose.xlu2.b32.cont [15/16] (narrow) %v1832_v53, 8 }
 0x41e   :  { %v1834_v43 = vpop.f32.mrf.mxu3 }
 0x41f   :  { %v1835_v61 = vadd.f32 %v3212_v62, %v1834_v43 }
 0x421   :  { %1884 = vxpose.xlu2.b32.end [16/16] (narrow) %v1835_v61, 8 }
 0x442   :  { %v1885_v15 = vpop.trf.xlu2 }
 0x443   :  { %1902 = vst [vmem:[#allocation7 + $0x8] sm:$0xff] %v1885_v15 }
 0x444   :  { %1913 = dma.vmem_to_hbm [thread:$0]  %s1909_s24, 256, %s1911_s26, [#allocation4]  }
 0x445   :  { %2363 = dma.done.wait [#allocation4], 256  }
 0x446   :  { %2364 = vsyncadd [#allocation4], 4294967040 }
 0x447   :  { %1918 = vsyncpa [#allocation3], 1 }
 0x448   :  { %1919 = vsyncpa [#allocation6], 1 }
 0x449   :  { %1920 = vsyncpa [#allocation4], 1 }

// kernel: tpu_custom_call.1
= control target key start
LH: loop header
LB: loop body
LE: loop exit
PB: predicated region body
PF: predicated region fallthrough
CT: control target
= control target key end

     0   :  { %13 = vsyncpa [#allocation3], 0  ;;  %s3264_s0 = inlined_call_operand.vmem [shape: s32[256,2], index: 0, kind: input, shape index: {}]   ;;  %s3265_s1 = inlined_call_operand.hbm [shape: f32[256,256], index: 1, kind: input, shape index: {}]   ;;  %s3266_s2 = inlined_call_operand.vmem [shape: bf16[256,128], index: 2, kind: input, shape index: {}]   ;;  %s3267_s3 = inlined_call_operand.vmem [shape: f32[1,128], index: 3, kind: input, shape index: {}]   ;;  %s3268_s4 = inlined_call_operand.hbm [shape: bf16[128,128], index: 4, kind: input, shape index: {}]   ;;  %s3269_s5 = inlined_call_operand.vmem [shape: f32[1,128], index: 5, kind: input, shape index: {}]   ;;  %s3270_s6 = inlined_call_operand.vmem [shape: f32[128,128], index: 6, kind: input, shape index: {}]   ;;  %s3271_s7 = inlined_call_operand.vmem [shape: f32[1,128], index: 7, kind: input, shape index: {}]   ;;  %s3272_s8 = inlined_call_operand.hbm [shape: f32[8,256], index: 8, kind: output, shape index: {}]  }
   0x1   :  { %14 = vsyncpa [#allocation6], 0 }
   0x2   :  { %15 = vsyncpa [#allocation4], 0  ;;  %s22_s29 = sshll.u32 %s3265_s1, 4  ;;  %s2365_s30 = smov [#allocation2]   ;;  %s23_s29 = int_to_ptr.hbm [resolvable:$true] %s22_s29 }
   0x3   :  { %s24_s9 = sshll.u32 %s2365_s30, 4  ;;  %s39_s12 = sshll.u32 %s3268_s4, 4  ;;  %s25_s9 = int_to_ptr.vmem [resolvable:$true] %s24_s9  ;;  %s40_s12 = int_to_ptr.hbm [resolvable:$true] %s39_s12 }
   0x4   :  { %s2366_s13 = smov 256   ;;  %s2367_s14 = smov 16  }
   0x5   :  { %30 = dma.hbm_to_vmem [thread:$0]  %s23_s29, 8192, %s25_s9, [#allocation3], %s2366_s13, %s2366_s13, %s2367_s14  }
   0x6   :  { %s2368_s15 = smov [#allocation5]   ;;  %s2369_s17 = smov 64  }
   0x7   :  { %s41_s16 = sshll.u32 %s2368_s15, 4  ;;  %s2370_s18 = smov 4   ;;  %s42_s16 = int_to_ptr.vmem [resolvable:$true] %s41_s16 }
   0x8   :  { %47 = dma.hbm_to_vmem [thread:$0]  %s40_s12, 1024, %s42_s16, [#allocation6], %s2369_s17, %s2369_s17, %s2370_s18  }
   0x9   :  { %2359 = dma.done.wait [#allocation3], 8192  }
   0xa   :  { %2360 = vsyncadd [#allocation3], 4294959104 }
   0xb   :  { %2361 = dma.done.wait [#allocation6], 1024  }
   0xc   :  { %2362 = vsyncadd [#allocation6], 4294966272  ;;  %v2371_v0 = vmov 0   ;;  %v63_v1 = vld [vmem:[%s3264_s0 + $0x8] sm:$0xff]  ;;  %v62_v2 = vld [vmem:[%s3264_s0] sm:$0xff]  ;;  %v2372_v4 = vmov 1  }
   0xd   :  { %2245 = vset.pattern.permute.xlu1 %v2371_v0  ;;  %2243 = vset.pattern.permute.xlu0 %v2371_v0  ;;  %v64_v3 = vld [vmem:[%s3264_s0 + $0x10] sm:$0xff]  ;;  %v65_v5 = vld [vmem:[%s3264_s0 + $0x18] sm:$0xff]  ;;  %v66_v6 = vld [vmem:[%s3264_s0 + $0x20] sm:$0xff]  ;;  %s1910_s26 = sshll.u32 %s3272_s8, 4  ;;  %s1911_s26 = int_to_ptr.hbm [resolvable:$true] %s1910_s26 }
   0xe   :  { %2247 = vset.pattern.permute.xlu2 %v2371_v0  ;;  %101 = vperm.xlu1 %2245, %v63_v1   ;;  %v68_v7 = vld [vmem:[%s3264_s0 + $0x30] sm:$0xff]  ;;  %v67_v8 = vld [vmem:[%s3264_s0 + $0x28] sm:$0xff]  ;;  %v640_v12 = vld [vmem:[#allocation2 + $0xf8] sm:$0xff] }
   0xf   :  { %98 = vperm.xlu0 %2243, %v62_v2   ;;  %104 = vperm.xlu2 %2247, %v64_v3   ;;  %v2461_v9 = vld [vmem:[%s3264_s0 + $0x48] sm:$0xff]  ;;  %v639_v10 = vld [vmem:[#allocation2 + $0xf0] sm:$0xff]  ;;  %v672_v13 = vld [vmem:[#allocation2 + $0x1f8] sm:$0xff] }
  0x10   :  { %v671_v11 = vld [vmem:[#allocation2 + $0x1f0] sm:$0xff]  ;;  %673 = vmatpush.msra.mxu0 %v639_v10  ;;  %899 = vmatpush.msra.mxu2 %v640_v12  ;;  %v69_v14 = vld [vmem:[%s3264_s0 + $0x38] sm:$0xff]  ;;  %v637_v16 = vld [vmem:[#allocation2 + $0xe0] sm:$0xff] }
  0x11   :  { %786 = vmatpush.msra.mxu1 %v671_v11  ;;  %1012 = vmatpush.msra.mxu3 %v672_v13  ;;  %v2471_v15 = vld [vmem:[%s3264_s0 + $0x58] sm:$0xff]  ;;  %v669_v17 = vld [vmem:[#allocation2 + $0x1e0] sm:$0xff]  ;;  %v638_v18 = vld [vmem:[#allocation2 + $0xe8] sm:$0xff] }
  0x12   :  { %674 = vmatpush.msra.mxu0 %v637_v16  ;;  %v670_v19 = vld [vmem:[#allocation2 + $0x1e8] sm:$0xff]  ;;  %v635_v20 = vld [vmem:[#allocation2 + $0xd0] sm:$0xff]  ;;  %900 = vmatpush.msra.mxu2 %v638_v18  ;;  %v636_v22 = vld [vmem:[#allocation2 + $0xd8] sm:$0xff] }
  0x13   :  { %787 = vmatpush.msra.mxu1 %v669_v17  ;;  %v667_v21 = vld [vmem:[#allocation2 + $0x1d0] sm:$0xff]  ;;  %1013 = vmatpush.msra.mxu3 %v670_v19  ;;  %v668_v23 = vld [vmem:[#allocation2 + $0x1d8] sm:$0xff]  ;;  %v633_v24 = vld [vmem:[#allocation2 + $0xc0] sm:$0xff] }
  0x14   :  { %v70_v25 = vld [vmem:[%s3264_s0 + $0x40] sm:$0xff]  ;;  %675 = vmatpush.msra.mxu0 %v635_v20  ;;  %v634_v27 = vld [vmem:[#allocation2 + $0xc8] sm:$0xff]  ;;  %901 = vmatpush.msra.mxu2 %v636_v22  ;;  %v631_v29 = vld [vmem:[#allocation2 + $0xb0] sm:$0xff] }
  0x15   :  { %788 = vmatpush.msra.mxu1 %v667_v21  ;;  %v665_v26 = vld [vmem:[#allocation2 + $0x1c0] sm:$0xff]  ;;  %1014 = vmatpush.msra.mxu3 %v668_v23  ;;  %v666_v28 = vld [vmem:[#allocation2 + $0x1c8] sm:$0xff]  ;;  %v663_v30 = vld [vmem:[#allocation2 + $0x1b0] sm:$0xff] }
  0x16   :  { %2246 = vset.pattern.permute.xlu1 %v2372_v4  ;;  %676 = vmatpush.msra.mxu0 %v633_v24  ;;  %v632_v31 = vld [vmem:[#allocation2 + $0xb8] sm:$0xff]  ;;  %v629_v33 = vld [vmem:[#allocation2 + $0xa0] sm:$0xff]  ;;  %v630_v35 = vld [vmem:[#allocation2 + $0xa8] sm:$0xff]  ;;  %v94_v24 = vlaneseq }
  0x17   :  { %2244 = vset.pattern.permute.xlu0 %v2372_v4  ;;  %261 = vperm.xlu1 %2246, %v63_v1   ;;  %v664_v32 = vld [vmem:[#allocation2 + $0x1b8] sm:$0xff]  ;;  %v661_v34 = vld [vmem:[#allocation2 + $0x1a0] sm:$0xff]  ;;  %v662_v36 = vld [vmem:[#allocation2 + $0x1a8] sm:$0xff] }
  0x18   :  { %258 = vperm.xlu0 %2244, %v62_v2   ;;  %2248 = vset.pattern.permute.xlu2 %v2372_v4  ;;  %v627_v37 = vld [vmem:[#allocation2 + $0x90] sm:$0xff]  ;;  %v628_v39 = vld [vmem:[#allocation2 + $0x98] sm:$0xff]  ;;  %v625_v41 = vld [vmem:[#allocation2 + $0x80] sm:$0xff] }
  0x19   :  { %264 = vperm.xlu2 %2248, %v64_v3   ;;  %789 = vmatpush.msra.mxu1 %v665_v26  ;;  %v659_v38 = vld [vmem:[#allocation2 + $0x190] sm:$0xff]  ;;  %v660_v40 = vld [vmem:[#allocation2 + $0x198] sm:$0xff]  ;;  %v657_v42 = vld [vmem:[#allocation2 + $0x180] sm:$0xff]  ;;  %v2519_v26 = vand.u32 127, %v94_v24 }
  0x1a   :  { %902 = vmatpush.msra.mxu2 %v634_v27  ;;  %1015 = vmatpush.msra.mxu3 %v666_v28  ;;  %v626_v43 = vld [vmem:[#allocation2 + $0x88] sm:$0xff]  ;;  %v623_v45 = vld [vmem:[#allocation2 + $0x70] sm:$0xff]  ;;  %v624_v48 = vld [vmem:[#allocation2 + $0x78] sm:$0xff] }
  0x1b   :  { %677 = vmatpush.msra.mxu0 %v631_v29  ;;  %790 = vmatpush.msra.mxu1 %v663_v30  ;;  %v658_v44 = vld [vmem:[#allocation2 + $0x188] sm:$0xff]  ;;  %v655_v46 = vld [vmem:[#allocation2 + $0x170] sm:$0xff]  ;;  %v656_v49 = vld [vmem:[#allocation2 + $0x178] sm:$0xff] }
  0x1c   :  { %903 = vmatpush.msra.mxu2 %v632_v31  ;;  %1016 = vmatpush.msra.mxu3 %v664_v32  ;;  %v72_v47 = vld [vmem:[%s3264_s0 + $0x50] sm:$0xff]  ;;  %v621_v50 = vld [vmem:[#allocation2 + $0x60] sm:$0xff]  ;;  %v622_v52 = vld [vmem:[#allocation2 + $0x68] sm:$0xff]  ;;  %v2531_v31 = vadd.s32 128, %v2519_v26 }
  0x1d   :  { %678 = vmatpush.msra.mxu0 %v629_v33  ;;  %791 = vmatpush.msra.mxu1 %v661_v34  ;;  %v653_v51 = vld [vmem:[#allocation2 + $0x160] sm:$0xff]  ;;  %v654_v53 = vld [vmem:[#allocation2 + $0x168] sm:$0xff]  ;;  %v76_v54 = vld [vmem:[%s3264_s0 + $0x70] sm:$0xff]  ;;  %v2373_v34 = vmov 1.0  }
  0x1e   :  { %904 = vmatpush.msra.mxu2 %v630_v35  ;;  %1017 = vmatpush.msra.mxu3 %v662_v36  ;;  %v74_v55 = vld [vmem:[%s3264_s0 + $0x60] sm:$0xff]  ;;  %v75_v56 = vld [vmem:[%s3264_s0 + $0x68] sm:$0xff]  ;;  %v619_v57 = vld [vmem:[#allocation2 + $0x50] sm:$0xff] }
  0x1f   :  { %2249 = vset.pattern.permute.xlu1 %v2371_v0  ;;  %679 = vmatpush.msra.mxu0 %v627_v37  ;;  %v651_v58 = vld [vmem:[#allocation2 + $0x150] sm:$0xff]  ;;  %v620_v59 = vld [vmem:[#allocation2 + $0x58] sm:$0xff]  ;;  %v617_v61 = vld [vmem:[#allocation2 + $0x40] sm:$0xff] }
  0x20   :  { %2250 = vset.pattern.permute.xlu0 %v2371_v0  ;;  %107 = vperm.xlu1 %2249, %v65_v5   ;;  %v652_v60 = vld [vmem:[#allocation2 + $0x158] sm:$0xff]  ;;  %v649_v62 = vld [vmem:[#allocation2 + $0x140] sm:$0xff]  ;;  %v618_v63 = vld [vmem:[#allocation2 + $0x48] sm:$0xff] }
  0x21   :  { %110 = vperm.xlu0 %2250, %v66_v6   ;;  %267 = vperm.xlu2 %2248, %v65_v5   ;;  %v650_v1 = vld [vmem:[#allocation2 + $0x148] sm:$0xff]  ;;  %v615_v2 = vld [vmem:[#allocation2 + $0x30] sm:$0xff]  ;;  %v616_v5 = vld [vmem:[#allocation2 + $0x38] sm:$0xff] }
  0x22   :  { %792 = vmatpush.msra.mxu1 %v659_v38  ;;  %905 = vmatpush.msra.mxu2 %v628_v39  ;;  %v647_v3 = vld [vmem:[#allocation2 + $0x130] sm:$0xff]  ;;  %v646_v10 = vld [vmem:[#allocation2 + $0x128] sm:$0xff]  ;;  %v612_v13 = vld [vmem:[#allocation2 + $0x18] sm:$0xff] }
  0x23   :  { %1018 = vmatpush.msra.mxu3 %v660_v40  ;;  %680 = vmatpush.msra.mxu0 %v625_v41  ;;  %v611_v11 = vld [vmem:[#allocation2 + $0x10] sm:$0xff]  ;;  %v641_v16 = vld [vmem:[#allocation2 + $0x100] sm:$0xff]  ;;  %v610_v17 = vld [vmem:[#allocation2 + $0x8] sm:$0xff] }
  0x24   :  { %793 = vmatpush.msra.mxu1 %v657_v42  ;;  %906 = vmatpush.msra.mxu2 %v626_v43  ;;  %v643_v12 = vld [vmem:[#allocation2 + $0x110] sm:$0xff]  ;;  %v642_v18 = vld [vmem:[#allocation2 + $0x108] sm:$0xff]  ;;  %v2216_v19 = vld [vmem:[%s3266_s2 + $0x38] sm:$0xff] }
  0x25   :  { %1019 = vmatpush.msra.mxu3 %v658_v44  ;;  %681 = vmatpush.msra.mxu0 %v623_v45  ;;  %v2224_v20 = vld [vmem:[%s3266_s2 + $0x78] sm:$0xff]  ;;  %v78_v21 = vld [vmem:[%s3264_s0 + $0x80] sm:$0xff]  ;;  %v79_v23 = vld [vmem:[%s3264_s0 + $0x88] sm:$0xff] }
  0x26   :  { %794 = vmatpush.msra.mxu1 %v655_v46  ;;  %907 = vmatpush.msra.mxu2 %v624_v48  ;;  %v77_v22 = vld [vmem:[%s3264_s0 + $0x78] sm:$0xff]  ;;  %v80_v28 = vld [vmem:[%s3264_s0 + $0x90] sm:$0xff]  ;;  %v82_v38 = vld [vmem:[%s3264_s0 + $0xa0] sm:$0xff] }
  0x27   :  { %1020 = vmatpush.msra.mxu3 %v656_v49  ;;  %682 = vmatpush.msra.mxu0 %v621_v50  ;;  %v81_v29 = vld [vmem:[%s3264_s0 + $0x98] sm:$0xff]  ;;  %v2215_v30 = vld [vmem:[%s3266_s2 + $0x30] sm:$0xff]  ;;  %v83_v39 = vld [vmem:[%s3264_s0 + $0xa8] sm:$0xff] }
  0x28   :  { %2251 = vset.pattern.permute.xlu1 %v2372_v4  ;;  %795 = vmatpush.msra.mxu1 %v653_v51  ;;  %v2223_v36 = vld [vmem:[%s3266_s2 + $0x70] sm:$0xff]  ;;  %v85_v45 = vld [vmem:[%s3264_s0 + $0xb8] sm:$0xff]  ;;  %v2214_v48 = vld [vmem:[%s3266_s2 + $0x28] sm:$0xff] }
  0x29   :  { %2253 = vset.pattern.permute.xlu0 %v2372_v4  ;;  %270 = vperm.xlu1 %2251, %v66_v6   ;;  %v648_v6 = vld [vmem:[#allocation2 + $0x138] sm:$0xff]  ;;  %v84_v42 = vld [vmem:[%s3264_s0 + $0xb0] sm:$0xff]  ;;  %v2222_v49 = vld [vmem:[%s3266_s2 + $0x68] sm:$0xff] }
  0x2a   :  { %276 = vperm.xlu0 %2253, %v68_v7   ;;  %2252 = vset.pattern.permute.xlu2 %v2371_v0  ;;  %v86_v50 = vld [vmem:[%s3264_s0 + $0xc0] sm:$0xff] }
  0x2b   :  { %113 = vperm.xlu2 %2252, %v67_v8   ;;  %908 = vmatpush.msra.mxu2 %v622_v52 }
  0x2c   :  { %1021 = vmatpush.msra.mxu3 %v654_v53  ;;  %683 = vmatpush.msra.mxu0 %v619_v57  ;;  %v87_v53 = vld [vmem:[%s3264_s0 + $0xc8] sm:$0xff] }
  0x2d   :  { %796 = vmatpush.msra.mxu1 %v651_v58  ;;  %909 = vmatpush.msra.mxu2 %v620_v59  ;;  %v89_v59 = vld [vmem:[%s3264_s0 + $0xd8] sm:$0xff] }
  0x2e   :  { %1022 = vmatpush.msra.mxu3 %v652_v60  ;;  %684 = vmatpush.msra.mxu0 %v617_v61  ;;  %v2213_v60 = vld [vmem:[%s3266_s2 + $0x20] sm:$0xff] }
  0x2f   :  { %797 = vmatpush.msra.mxu1 %v649_v62  ;;  %910 = vmatpush.msra.mxu2 %v618_v63  ;;  %v2221_v63 = vld [vmem:[%s3266_s2 + $0x60] sm:$0xff] }
  0x30   :  { %1023 = vmatpush.msra.mxu3 %v650_v1  ;;  %685 = vmatpush.msra.mxu0 %v615_v2  ;;  %v90_v1 = vld [vmem:[%s3264_s0 + $0xe0] sm:$0xff] }
  0x31   :  { %273 = vperm.xlu1 %2251, %v67_v8   ;;  %v645_v8 = vld [vmem:[#allocation2 + $0x120] sm:$0xff]  ;;  %798 = vmatpush.msra.mxu1 %v647_v3 }
  0x32   :  { %2256 = vset.pattern.permute.xlu0 %v2371_v0  ;;  %911 = vmatpush.msra.mxu2 %v616_v5  ;;  %v91_v5 = vld [vmem:[%s3264_s0 + $0xe8] sm:$0xff] }
  0x33   :  { %125 = vperm.xlu0 %2256, %v2461_v9   ;;  %116 = vperm.xlu2 %2252, %v68_v7   ;;  %v613_v7 = vld [vmem:[#allocation2 + $0x20] sm:$0xff] }
  0x34   :  { %1024 = vmatpush.msra.mxu3 %v648_v6  ;;  %686 = vmatpush.msra.mxu0 %v613_v7 }
  0x35   :  { %799 = vmatpush.msra.mxu1 %v645_v8  ;;  %v92_v8 = vld [vmem:[%s3264_s0 + $0xf0] sm:$0xff] }
  0x36   :  { %1025 = vmatpush.msra.mxu3 %v646_v10  ;;  %687 = vmatpush.msra.mxu0 %v611_v11 }
  0x37   :  { %800 = vmatpush.msra.mxu1 %v643_v12  ;;  %v2212_v12 = vld [vmem:[%s3266_s2 + $0x18] sm:$0xff] }
  0x39   :  { %2254 = vset.pattern.permute.xlu1 %v2371_v0  ;;  %801 = vmatpush.msra.mxu1 %v641_v16 }
  0x3a   :  { %119 = vperm.xlu1 %2254, %v69_v14  }
  0x3b   :  { %2259 = vset.pattern.permute.xlu0 %v2372_v4  ;;  %2255 = vset.pattern.permute.xlu2 %v2372_v4 }
  0x3c   :  { %291 = vperm.xlu0 %2259, %v2471_v15   ;;  %279 = vperm.xlu2 %2255, %v69_v14   ;;  %v644_v14 = vld [vmem:[#allocation2 + $0x118] sm:$0xff] }
  0x3d   :  { %1026 = vmatpush.msra.mxu3 %v644_v14  ;;  %1378 = vmatpush.bf16.msrb.mxu1 %v2224_v20 }
  0x3f   :  { %1027 = vmatpush.msra.mxu3 %v642_v18 }
  0x41   :  { %1379 = vmatpush.bf16.msrb.mxu1 %v2223_v36 }
  0x42   :  { %122 = vperm.xlu1 %2254, %v70_v25  }
  0x44   :  { %282 = vperm.xlu2 %2255, %v70_v25   ;;  %2262 = vset.pattern.permute.xlu0 %v2371_v0 }
  0x45   :  { %140 = vperm.xlu0 %2262, %v76_v54   ;;  %1380 = vmatpush.bf16.msrb.mxu1 %v2222_v49 }
  0x49   :  { %1381 = vmatpush.bf16.msrb.mxu1 %v2221_v63 }
  0x4a   :  { %2257 = vset.pattern.permute.xlu1 %v2372_v4 }
  0x4b   :  { %285 = vperm.xlu1 %2257, %v2461_v9   ;;  %v614_v9 = vld [vmem:[#allocation2 + $0x28] sm:$0xff] }
  0x4c   :  { %2258 = vset.pattern.permute.xlu2 %v2371_v0  ;;  %912 = vmatpush.msra.mxu2 %v614_v9 }
  0x4d   :  { %128 = vperm.xlu2 %2258, %v72_v47   ;;  %2265 = vset.pattern.permute.xlu0 %v2372_v4 }
  0x4e   :  { %913 = vmatpush.msra.mxu2 %v612_v13  ;;  %306 = vperm.xlu0 %2265, %v78_v21   ;;  %v2220_v13 = vld [vmem:[%s3266_s2 + $0x58] sm:$0xff] }
  0x4f   :  { %1382 = vmatpush.bf16.msrb.mxu1 %v2220_v13 }
  0x50   :  { %914 = vmatpush.msra.mxu2 %v610_v17  ;;  %v2232_v17 = vld [vmem:[#allocation5 + $0x38] sm:$0xff] }
  0x52   :  { %1583 = vmatpush.bf16.msrb.mxu2 %v2232_v17 }
  0x53   :  { %288 = vperm.xlu1 %2257, %v72_v47  }
  0x55   :  { %131 = vperm.xlu2 %2258, %v2471_v15   ;;  %v609_v15 = vld [vmem:[#allocation2] sm:$0xff] }
  0x56   :  { %688 = vmatpush.msra.mxu0 %v609_v15  ;;  %2268 = vset.pattern.permute.xlu0 %v2371_v0 }
  0x57   :  { %155 = vperm.xlu0 %2268, %v81_v29  }
  0x58   :  { %1289 = vmatpush.bf16.msrb.mxu0 %v2216_v19 }
  0x5b   :  { %2260 = vset.pattern.permute.xlu1 %v2371_v0 }
  0x5c   :  { %134 = vperm.xlu1 %2260, %v74_v55   ;;  %1290 = vmatpush.bf16.msrb.mxu0 %v2215_v30 }
  0x5d   :  { %2261 = vset.pattern.permute.xlu2 %v2372_v4 }
  0x5e   :  { %294 = vperm.xlu2 %2261, %v74_v55  }
  0x5f   :  { %2271 = vset.pattern.permute.xlu0 %v2372_v4 }
  0x60   :  { %321 = vperm.xlu0 %2271, %v83_v39   ;;  %1291 = vmatpush.bf16.msrb.mxu0 %v2214_v48  ;;  %v2218_v48 = vld [vmem:[%s3266_s2 + $0x48] sm:$0xff] }
  0x64   :  { %137 = vperm.xlu1 %2260, %v75_v56   ;;  %1292 = vmatpush.bf16.msrb.mxu0 %v2213_v60 }
  0x66   :  { %297 = vperm.xlu2 %2261, %v75_v56   ;;  %v88_v56 = vld [vmem:[%s3264_s0 + $0xd0] sm:$0xff] }
  0x68   :  { %2274 = vset.pattern.permute.xlu0 %v2371_v0  ;;  %1293 = vmatpush.bf16.msrb.mxu0 %v2212_v12 }
  0x69   :  { %v105_v32 = vpop.permute.xlu2 %104  ;;  %170 = vperm.xlu0 %2274, %v86_v50  }
  0x6a   :  { %vm197_vm12 = vcmp.eq.s32.totalorder %v2519_v26, %v105_v32  ;;  %vm198_vm14 = vcmp.eq.s32.totalorder %v2531_v31, %v105_v32 }
  0x6c   :  { %2263 = vset.pattern.permute.xlu1 %v2372_v4 }
  0x6d   :  { %300 = vperm.xlu1 %2263, %v76_v54  }
  0x6e   :  { %2264 = vset.pattern.permute.xlu2 %v2371_v0 }
  0x6f   :  { %143 = vperm.xlu2 %2264, %v77_v22  }
  0x71   :  { %2277 = vset.pattern.permute.xlu0 %v2372_v4 }
  0x72   :  { %336 = vperm.xlu0 %2277, %v88_v56  }
  0x73   :  { %v265_v37 = vpop.permute.xlu2 %264 }
  0x74   :  { %vm357_vm13 = vcmp.eq.s32.totalorder %v2519_v26, %v265_v37  ;;  %vm358_vm15 = vcmp.eq.s32.totalorder %v2531_v31, %v265_v37 }
  0x75   :  { %303 = vperm.xlu1 %2263, %v77_v22  }
  0x77   :  { %146 = vperm.xlu2 %2264, %v78_v21  }
  0x7a   :  { %2280 = vset.pattern.permute.xlu0 %v2371_v0 }
  0x7b   :  { %v268_v41 = vpop.permute.xlu2 %267  ;;  %185 = vperm.xlu0 %2280, %v91_v5  }
  0x7d   :  { %2266 = vset.pattern.permute.xlu1 %v2371_v0 }
  0x7e   :  { %149 = vperm.xlu1 %2266, %v79_v23  }
  0x7f   :  { %2267 = vset.pattern.permute.xlu2 %v2372_v4 }
  0x80   :  { %v102_v27 = vpop.permute.xlu1 %101  ;;  %309 = vperm.xlu2 %2267, %v79_v23  }
  0x81   :  { %v99_v25 = vpop.permute.xlu0 %98  ;;  %vm195_vm6 = vcmp.eq.s32.totalorder %v2519_v26, %v102_v27  ;;  %vm196_vm8 = vcmp.eq.s32.totalorder %v2531_v31, %v102_v27  ;;  %v2219_v27 = vld [vmem:[%s3266_s2 + $0x50] sm:$0xff] }
  0x82   :  { %vm193_vm0 = vcmp.eq.s32.totalorder %v2519_v26, %v99_v25  ;;  %vm194_vm3 = vcmp.eq.s32.totalorder %v2531_v31, %v99_v25  ;;  %v2211_v25 = vld [vmem:[%s3266_s2 + $0x10] sm:$0xff]  ;;  %1383 = vmatpush.bf16.msrb.mxu1 %v2219_v27 }
  0x83   :  { %2283 = vset.pattern.permute.xlu0 %v2372_v4  ;;  %1294 = vmatpush.bf16.msrb.mxu0 %v2211_v25  ;;  %v2229_v25 = vld [vmem:[#allocation5 + $0x20] sm:$0xff] }
  0x85   :  { %v114_v46 = vpop.permute.xlu2 %113 }
  0x86   :  { %152 = vperm.xlu1 %2266, %v80_v28   ;;  %1384 = vmatpush.bf16.msrb.mxu1 %v2218_v48 }
  0x88   :  { %312 = vperm.xlu2 %2267, %v80_v28  }
  0x89   :  { %v262_v35 = vpop.permute.xlu1 %261 }
  0x8a   :  { %v259_v33 = vpop.permute.xlu0 %258  ;;  %vm355_vm7 = vcmp.eq.s32.totalorder %v2519_v26, %v262_v35  ;;  %vm356_vm9 = vcmp.eq.s32.totalorder %v2531_v31, %v262_v35 }
  0x8b   :  { %vm353_vm1 = vcmp.eq.s32.totalorder %v2519_v26, %v259_v33  ;;  %vm354_vm2 = vcmp.eq.s32.totalorder %v2531_v31, %v259_v33  ;;  %vm419_vm10 = vmor %vm195_vm6, %vm355_vm7 }
  0x8c   :  { %vm417_vm4 = vmor %vm193_vm0, %vm353_vm1 }
  0x8d   :  { %1985 = vmatmul.msk.f32.vlgmr.msra.gmra.mxu0 %vm417_vm4, %v2373_v34  ;;  %vm418_vm5 = vmor %vm194_vm3, %vm354_vm2  ;;  %2049 = vmatmul.msk.f32.vlgmr.msra.gmra.mxu2 %vm417_vm4, %v2373_v34  ;;  %vm359_vm2 = vcmp.eq.s32.totalorder %v2519_v26, %v268_v41  ;;  %vm360_vm4 = vcmp.eq.s32.totalorder %v2531_v31, %v268_v41  ;;  %v117_v51 = vpop.permute.xlu2 %116 }
  0x8e   :  { %2017 = vmatmul.msk.f32.vlgmr.msra.gmra.mxu1 %vm418_vm5, %v2373_v34  ;;  %2081 = vmatmul.msk.f32.vlgmr.msra.gmra.mxu3 %vm418_vm5, %v2373_v34  ;;  %vm420_vm11 = vmor %vm196_vm8, %vm356_vm9 }
  0x8f   :  { %2269 = vset.pattern.permute.xlu1 %v2372_v4  ;;  %vm421_vm0 = vmor %vm197_vm12, %vm357_vm13 }
  0x90   :  { %315 = vperm.xlu1 %2269, %v81_v29   ;;  %2270 = vset.pattern.permute.xlu2 %v2371_v0  ;;  %vm422_vm1 = vmor %vm198_vm14, %vm358_vm15  ;;  %vm203_vm14 = vcmp.eq.s32.totalorder %v2519_v26, %v114_v46 }
  0x91   :  { %158 = vperm.xlu2 %2270, %v82_v38  }
  0x92   :  { %v108_v40 = vpop.permute.xlu1 %107 }
  0x93   :  { %vm199_vm3 = vcmp.eq.s32.totalorder %v2519_v26, %v108_v40  ;;  %vm200_vm5 = vcmp.eq.s32.totalorder %v2531_v31, %v108_v40  ;;  %v111_v44 = vpop.permute.xlu0 %110 }
  0x94   :  { %vm423_vm6 = vmor %vm199_vm3, %vm359_vm2  ;;  %vm201_vm9 = vcmp.eq.s32.totalorder %v2519_v26, %v111_v44 }
  0x95   :  { %1986 = vmatmul.msk.f32.gmra.mxu0 %vm419_vm10, %v2373_v34  ;;  %2050 = vmatmul.msk.f32.gmra.mxu2 %vm419_vm10, %v2373_v34  ;;  %vm424_vm7 = vmor %vm200_vm5, %vm360_vm4  ;;  %vm205_vm4 = vcmp.eq.s32.totalorder %v2519_v26, %v117_v51 }
  0x96   :  { %2018 = vmatmul.msk.f32.gmra.mxu1 %vm420_vm11, %v2373_v34  ;;  %2082 = vmatmul.msk.f32.gmra.mxu3 %vm420_vm11, %v2373_v34  ;;  %vm202_vm11 = vcmp.eq.s32.totalorder %v2531_v31, %v111_v44  ;;  %v280_v55 = vpop.permute.xlu2 %279 }
  0x98   :  { %318 = vperm.xlu1 %2269, %v82_v38   ;;  %v2231_v38 = vld [vmem:[#allocation5 + $0x30] sm:$0xff] }
  0x99   :  { %161 = vperm.xlu2 %2270, %v83_v39   ;;  %1584 = vmatpush.bf16.msrb.mxu2 %v2231_v38 }
  0x9b   :  { %v271_v43 = vpop.permute.xlu1 %270 }
  0x9c   :  { %vm361_vm8 = vcmp.eq.s32.totalorder %v2519_v26, %v271_v43  ;;  %vm362_vm10 = vcmp.eq.s32.totalorder %v2531_v31, %v271_v43  ;;  %v277_v52 = vpop.permute.xlu0 %276 }
  0x9d   :  { %1987 = vmatmul.msk.f32.gmra.mxu0 %vm421_vm0, %v2373_v34  ;;  %2051 = vmatmul.msk.f32.gmra.mxu2 %vm421_vm0, %v2373_v34  ;;  %vm425_vm12 = vmor %vm201_vm9, %vm361_vm8  ;;  %vm204_vm0 = vcmp.eq.s32.totalorder %v2531_v31, %v114_v46  ;;  %vm365_vm5 = vcmp.eq.s32.totalorder %v2519_v26, %v277_v52 }
  0x9e   :  { %2019 = vmatmul.msk.f32.gmra.mxu1 %vm422_vm1, %v2373_v34  ;;  %2083 = vmatmul.msk.f32.gmra.mxu3 %vm422_vm1, %v2373_v34  ;;  %vm426_vm13 = vmor %vm202_vm11, %vm362_vm10  ;;  %vm367_vm10 = vcmp.eq.s32.totalorder %v2519_v26, %v280_v55  ;;  %v283_v58 = vpop.permute.xlu2 %282 }
  0x9f   :  { %vm429_vm8 = vmor %vm205_vm4, %vm365_vm5 }
  0xa0   :  { %2272 = vset.pattern.permute.xlu1 %v2371_v0 }
  0xa1   :  { %164 = vperm.xlu1 %2272, %v84_v42   ;;  %2273 = vset.pattern.permute.xlu2 %v2372_v4 }
  0xa2   :  { %324 = vperm.xlu2 %2273, %v84_v42  }
  0xa3   :  { %v274_v47 = vpop.permute.xlu1 %273 }
  0xa4   :  { %vm363_vm15 = vcmp.eq.s32.totalorder %v2519_v26, %v274_v47  ;;  %vm364_vm1 = vcmp.eq.s32.totalorder %v2531_v31, %v274_v47  ;;  %v2210_v47 = vld [vmem:[%s3266_s2 + $0x8] sm:$0xff] }
  0xa5   :  { %1988 = vmatmul.msk.f32.gmra.mxu0 %vm423_vm6, %v2373_v34  ;;  %2052 = vmatmul.msk.f32.gmra.mxu2 %vm423_vm6, %v2373_v34  ;;  %vm427_vm2 = vmor %vm203_vm14, %vm363_vm15  ;;  %vm206_vm6 = vcmp.eq.s32.totalorder %v2531_v31, %v117_v51  ;;  %v126_v62 = vpop.permute.xlu0 %125 }
  0xa6   :  { %2020 = vmatmul.msk.f32.gmra.mxu1 %vm424_vm7, %v2373_v34  ;;  %2084 = vmatmul.msk.f32.gmra.mxu3 %vm424_vm7, %v2373_v34  ;;  %vm428_vm3 = vmor %vm204_vm0, %vm364_vm1  ;;  %vm366_vm7 = vcmp.eq.s32.totalorder %v2531_v31, %v277_v52  ;;  %vm369_vm0 = vcmp.eq.s32.totalorder %v2519_v26, %v283_v58 }
  0xa7   :  { %vm430_vm9 = vmor %vm206_vm6, %vm366_vm7  ;;  %vm211_vm7 = vcmp.eq.s32.totalorder %v2519_v26, %v126_v62  ;;  %v129_v2 = vpop.permute.xlu2 %128  ;;  %1295 = vmatpush.bf16.msrb.mxu0 %v2210_v47 }
  0xa9   :  { %167 = vperm.xlu1 %2272, %v85_v45  }
  0xaa   :  { %327 = vperm.xlu2 %2273, %v85_v45  }
  0xac   :  { %v120_v54 = vpop.permute.xlu1 %119 }
  0xad   :  { %1989 = vmatmul.msk.f32.gmra.mxu0 %vm425_vm12, %v2373_v34  ;;  %2053 = vmatmul.msk.f32.gmra.mxu2 %vm425_vm12, %v2373_v34  ;;  %vm207_vm11 = vcmp.eq.s32.totalorder %v2519_v26, %v120_v54  ;;  %vm368_vm12 = vcmp.eq.s32.totalorder %v2531_v31, %v280_v55 }
  0xae   :  { %2021 = vmatmul.msk.f32.gmra.mxu1 %vm426_vm13, %v2373_v34  ;;  %2085 = vmatmul.msk.f32.gmra.mxu3 %vm426_vm13, %v2373_v34  ;;  %vm208_vm13 = vcmp.eq.s32.totalorder %v2531_v31, %v120_v54  ;;  %vm431_vm14 = vmor %vm207_vm11, %vm367_vm10  ;;  %v292_v7 = vpop.permute.xlu0 %291 }
  0xaf   :  { %vm432_vm15 = vmor %vm208_vm13, %vm368_vm12  ;;  %vm213_vm12 = vcmp.eq.s32.totalorder %v2519_v26, %v129_v2  ;;  %v132_v6 = vpop.permute.xlu2 %131 }
  0xb1   :  { %2275 = vset.pattern.permute.xlu1 %v2372_v4 }
  0xb2   :  { %330 = vperm.xlu1 %2275, %v86_v50   ;;  %2276 = vset.pattern.permute.xlu2 %v2371_v0 }
  0xb3   :  { %173 = vperm.xlu2 %2276, %v87_v53  }
  0xb4   :  { %v123_v57 = vpop.permute.xlu1 %122 }
  0xb5   :  { %1990 = vmatmul.msk.f32.gmra.mxu0 %vm427_vm2, %v2373_v34  ;;  %2054 = vmatmul.msk.f32.gmra.mxu2 %vm427_vm2, %v2373_v34  ;;  %vm209_vm1 = vcmp.eq.s32.totalorder %v2519_v26, %v123_v57  ;;  %vm370_vm2 = vcmp.eq.s32.totalorder %v2531_v31, %v283_v58 }
  0xb6   :  { %2022 = vmatmul.msk.f32.gmra.mxu1 %vm428_vm3, %v2373_v34  ;;  %2086 = vmatmul.msk.f32.gmra.mxu3 %vm428_vm3, %v2373_v34  ;;  %vm210_vm3 = vcmp.eq.s32.totalorder %v2531_v31, %v123_v57  ;;  %vm433_vm4 = vmor %vm209_vm1, %vm369_vm0 }
  0xb7   :  { %vm434_vm5 = vmor %vm210_vm3, %vm370_vm2  ;;  %vm215_vm2 = vcmp.eq.s32.totalorder %v2519_v26, %v132_v6  ;;  %vm375_vm3 = vcmp.eq.s32.totalorder %v2519_v26, %v292_v7  ;;  %v141_v15 = vpop.permute.xlu0 %140 }
  0xb8   :  { %v295_v10 = vpop.permute.xlu2 %294 }
  0xba   :  { %333 = vperm.xlu1 %2275, %v87_v53  }
  0xbb   :  { %176 = vperm.xlu2 %2276, %v88_v56   ;;  %v2230_v56 = vld [vmem:[#allocation5 + $0x28] sm:$0xff] }
  0xbc   :  { %1585 = vmatpush.bf16.msrb.mxu2 %v2230_v56 }
  0xbd   :  { %1991 = vmatmul.msk.f32.gmra.mxu0 %vm429_vm8, %v2373_v34  ;;  %2055 = vmatmul.msk.f32.gmra.mxu2 %vm429_vm8, %v2373_v34  ;;  %v286_v61 = vpop.permute.xlu1 %285 }
  0xbe   :  { %2023 = vmatmul.msk.f32.gmra.mxu1 %vm430_vm9, %v2373_v34  ;;  %2087 = vmatmul.msk.f32.gmra.mxu3 %vm430_vm9, %v2373_v34  ;;  %vm371_vm6 = vcmp.eq.s32.totalorder %v2519_v26, %v286_v61  ;;  %vm372_vm8 = vcmp.eq.s32.totalorder %v2531_v31, %v286_v61  ;;  %vm212_vm9 = vcmp.eq.s32.totalorder %v2531_v31, %v126_v62 }
  0xbf   :  { %vm435_vm10 = vmor %vm211_vm7, %vm371_vm6 }
  0xc0   :  { %vm436_vm11 = vmor %vm212_vm9, %vm372_vm8  ;;  %vm377_vm8 = vcmp.eq.s32.totalorder %v2519_v26, %v295_v10  ;;  %v298_v11 = vpop.permute.xlu2 %297  ;;  %v307_v20 = vpop.permute.xlu0 %306  ;;  %1586 = vmatpush.bf16.msrb.mxu2 %v2229_v25 }
  0xc1   :  { %vm439_vm6 = vmor %vm215_vm2, %vm375_vm3 }
  0xc2   :  { %2278 = vset.pattern.permute.xlu1 %v2371_v0 }
  0xc3   :  { %179 = vperm.xlu1 %2278, %v89_v59   ;;  %2279 = vset.pattern.permute.xlu2 %v2372_v4 }
  0xc4   :  { %339 = vperm.xlu2 %2279, %v89_v59  }
  0xc5   :  { %1992 = vmatmul.msk.f32.gmra.mxu0 %vm431_vm14, %v2373_v34  ;;  %2056 = vmatmul.msk.f32.gmra.mxu2 %vm431_vm14, %v2373_v34  ;;  %v289_v3 = vpop.permute.xlu1 %288  ;;  %vm214_vm14 = vcmp.eq.s32.totalorder %v2531_v31, %v129_v2 }
  0xc6   :  { %2024 = vmatmul.msk.f32.gmra.mxu1 %vm432_vm15, %v2373_v34  ;;  %2088 = vmatmul.msk.f32.gmra.mxu3 %vm432_vm15, %v2373_v34  ;;  %vm373_vm13 = vcmp.eq.s32.totalorder %v2519_v26, %v289_v3  ;;  %vm374_vm15 = vcmp.eq.s32.totalorder %v2531_v31, %v289_v3 }
  0xc7   :  { %vm437_vm0 = vmor %vm213_vm12, %vm373_vm13 }
  0xc8   :  { %vm438_vm1 = vmor %vm214_vm14, %vm374_vm15  ;;  %vm379_vm14 = vcmp.eq.s32.totalorder %v2519_v26, %v298_v11 }
  0xc9   :  { %v144_v16 = vpop.permute.xlu2 %143  ;;  %v156_v37 = vpop.permute.xlu0 %155 }
  0xcb   :  { %182 = vperm.xlu1 %2278, %v90_v1  }
  0xcc   :  { %342 = vperm.xlu2 %2279, %v90_v1  }
  0xcd   :  { %1993 = vmatmul.msk.f32.gmra.mxu0 %vm433_vm4, %v2373_v34  ;;  %2057 = vmatmul.msk.f32.gmra.mxu2 %vm433_vm4, %v2373_v34  ;;  %vm216_vm4 = vcmp.eq.s32.totalorder %v2531_v31, %v132_v6 }
  0xce   :  { %2025 = vmatmul.msk.f32.gmra.mxu1 %vm434_vm5, %v2373_v34  ;;  %2089 = vmatmul.msk.f32.gmra.mxu3 %vm434_vm5, %v2373_v34  ;;  %v135_v9 = vpop.permute.xlu1 %134  ;;  %vm376_vm5 = vcmp.eq.s32.totalorder %v2531_v31, %v292_v7 }
  0xcf   :  { %vm440_vm7 = vmor %vm216_vm4, %vm376_vm5  ;;  %vm217_vm9 = vcmp.eq.s32.totalorder %v2519_v26, %v135_v9  ;;  %vm221_vm5 = vcmp.eq.s32.totalorder %v2519_v26, %v141_v15 }
  0xd0   :  { %vm441_vm12 = vmor %vm217_vm9, %vm377_vm8 }
  0xd1   :  { %v147_v19 = vpop.permute.xlu2 %146 }
  0xd2   :  { %v322_v46 = vpop.permute.xlu0 %321 }
  0xd3   :  { %2281 = vset.pattern.permute.xlu1 %v2372_v4 }
  0xd4   :  { %345 = vperm.xlu1 %2281, %v91_v5   ;;  %2282 = vset.pattern.permute.xlu2 %v2371_v0  ;;  %v93_v0 = vld [vmem:[%s3264_s0 + $0xf8] sm:$0xff] }
  0xd5   :  { %1994 = vmatmul.msk.f32.gmra.mxu0 %vm435_vm10, %v2373_v34  ;;  %2058 = vmatmul.msk.f32.gmra.mxu2 %vm435_vm10, %v2373_v34  ;;  %vm378_vm10 = vcmp.eq.s32.totalorder %v2531_v31, %v295_v10  ;;  %v2217_v10 = vld [vmem:[%s3266_s2 + $0x40] sm:$0xff] }
  0xd6   :  { %2026 = vmatmul.msk.f32.gmra.mxu1 %vm436_vm11, %v2373_v34  ;;  %2090 = vmatmul.msk.f32.gmra.mxu3 %vm436_vm11, %v2373_v34  ;;  %vm218_vm11 = vcmp.eq.s32.totalorder %v2531_v31, %v135_v9  ;;  %v138_v4 = vpop.permute.xlu1 %137  ;;  %v2209_v9 = vld [vmem:[%s3266_s2] sm:$0xff] }
  0xd7   :  { %188 = vperm.xlu2 %2282, %v92_v8   ;;  %351 = vperm.xlu0 %2283, %v93_v0   ;;  %vm442_vm13 = vmor %vm218_vm11, %vm378_vm10  ;;  %vm219_vm15 = vcmp.eq.s32.totalorder %v2519_v26, %v138_v4  ;;  %vm223_vm10 = vcmp.eq.s32.totalorder %v2519_v26, %v144_v16 }
  0xd8   :  { %vm443_vm2 = vmor %vm219_vm15, %vm379_vm14  ;;  %1296 = vmatpush.bf16.msrb.mxu0 %v2209_v9  ;;  %1385 = vmatpush.bf16.msrb.mxu1 %v2217_v10 }
  0xda   :  { %v310_v24 = vpop.permute.xlu2 %309 }
  0xdb   :  { %v171_v63 = vpop.permute.xlu0 %170 }
  0xdc   :  { %348 = vperm.xlu1 %2281, %v92_v8  }
  0xdd   :  { %1995 = vmatmul.msk.f32.gmra.mxu0 %vm437_vm0, %v2373_v34  ;;  %2059 = vmatmul.msk.f32.gmra.mxu2 %vm437_vm0, %v2373_v34  ;;  %vm380_vm0 = vcmp.eq.s32.totalorder %v2531_v31, %v298_v11 }
  0xde   :  { %2027 = vmatmul.msk.f32.gmra.mxu1 %vm438_vm1, %v2373_v34  ;;  %2091 = vmatmul.msk.f32.gmra.mxu3 %vm438_vm1, %v2373_v34  ;;  %vm220_vm1 = vcmp.eq.s32.totalorder %v2531_v31, %v138_v4 }
  0xdf   :  { %191 = vperm.xlu2 %2282, %v93_v0   ;;  %v301_v14 = vpop.permute.xlu1 %300  ;;  %vm444_vm3 = vmor %vm220_vm1, %vm380_vm0  ;;  %vm225_vm0 = vcmp.eq.s32.totalorder %v2519_v26, %v147_v19  ;;  %vm385_vm1 = vcmp.eq.s32.totalorder %v2519_v26, %v307_v20 }
  0xe0   :  { %vm381_vm4 = vcmp.eq.s32.totalorder %v2519_v26, %v301_v14 }
  0xe1   :  { %vm445_vm8 = vmor %vm221_vm5, %vm381_vm4 }
  0xe2   :  { %vm449_vm4 = vmor %vm225_vm0, %vm385_vm1  ;;  %v313_v32 = vpop.permute.xlu2 %312 }
  0xe5   :  { %1996 = vmatmul.msk.f32.gmra.mxu0 %vm439_vm6, %v2373_v34  ;;  %2060 = vmatmul.msk.f32.gmra.mxu2 %vm439_vm6, %v2373_v34  ;;  %vm382_vm6 = vcmp.eq.s32.totalorder %v2531_v31, %v301_v14 }
  0xe6   :  { %2028 = vmatmul.msk.f32.gmra.mxu1 %vm440_vm7, %v2373_v34  ;;  %2092 = vmatmul.msk.f32.gmra.mxu3 %vm440_vm7, %v2373_v34  ;;  %vm222_vm7 = vcmp.eq.s32.totalorder %v2531_v31, %v141_v15  ;;  %v337_v15 = vpop.permute.xlu0 %336 }
  0xe7   :  { %vm446_vm9 = vmor %vm222_vm7, %vm382_vm6  ;;  %v304_v18 = vpop.permute.xlu1 %303  ;;  %vm387_vm6 = vcmp.eq.s32.totalorder %v2519_v26, %v310_v24 }
  0xe8   :  { %vm383_vm11 = vcmp.eq.s32.totalorder %v2519_v26, %v304_v18 }
  0xe9   :  { %vm447_vm14 = vmor %vm223_vm10, %vm383_vm11 }
  0xeb   :  { %v159_v39 = vpop.permute.xlu2 %158 }
  0xed   :  { %1997 = vmatmul.msk.f32.gmra.mxu0 %vm441_vm12, %v2373_v34  ;;  %2061 = vmatmul.msk.f32.gmra.mxu2 %vm441_vm12, %v2373_v34  ;;  %vm224_vm12 = vcmp.eq.s32.totalorder %v2531_v31, %v144_v16 }
  0xee   :  { %2029 = vmatmul.msk.f32.gmra.mxu1 %vm442_vm13, %v2373_v34  ;;  %2093 = vmatmul.msk.f32.gmra.mxu3 %vm442_vm13, %v2373_v34  ;;  %vm384_vm13 = vcmp.eq.s32.totalorder %v2531_v31, %v304_v18 }
  0xef   :  { %vm448_vm15 = vmor %vm224_vm12, %vm384_vm13  ;;  %vm389_vm12 = vcmp.eq.s32.totalorder %v2519_v26, %v313_v32 }
  0xf0   :  { %v150_v21 = vpop.permute.xlu1 %149 }
  0xf1   :  { %vm227_vm7 = vcmp.eq.s32.totalorder %v2519_v26, %v150_v21 }
  0xf2   :  { %vm451_vm10 = vmor %vm227_vm7, %vm387_vm6 }
  0xf3   :  { %v162_v43 = vpop.permute.xlu2 %161 }
  0xf5   :  { %1998 = vmatmul.msk.f32.gmra.mxu0 %vm443_vm2, %v2373_v34  ;;  %2062 = vmatmul.msk.f32.gmra.mxu2 %vm443_vm2, %v2373_v34  ;;  %vm226_vm2 = vcmp.eq.s32.totalorder %v2531_v31, %v147_v19 }
  0xf6   :  { %2030 = vmatmul.msk.f32.gmra.mxu1 %vm444_vm3, %v2373_v34  ;;  %2094 = vmatmul.msk.f32.gmra.mxu3 %vm444_vm3, %v2373_v34  ;;  %vm386_vm3 = vcmp.eq.s32.totalorder %v2531_v31, %v307_v20 }
  0xf7   :  { %vm450_vm5 = vmor %vm226_vm2, %vm386_vm3  ;;  %vm231_vm3 = vcmp.eq.s32.totalorder %v2519_v26, %v156_v37 }
  0xf8   :  { %v153_v28 = vpop.permute.xlu1 %152 }
  0xf9   :  { %vm229_vm13 = vcmp.eq.s32.totalorder %v2519_v26, %v153_v28 }
  0xfa   :  { %vm453_vm0 = vmor %vm229_vm13, %vm389_vm12 }
  0xfc   :  { %v325_v52 = vpop.permute.xlu2 %324 }
  0xfd   :  { %1999 = vmatmul.msk.f32.gmra.mxu0 %vm445_vm8, %v2373_v34  ;;  %2063 = vmatmul.msk.f32.gmra.mxu2 %vm445_vm8, %v2373_v34  ;;  %vm388_vm8 = vcmp.eq.s32.totalorder %v2531_v31, %v310_v24 }
  0xfe   :  { %2031 = vmatmul.msk.f32.gmra.mxu1 %vm446_vm9, %v2373_v34  ;;  %2095 = vmatmul.msk.f32.gmra.mxu3 %vm446_vm9, %v2373_v34  ;;  %vm228_vm9 = vcmp.eq.s32.totalorder %v2531_v31, %v150_v21 }
  0xff   :  { %vm452_vm11 = vmor %vm228_vm9, %vm388_vm8  ;;  %vm233_vm8 = vcmp.eq.s32.totalorder %v2519_v26, %v159_v39 }
 0x102   :  { %v316_v36 = vpop.permute.xlu1 %315 }
 0x103   :  { %vm391_vm2 = vcmp.eq.s32.totalorder %v2519_v26, %v316_v36 }
 0x104   :  { %vm455_vm6 = vmor %vm231_vm3, %vm391_vm2  ;;  %v328_v58 = vpop.permute.xlu2 %327 }
 0x105   :  { %2000 = vmatmul.msk.f32.gmra.mxu0 %vm447_vm14, %v2373_v34  ;;  %2064 = vmatmul.msk.f32.gmra.mxu2 %vm447_vm14, %v2373_v34  ;;  %vm390_vm14 = vcmp.eq.s32.totalorder %v2531_v31, %v313_v32 }
 0x106   :  { %2032 = vmatmul.msk.f32.gmra.mxu1 %vm448_vm15, %v2373_v34  ;;  %2096 = vmatmul.msk.f32.gmra.mxu3 %vm448_vm15, %v2373_v34  ;;  %vm230_vm15 = vcmp.eq.s32.totalorder %v2531_v31, %v153_v28 }
 0x107   :  { %vm454_vm1 = vmor %vm230_vm15, %vm390_vm14  ;;  %vm235_vm14 = vcmp.eq.s32.totalorder %v2519_v26, %v162_v43  ;;  %vm395_vm15 = vcmp.eq.s32.totalorder %v2519_v26, %v322_v46 }
 0x108   :  { %vm459_vm2 = vmor %vm235_vm14, %vm395_vm15 }
 0x10a   :  { %v2738_v22 = vpop.f32.mrf.mxu0  ;;  %v319_v42 = vpop.permute.xlu1 %318 }
 0x10b   :  { %v2740_v23 = vpop.f32.mrf.mxu1  ;;  %vm393_vm9 = vcmp.eq.s32.totalorder %v2519_v26, %v319_v42 }
 0x10c   :  { %vm457_vm12 = vmor %vm233_vm8, %vm393_vm9 }
 0x10d   :  { %2001 = vmatmul.msk.f32.gmra.mxu0 %vm449_vm4, %v2373_v34  ;;  %2065 = vmatmul.msk.f32.gmra.mxu2 %vm449_vm4, %v2373_v34  ;;  %vm392_vm4 = vcmp.eq.s32.totalorder %v2531_v31, %v316_v36  ;;  %v174_v2 = vpop.permute.xlu2 %173 }
 0x10e   :  { %2033 = vmatmul.msk.f32.gmra.mxu1 %vm450_vm5, %v2373_v34  ;;  %2097 = vmatmul.msk.f32.gmra.mxu3 %vm450_vm5, %v2373_v34  ;;  %vm232_vm5 = vcmp.eq.s32.totalorder %v2531_v31, %v156_v37 }
 0x10f   :  { %vm456_vm7 = vmor %vm232_vm5, %vm392_vm4  ;;  %vm397_vm4 = vcmp.eq.s32.totalorder %v2519_v26, %v325_v52 }
 0x110   :  { %v2826_v57 = vpop.f32.mrf.mxu2 }
 0x111   :  { %v2832_v59 = vpop.f32.mrf.mxu3 }
 0x112   :  { %v2756_v29 = vpop.f32.mrf.mxu0 }
 0x113   :  { %v2758_v30 = vpop.f32.mrf.mxu1  ;;  %v165_v49 = vpop.permute.xlu1 %164 }
 0x114   :  { %vm237_vm5 = vcmp.eq.s32.totalorder %v2519_v26, %v165_v49 }
 0x115   :  { %2002 = vmatmul.msk.f32.gmra.mxu0 %vm451_vm10, %v2373_v34  ;;  %2066 = vmatmul.msk.f32.gmra.mxu2 %vm451_vm10, %v2373_v34  ;;  %vm234_vm10 = vcmp.eq.s32.totalorder %v2531_v31, %v159_v39  ;;  %vm461_vm8 = vmor %vm237_vm5, %vm397_vm4  ;;  %v177_v4 = vpop.permute.xlu2 %176 }
 0x116   :  { %2034 = vmatmul.msk.f32.gmra.mxu1 %vm452_vm11, %v2373_v34  ;;  %2098 = vmatmul.msk.f32.gmra.mxu3 %vm452_vm11, %v2373_v34  ;;  %vm394_vm11 = vcmp.eq.s32.totalorder %v2531_v31, %v319_v42 }
 0x117   :  { %vm458_vm13 = vmor %vm234_vm10, %vm394_vm11  ;;  %vm399_vm10 = vcmp.eq.s32.totalorder %v2519_v26, %v328_v58 }
 0x118   :  { %v2846_v1 = vpop.f32.mrf.mxu2 }
 0x119   :  { %v2852_v3 = vpop.f32.mrf.mxu3 }
 0x11a   :  { %v2768_v33 = vpop.f32.mrf.mxu0 }
 0x11b   :  { %v2770_v35 = vpop.f32.mrf.mxu1  ;;  %v168_v53 = vpop.permute.xlu1 %167 }
 0x11c   :  { %vm239_vm11 = vcmp.eq.s32.totalorder %v2519_v26, %v168_v53 }
 0x11d   :  { %2003 = vmatmul.msk.f32.gmra.mxu0 %vm453_vm0, %v2373_v34  ;;  %2067 = vmatmul.msk.f32.gmra.mxu2 %vm453_vm0, %v2373_v34  ;;  %vm236_vm0 = vcmp.eq.s32.totalorder %v2531_v31, %v162_v43  ;;  %vm463_vm14 = vmor %vm239_vm11, %vm399_vm10 }
 0x11e   :  { %2035 = vmatmul.msk.f32.gmra.mxu1 %vm454_vm1, %v2373_v34  ;;  %2099 = vmatmul.msk.f32.gmra.mxu3 %vm454_vm1, %v2373_v34  ;;  %vm396_vm1 = vcmp.eq.s32.totalorder %v2531_v31, %v322_v46  ;;  %v340_v21 = vpop.permute.xlu2 %339 }
 0x11f   :  { %vm460_vm3 = vmor %vm236_vm0, %vm396_vm1  ;;  %vm241_vm1 = vcmp.eq.s32.totalorder %v2519_v26, %v171_v63 }
 0x120   :  { %v2866_v0 = vpop.f32.mrf.mxu2 }
 0x121   :  { %v2872_v12 = vpop.f32.mrf.mxu3 }
 0x122   :  { %v2780_v40 = vpop.f32.mrf.mxu0 }
 0x123   :  { %v2782_v41 = vpop.f32.mrf.mxu1 }
 0x124   :  { %v331_v62 = vpop.permute.xlu1 %330 }
 0x125   :  { %2004 = vmatmul.msk.f32.gmra.mxu0 %vm455_vm6, %v2373_v34  ;;  %2068 = vmatmul.msk.f32.gmra.mxu2 %vm455_vm6, %v2373_v34  ;;  %vm398_vm6 = vcmp.eq.s32.totalorder %v2531_v31, %v325_v52  ;;  %vm401_vm0 = vcmp.eq.s32.totalorder %v2519_v26, %v331_v62  ;;  %v186_v52 = vpop.permute.xlu0 %185 }
 0x126   :  { %2036 = vmatmul.msk.f32.gmra.mxu1 %vm456_vm7, %v2373_v34  ;;  %2100 = vmatmul.msk.f32.gmra.mxu3 %vm456_vm7, %v2373_v34  ;;  %vm238_vm7 = vcmp.eq.s32.totalorder %v2531_v31, %v165_v49  ;;  %vm465_vm4 = vmor %vm241_vm1, %vm401_vm0  ;;  %v343_v39 = vpop.permute.xlu2 %342 }
 0x127   :  { %vm462_vm9 = vmor %vm238_vm7, %vm398_vm6  ;;  %vm243_vm6 = vcmp.eq.s32.totalorder %v2519_v26, %v174_v2 }
 0x128   :  { %v2886_v20 = vpop.f32.mrf.mxu2 }
 0x129   :  { %v2890_v27 = vpop.f32.mrf.mxu3 }
 0x12a   :  { %v2792_v44 = vpop.f32.mrf.mxu0 }
 0x12b   :  { %v2794_v45 = vpop.f32.mrf.mxu1 }
 0x12c   :  { %v334_v8 = vpop.permute.xlu1 %333 }
 0x12d   :  { %2005 = vmatmul.msk.f32.gmra.mxu0 %vm457_vm12, %v2373_v34  ;;  %2069 = vmatmul.msk.f32.gmra.mxu2 %vm457_vm12, %v2373_v34  ;;  %vm400_vm12 = vcmp.eq.s32.totalorder %v2531_v31, %v328_v58  ;;  %vm403_vm7 = vcmp.eq.s32.totalorder %v2519_v26, %v334_v8 }
 0x12e   :  { %2037 = vmatmul.msk.f32.gmra.mxu1 %vm458_vm13, %v2373_v34  ;;  %2101 = vmatmul.msk.f32.gmra.mxu3 %vm458_vm13, %v2373_v34  ;;  %vm240_vm13 = vcmp.eq.s32.totalorder %v2531_v31, %v168_v53  ;;  %vm467_vm10 = vmor %vm243_vm6, %vm403_vm7 }
 0x12f   :  { %vm464_vm15 = vmor %vm240_vm13, %vm400_vm12  ;;  %vm245_vm12 = vcmp.eq.s32.totalorder %v2519_v26, %v177_v4  ;;  %vm405_vm13 = vcmp.eq.s32.totalorder %v2519_v26, %v337_v15 }
 0x130   :  { %vm469_vm0 = vmor %vm245_vm12, %vm405_vm13  ;;  %v2904_v38 = vpop.f32.mrf.mxu2 }
 0x131   :  { %v2910_v43 = vpop.f32.mrf.mxu3 }
 0x132   :  { %v2810_v50 = vpop.f32.mrf.mxu0 }
 0x133   :  { %v2812_v51 = vpop.f32.mrf.mxu1 }
 0x135   :  { %2006 = vmatmul.msk.f32.gmra.mxu0 %vm459_vm2, %v2373_v34  ;;  %2070 = vmatmul.msk.f32.gmra.mxu2 %vm459_vm2, %v2373_v34  ;;  %vm402_vm2 = vcmp.eq.s32.totalorder %v2531_v31, %v331_v62  ;;  %v180_v17 = vpop.permute.xlu1 %179 }
 0x136   :  { %2038 = vmatmul.msk.f32.gmra.mxu1 %vm460_vm3, %v2373_v34  ;;  %2102 = vmatmul.msk.f32.gmra.mxu3 %vm460_vm3, %v2373_v34  ;;  %vm242_vm3 = vcmp.eq.s32.totalorder %v2531_v31, %v171_v63  ;;  %v189_v63 = vpop.permute.xlu2 %188 }
 0x137   :  { %vm466_vm5 = vmor %vm242_vm3, %vm402_vm2  ;;  %vm407_vm2 = vcmp.eq.s32.totalorder %v2519_v26, %v340_v21  ;;  %vm247_vm3 = vcmp.eq.s32.totalorder %v2519_v26, %v180_v17 }
 0x138   :  { %vm471_vm6 = vmor %vm247_vm3, %vm407_vm2  ;;  %v2924_v53 = vpop.f32.mrf.mxu2 }
 0x139   :  { %v2928_v56 = vpop.f32.mrf.mxu3 }
 0x13a   :  { %v2822_v54 = vpop.f32.mrf.mxu0 }
 0x13b   :  { %v2824_v55 = vpop.f32.mrf.mxu1 }
 0x13d   :  { %2007 = vmatmul.msk.f32.gmra.mxu0 %vm461_vm8, %v2373_v34  ;;  %2071 = vmatmul.msk.f32.gmra.mxu2 %vm461_vm8, %v2373_v34  ;;  %vm244_vm8 = vcmp.eq.s32.totalorder %v2531_v31, %v174_v2  ;;  %v183_v28 = vpop.permute.xlu1 %182 }
 0x13e   :  { %2039 = vmatmul.msk.f32.gmra.mxu1 %vm462_vm9, %v2373_v34  ;;  %2103 = vmatmul.msk.f32.gmra.mxu3 %vm462_vm9, %v2373_v34  ;;  %vm404_vm9 = vcmp.eq.s32.totalorder %v2531_v31, %v334_v8 }
 0x13f   :  { %vm468_vm11 = vmor %vm244_vm8, %vm404_vm9  ;;  %vm409_vm8 = vcmp.eq.s32.totalorder %v2519_v26, %v343_v39  ;;  %vm249_vm9 = vcmp.eq.s32.totalorder %v2519_v26, %v183_v28 }
 0x140   :  { %vm473_vm12 = vmor %vm249_vm9, %vm409_vm8  ;;  %v2940_v8 = vpop.f32.mrf.mxu2 }
 0x141   :  { %v2944_v10 = vpop.f32.mrf.mxu3 }
 0x142   :  { %v2838_v60 = vpop.f32.mrf.mxu0 }
 0x143   :  { %v2840_v61 = vpop.f32.mrf.mxu1 }
 0x145   :  { %2008 = vmatmul.msk.f32.gmra.mxu0 %vm463_vm14, %v2373_v34  ;;  %2072 = vmatmul.msk.f32.gmra.mxu2 %vm463_vm14, %v2373_v34  ;;  %vm246_vm14 = vcmp.eq.s32.totalorder %v2531_v31, %v177_v4 }
 0x146   :  { %2040 = vmatmul.msk.f32.gmra.mxu1 %vm464_vm15, %v2373_v34  ;;  %2104 = vmatmul.msk.f32.gmra.mxu3 %vm464_vm15, %v2373_v34  ;;  %vm406_vm15 = vcmp.eq.s32.totalorder %v2531_v31, %v337_v15  ;;  %v346_v48 = vpop.permute.xlu1 %345  ;;  %v192_v15 = vpop.permute.xlu2 %191 }
 0x147   :  { %vm470_vm1 = vmor %vm246_vm14, %vm406_vm15  ;;  %vm411_vm14 = vcmp.eq.s32.totalorder %v2519_v26, %v346_v48  ;;  %vm251_vm15 = vcmp.eq.s32.totalorder %v2519_v26, %v186_v52 }
 0x148   :  { %vm475_vm2 = vmor %vm251_vm15, %vm411_vm14 }
 0x14a   :  { %v714_v5 = vpop.f32.mrf.mxu0 }
 0x14b   :  { %v827_v6 = vpop.f32.mrf.mxu1 }
 0x14c   :  { %v2854_v7 = vadd.f32 %v827_v6, %v714_v5 }
 0x14d   :  { %2009 = vmatmul.msk.f32.gmra.mxu0 %vm465_vm4, %v2373_v34  ;;  %2073 = vmatmul.msk.f32.gmra.mxu2 %vm465_vm4, %v2373_v34  ;;  %vm408_vm4 = vcmp.eq.s32.totalorder %v2531_v31, %v340_v21  ;;  %v2956_v21 = vpop.f32.mrf.mxu2 }
 0x14e   :  { %2041 = vmatmul.msk.f32.gmra.mxu1 %vm466_vm5, %v2373_v34  ;;  %2105 = vmatmul.msk.f32.gmra.mxu3 %vm466_vm5, %v2373_v34  ;;  %vm248_vm5 = vcmp.eq.s32.totalorder %v2531_v31, %v180_v17  ;;  %v349_v5 = vpop.permute.xlu1 %348  ;;  %v352_v17 = vpop.permute.xlu0 %351 }
 0x14f   :  { %vm472_vm7 = vmor %vm248_vm5, %vm408_vm4  ;;  %vm253_vm4 = vcmp.eq.s32.totalorder %v2519_v26, %v189_v63  ;;  %vm413_vm5 = vcmp.eq.s32.totalorder %v2519_v26, %v349_v5 }
 0x150   :  { %vm477_vm8 = vmor %vm253_vm4, %vm413_vm5 }
 0x152   :  { %v717_v11 = vpop.f32.mrf.mxu0 }
 0x153   :  { %v830_v13 = vpop.f32.mrf.mxu1 }
 0x154   :  { %v2874_v14 = vadd.f32 %v830_v13, %v717_v11  ;;  %v2228_v13 = vld [vmem:[#allocation5 + $0x18] sm:$0xff] }
 0x155   :  { %2010 = vmatmul.msk.f32.gmra.mxu0 %vm467_vm10, %v2373_v34  ;;  %2074 = vmatmul.msk.f32.gmra.mxu2 %vm467_vm10, %v2373_v34  ;;  %vm410_vm10 = vcmp.eq.s32.totalorder %v2531_v31, %v343_v39  ;;  %v804_v39 = vadd.f32 %v2740_v23, %v2738_v22  ;;  %v1718_v23 = vld [vmem:[%s3270_s6 + $0x70] sm:$0xff] }
 0x156   :  { %v1166_v16 = vpack.c.bf16 %v2874_v14, %v2854_v7  ;;  %2042 = vmatmul.msk.f32.gmra.mxu1 %vm468_vm11, %v2373_v34  ;;  %2106 = vmatmul.msk.f32.gmra.mxu3 %vm468_vm11, %v2373_v34  ;;  %vm250_vm11 = vcmp.eq.s32.totalorder %v2531_v31, %v183_v28  ;;  %v2960_v28 = vpop.f32.mrf.mxu3 }
 0x157   :  { %vm474_vm13 = vmor %vm250_vm11, %vm410_vm10  ;;  %1587 = vmatpush.bf16.msrb.mxu2 %v2228_v13  ;;  %vm255_vm10 = vcmp.eq.s32.totalorder %v2519_v26, %v192_v15  ;;  %vm415_vm11 = vcmp.eq.s32.totalorder %v2519_v26, %v352_v17 }
 0x158   :  { %vm479_vm14 = vmor %vm255_vm10, %vm415_vm11 }
 0x15a   :  { %v720_v18 = vpop.f32.mrf.mxu0 }
 0x15b   :  { %v833_v19 = vpop.f32.mrf.mxu1 }
 0x15c   :  { %v2888_v24 = vadd.f32 %v833_v19, %v720_v18 }
 0x15d   :  { %2011 = vmatmul.msk.f32.gmra.mxu0 %vm469_vm0, %v2373_v34  ;;  %2075 = vmatmul.msk.f32.gmra.mxu2 %vm469_vm0, %v2373_v34  ;;  %vm412_vm0 = vcmp.eq.s32.totalorder %v2531_v31, %v346_v48 }
 0x15e   :  { %2043 = vmatmul.msk.f32.gmra.mxu1 %vm470_vm1, %v2373_v34  ;;  %2107 = vmatmul.msk.f32.gmra.mxu3 %vm470_vm1, %v2373_v34  ;;  %vm252_vm1 = vcmp.eq.s32.totalorder %v2531_v31, %v186_v52 }
 0x15f   :  { %vm476_vm3 = vmor %vm252_vm1, %vm412_vm0 }
 0x162   :  { %v723_v32 = vpop.f32.mrf.mxu0 }
 0x163   :  { %v836_v36 = vpop.f32.mrf.mxu1 }
 0x164   :  { %v2900_v37 = vadd.f32 %v836_v36, %v723_v32  ;;  %v807_v32 = vadd.f32 %v2758_v30, %v2756_v29  ;;  %v1033_v36 = vadd.f32 %v2852_v3, %v2846_v1  ;;  %v2983_v29 = vpop.f32.mrf.mxu3 }
 0x165   :  { %2012 = vmatmul.msk.f32.gmra.mxu0 %vm471_vm6, %v2373_v34  ;;  %2076 = vmatmul.msk.f32.gmra.mxu2 %vm471_vm6, %v2373_v34  ;;  %vm254_vm6 = vcmp.eq.s32.totalorder %v2531_v31, %v189_v63 }
 0x166   :  { %v1168_v42 = vpack.c.bf16 %v2900_v37, %v2888_v24  ;;  %2044 = vmatmul.msk.f32.gmra.mxu1 %vm472_vm7, %v2373_v34  ;;  %2108 = vmatmul.msk.f32.gmra.mxu3 %vm472_vm7, %v2373_v34  ;;  %vm414_vm7 = vcmp.eq.s32.totalorder %v2531_v31, %v349_v5  ;;  %v1158_v48 = vpack.c.bf16 %v807_v32, %v804_v39 }
 0x167   :  { %vm478_vm9 = vmor %vm254_vm6, %vm414_vm7  ;;  %v810_v5 = vadd.f32 %v2770_v35, %v2768_v33  ;;  %v1045_v32 = vadd.f32 %v2928_v56, %v2924_v53  ;;  %v1042_v39 = vadd.f32 %v2910_v43, %v2904_v38  ;;  %v825_v38 = vadd.f32 %v2840_v61, %v2838_v60 }
 0x168   :  { %v1051_v56 = vadd.f32 %v2960_v28, %v2956_v21 }
 0x16a   :  { %v726_v46 = vpop.f32.mrf.mxu0 }
 0x16b   :  { %v839_v47 = vpop.f32.mrf.mxu1 }
 0x16c   :  { %v2916_v49 = vadd.f32 %v839_v47, %v726_v46  ;;  %v1030_v46 = vadd.f32 %v2832_v59, %v2826_v57  ;;  %v813_v57 = vadd.f32 %v2782_v41, %v2780_v40  ;;  %v1039_v59 = vadd.f32 %v2890_v27, %v2886_v20  ;;  %v2227_v40 = vld [vmem:[#allocation5 + $0x10] sm:$0xff] }
 0x16d   :  { %2013 = vmatmul.msk.f32.gmra.mxu0 %vm473_vm12, %v2373_v34  ;;  %2077 = vmatmul.msk.f32.gmra.mxu2 %vm473_vm12, %v2373_v34  ;;  %vm256_vm12 = vcmp.eq.s32.totalorder %v2531_v31, %v192_v15 }
 0x16e   :  { %2045 = vmatmul.msk.f32.gmra.mxu1 %vm474_vm13, %v2373_v34  ;;  %2109 = vmatmul.msk.f32.gmra.mxu3 %vm474_vm13, %v2373_v34  ;;  %vm416_vm13 = vcmp.eq.s32.totalorder %v2531_v31, %v352_v17  ;;  %v1719_v31 = vld [vmem:[%s3270_s6 + $0x78] sm:$0xff]  ;;  %v1159_v52 = vpack.c.bf16 %v1033_v36, %v1030_v46  ;;  %v1160_v15 = vpack.c.bf16 %v813_v57, %v810_v5 }
 0x16f   :  { %vm480_vm15 = vmor %vm256_vm12, %vm416_vm13  ;;  %1724 = vmatpush.msrb.mxu3 %v1719_v31  ;;  %1588 = vmatpush.bf16.msrb.mxu2 %v2227_v40  ;;  %v819_v31 = vadd.f32 %v2812_v51, %v2810_v50  ;;  %v816_v36 = vadd.f32 %v2794_v45, %v2792_v44  ;;  %v1716_v45 = vld [vmem:[%s3270_s6 + $0x60] sm:$0xff]  ;;  %v822_v57 = vadd.f32 %v2824_v55, %v2822_v54  ;;  %v1715_v55 = vld [vmem:[%s3270_s6 + $0x58] sm:$0xff] }
 0x171   :  { %1725 = vmatpush.msrb.mxu3 %v1718_v23 }
 0x172   :  { %v729_v58 = vpop.f32.mrf.mxu0 }
 0x173   :  { %v842_v62 = vpop.f32.mrf.mxu1 }
 0x174   :  { %v2930_v2 = vadd.f32 %v842_v62, %v729_v58  ;;  %v2981_v62 = vpop.f32.mrf.mxu2 }
 0x175   :  { %2014 = vmatmul.msk.f32.gmra.mxu0 %vm475_vm2, %v2373_v34  ;;  %2078 = vmatmul.msk.f32.gmra.mxu2 %vm475_vm2, %v2373_v34 }
 0x176   :  { %v1170_v6 = vpack.c.bf16 %v2930_v2, %v2916_v49  ;;  %2046 = vmatmul.msk.f32.gmra.mxu1 %vm476_vm3, %v2373_v34  ;;  %2110 = vmatmul.msk.f32.gmra.mxu3 %vm476_vm3, %v2373_v34 }
 0x17a   :  { %v732_v9 = vpop.f32.mrf.mxu0 }
 0x17b   :  { %v845_v4 = vpop.f32.mrf.mxu1 }
 0x17c   :  { %v2946_v11 = vadd.f32 %v845_v4, %v732_v9  ;;  %v2996_v63 = vpop.f32.mrf.mxu2  ;;  %v1056_v9 = vpop.f32.mrf.mxu3  ;;  %v1036_v4 = vadd.f32 %v2872_v12, %v2866_v0  ;;  %v1717_v12 = vld [vmem:[%s3270_s6 + $0x68] sm:$0xff] }
 0x17d   :  { %2015 = vmatmul.msk.f32.gmra.mxu0 %vm477_vm8, %v2373_v34  ;;  %2079 = vmatmul.msk.f32.gmra.mxu2 %vm477_vm8, %v2373_v34 }
 0x17e   :  { %2047 = vmatmul.msk.f32.gmra.mxu1 %vm478_vm9, %v2373_v34  ;;  %2111 = vmatmul.msk.f32.gmra.mxu3 %vm478_vm9, %v2373_v34 }
 0x17f   :  { %1726 = vmatpush.msrb.mxu3 %v1717_v12 }
 0x181   :  { %1727 = vmatpush.msrb.mxu3 %v1716_v45 }
 0x182   :  { %v735_v18 = vpop.f32.mrf.mxu0 }
 0x183   :  { %v848_v19 = vpop.f32.mrf.mxu1  ;;  %1728 = vmatpush.msrb.mxu3 %v1715_v55 }
 0x184   :  { %v2958_v25 = vadd.f32 %v848_v19, %v735_v18  ;;  %v1161_v18 = vpack.c.bf16 %v1039_v59, %v1036_v4  ;;  %v3004_v41 = vpop.f32.mrf.mxu2  ;;  %v3006_v27 = vpop.f32.mrf.mxu3  ;;  %v1048_v59 = vadd.f32 %v2944_v10, %v2940_v8  ;;  %v1164_v4 = vpack.c.bf16 %v825_v38, %v822_v57 }
 0x185   :  { %2016 = vmatmul.msk.f32.gmra.mxu0 %vm479_vm14, %v2373_v34  ;;  %2080 = vmatmul.msk.f32.gmra.mxu2 %vm479_vm14, %v2373_v34  ;;  %v1057_v8 = vadd.f32 %v1056_v9, %v2996_v63  ;;  %v1054_v10 = vadd.f32 %v2983_v29, %v2981_v62  ;;  %v1714_v29 = vld [vmem:[%s3270_s6 + $0x50] sm:$0xff]  ;;  %v1060_v7 = vadd.f32 %v3006_v27, %v3004_v41  ;;  %v1713_v27 = vld [vmem:[%s3270_s6 + $0x48] sm:$0xff] }
 0x186   :  { %v1172_v26 = vpack.c.bf16 %v2958_v25, %v2946_v11  ;;  %2048 = vmatmul.msk.f32.gmra.mxu1 %vm480_vm15, %v2373_v34  ;;  %2112 = vmatmul.msk.f32.gmra.mxu3 %vm480_vm15, %v2373_v34  ;;  %v3108_v11 = vld [vmem:[%s3267_s3] ss:$0 sm:$0xff] }
 0x187   :  { %1729 = vmatpush.msrb.mxu3 %v1714_v29 }
 0x189   :  { %1730 = vmatpush.msrb.mxu3 %v1713_v27 }
 0x18a   :  { %v738_v47 = vpop.f32.mrf.mxu0 }
 0x18b   :  { %v851_v34 = vpop.f32.mrf.mxu1 }
 0x18c   :  { %v2979_v58 = vadd.f32 %v851_v34, %v738_v47  ;;  %v1162_v47 = vpack.c.bf16 %v819_v31, %v816_v36  ;;  %v1163_v34 = vpack.c.bf16 %v1045_v32, %v1042_v39  ;;  %v1167_v32 = vpack.c.bf16 %v1057_v8, %v1054_v10 }
 0x18d   :  { %1297 = vmatmul.bf16.vlgmr.msrb.gmra.mxu0 %v1158_v48 }
 0x18e   :  { %1386 = vmatmul.bf16.vlgmr.msrb.gmra.mxu1 %v1159_v52  ;;  %v949_v52 = vpop.f32.mrf.mxu2 }
 0x192   :  { %v741_v30 = vpop.f32.mrf.mxu0 }
 0x193   :  { %v854_v1 = vpop.f32.mrf.mxu1 }
 0x194   :  { %v2985_v3 = vadd.f32 %v854_v1, %v741_v30  ;;  %v1062_v1 = vpop.f32.mrf.mxu3 }
 0x195   :  { %v1063_v9 = vadd.f32 %v1062_v1, %v949_v52 }
 0x196   :  { %v1174_v22 = vpack.c.bf16 %v2985_v3, %v2979_v58  ;;  %v3027_v53 = vpop.f32.mrf.mxu2 }
 0x19a   :  { %v744_v13 = vpop.f32.mrf.mxu0 }
 0x19b   :  { %v857_v17 = vpop.f32.mrf.mxu1 }
 0x19c   :  { %v3002_v19 = vadd.f32 %v857_v17, %v744_v13  ;;  %v1065_v43 = vpop.f32.mrf.mxu3 }
 0x19d   :  { %1302 = vmatmul.bf16.gmra.mxu0 %v1160_v15  ;;  %v1165_v15 = vpack.c.bf16 %v1051_v56, %v1048_v59  ;;  %v1066_v37 = vadd.f32 %v1065_v43, %v3027_v53  ;;  %v1712_v43 = vld [vmem:[%s3270_s6 + $0x40] sm:$0xff] }
 0x19e   :  { %1391 = vmatmul.bf16.gmra.mxu1 %v1161_v18  ;;  %v2226_v18 = vld [vmem:[#allocation5 + $0x8] sm:$0xff]  ;;  %v955_v60 = vpop.f32.mrf.mxu2  ;;  %1731 = vmatpush.msrb.mxu3 %v1712_v43 }
 0x19f   :  { %1589 = vmatpush.bf16.msrb.mxu2 %v2226_v18 }
 0x1a2   :  { %v747_v20 = vpop.f32.mrf.mxu0 }
 0x1a3   :  { %v860_v33 = vpop.f32.mrf.mxu1 }
 0x1a4   :  { %v3008_v35 = vadd.f32 %v860_v33, %v747_v20  ;;  %v1068_v61 = vpop.f32.mrf.mxu3 }
 0x1a5   :  { %v1069_v1 = vadd.f32 %v1068_v61, %v955_v60 }
 0x1a6   :  { %v1176_v0 = vpack.c.bf16 %v3008_v35, %v3002_v19  ;;  %v958_v20 = vpop.f32.mrf.mxu2 }
 0x1aa   :  { %v750_v46 = vpop.f32.mrf.mxu0 }
 0x1ab   :  { %v863_v48 = vpop.f32.mrf.mxu1 }
 0x1ac   :  { %v3023_v30 = vadd.f32 %v863_v48, %v750_v46  ;;  %v1071_v12 = vpop.f32.mrf.mxu3 }
 0x1ad   :  { %1307 = vmatmul.bf16.gmra.mxu0 %v1162_v47  ;;  %v1072_v61 = vadd.f32 %v1071_v12, %v958_v20 }
 0x1ae   :  { %1396 = vmatmul.bf16.gmra.mxu1 %v1163_v34  ;;  %v961_v47 = vpop.f32.mrf.mxu2  ;;  %v1169_v34 = vpack.c.bf16 %v1063_v9, %v1060_v7 }
 0x1b2   :  { %v753_v50 = vpop.f32.mrf.mxu0 }
 0x1b3   :  { %v866_v51 = vpop.f32.mrf.mxu1 }
 0x1b4   :  { %v3025_v23 = vadd.f32 %v866_v51, %v753_v50  ;;  %v1074_v63 = vpop.f32.mrf.mxu3  ;;  %v2225_v51 = vld [vmem:[#allocation5] sm:$0xff] }
 0x1b5   :  { %1590 = vmatpush.bf16.msrb.mxu2 %v2225_v51  ;;  %v1075_v53 = vadd.f32 %v1074_v63, %v961_v47  ;;  %v1711_v47 = vld [vmem:[%s3270_s6 + $0x38] sm:$0xff] }
 0x1b6   :  { %v1178_v44 = vpack.c.bf16 %v3025_v23, %v3023_v30  ;;  %v964_v45 = vpop.f32.mrf.mxu2  ;;  %1732 = vmatpush.msrb.mxu3 %v1711_v47  ;;  %v1708_v30 = vld [vmem:[%s3270_s6 + $0x20] sm:$0xff] }
 0x1b7   :  { %v1173_v2 = vpack.c.bf16 %v1075_v53, %v1072_v61 }
 0x1ba   :  { %v756_v5 = vpop.f32.mrf.mxu0 }
 0x1bb   :  { %v869_v13 = vpop.f32.mrf.mxu1 }
 0x1bc   :  { %v3042_v17 = vadd.f32 %v869_v13, %v756_v5  ;;  %v1077_v38 = vpop.f32.mrf.mxu3 }
 0x1bd   :  { %1312 = vmatmul.bf16.gmra.mxu0 %v1164_v4  ;;  %v1171_v4 = vpack.c.bf16 %v1069_v1, %v1066_v37  ;;  %v1078_v29 = vadd.f32 %v1077_v38, %v964_v45  ;;  %v1710_v1 = vld [vmem:[%s3270_s6 + $0x30] sm:$0xff] }
 0x1be   :  { %1401 = vmatmul.bf16.gmra.mxu1 %v1165_v15  ;;  %v967_v59 = vpop.f32.mrf.mxu2  ;;  %1733 = vmatpush.msrb.mxu3 %v1710_v1 }
 0x1c2   :  { %v759_v40 = vpop.f32.mrf.mxu0 }
 0x1c3   :  { %v872_v21 = vpop.f32.mrf.mxu1 }
 0x1c4   :  { %v3044_v28 = vadd.f32 %v872_v21, %v759_v40  ;;  %v1080_v24 = vpop.f32.mrf.mxu3 }
 0x1c5   :  { %v1081_v63 = vadd.f32 %v1080_v24, %v967_v59 }
 0x1c6   :  { %v1180_v54 = vpack.c.bf16 %v3044_v28, %v3042_v17  ;;  %v970_v15 = vpop.f32.mrf.mxu2  ;;  %v1707_v17 = vld [vmem:[%s3270_s6 + $0x18] sm:$0xff] }
 0x1ca   :  { %v762_v33 = vpop.f32.mrf.mxu0 }
 0x1cb   :  { %v875_v31 = vpop.f32.mrf.mxu1 }
 0x1cc   :  { %v3054_v36 = vadd.f32 %v875_v31, %v762_v33  ;;  %v1083_v40 = vpop.f32.mrf.mxu3 }
 0x1cd   :  { %1317 = vmatmul.bf16.gmra.mxu0 %v1166_v16  ;;  %v1084_v3 = vadd.f32 %v1083_v40, %v970_v15 }
 0x1ce   :  { %1406 = vmatmul.bf16.gmra.mxu1 %v1167_v32 }
 0x1d2   :  { %v765_v39 = vpop.f32.mrf.mxu0 }
 0x1d3   :  { %v878_v46 = vpop.f32.mrf.mxu1 }
 0x1d4   :  { %v3059_v48 = vadd.f32 %v878_v46, %v765_v39  ;;  %v1086_v33 = vpop.f32.mrf.mxu3 }
 0x1d6   :  { %v1182_v62 = vpack.c.bf16 %v3059_v48, %v3054_v36  ;;  %v1706_v36 = vld [vmem:[%s3270_s6 + $0x10] sm:$0xff] }
 0x1da   :  { %v768_v14 = vpop.f32.mrf.mxu0 }
 0x1db   :  { %v881_v16 = vpop.f32.mrf.mxu1 }
 0x1dc   :  { %v3068_v50 = vadd.f32 %v881_v16, %v768_v14  ;;  %v1089_v12 = vpop.f32.mrf.mxu3 }
 0x1dd   :  { %1322 = vmatmul.bf16.gmra.mxu0 %v1168_v42 }
 0x1de   :  { %1411 = vmatmul.bf16.gmra.mxu1 %v1169_v34 }
 0x1e2   :  { %v771_v56 = vpop.f32.mrf.mxu0 }
 0x1e3   :  { %v884_v57 = vpop.f32.mrf.mxu1 }
 0x1e4   :  { %v3073_v52 = vadd.f32 %v884_v57, %v771_v56  ;;  %v1092_v16 = vpop.f32.mrf.mxu3 }
 0x1e6   :  { %v1184_v41 = vpack.c.bf16 %v3073_v52, %v3068_v50  ;;  %v1705_v50 = vld [vmem:[%s3270_s6 + $0x8] sm:$0xff] }
 0x1ea   :  { %v774_v42 = vpop.f32.mrf.mxu0 }
 0x1eb   :  { %v887_v5 = vpop.f32.mrf.mxu1 }
 0x1ec   :  { %v3081_v13 = vadd.f32 %v887_v5, %v774_v42  ;;  %v1095_v37 = vpop.f32.mrf.mxu3 }
 0x1ed   :  { %1327 = vmatmul.bf16.gmra.mxu0 %v1170_v6  ;;  %v973_v6 = vpop.f32.mrf.mxu2 }
 0x1ee   :  { %1416 = vmatmul.bf16.gmra.mxu1 %v1171_v4  ;;  %v1087_v59 = vadd.f32 %v1086_v33, %v973_v6 }
 0x1f0   :  { %v1177_v5 = vpack.c.bf16 %v1087_v59, %v1084_v3 }
 0x1f2   :  { %v777_v18 = vpop.f32.mrf.mxu0 }
 0x1f3   :  { %v890_v21 = vpop.f32.mrf.mxu1 }
 0x1f4   :  { %v3086_v55 = vadd.f32 %v890_v21, %v777_v18  ;;  %v1098_v15 = vpop.f32.mrf.mxu3 }
 0x1f5   :  { %v976_v46 = vpop.f32.mrf.mxu2 }
 0x1f6   :  { %v1186_v60 = vpack.c.bf16 %v3086_v55, %v3081_v13  ;;  %v1090_v35 = vadd.f32 %v1089_v12, %v976_v46  ;;  %v1704_v13 = vld [vmem:[%s3270_s6] sm:$0xff] }
 0x1fa   :  { %v780_v8 = vpop.f32.mrf.mxu0 }
 0x1fb   :  { %v893_v49 = vpop.f32.mrf.mxu1 }
 0x1fc   :  { %v3093_v10 = vadd.f32 %v893_v49, %v780_v8  ;;  %v1101_v47 = vpop.f32.mrf.mxu3 }
 0x1fd   :  { %1332 = vmatmul.bf16.gmra.mxu0 %v1172_v26  ;;  %v1175_v26 = vpack.c.bf16 %v1081_v63, %v1078_v29  ;;  %v979_v14 = vpop.f32.mrf.mxu2 }
 0x1fe   :  { %1421 = vmatmul.bf16.gmra.mxu1 %v1173_v2  ;;  %v1709_v2 = vld [vmem:[%s3270_s6 + $0x28] sm:$0xff]  ;;  %v1093_v6 = vadd.f32 %v1092_v16, %v979_v14 }
 0x1ff   :  { %1734 = vmatpush.msrb.mxu3 %v1709_v2 }
 0x201   :  { %1735 = vmatpush.msrb.mxu3 %v1708_v30 }
 0x202   :  { %v783_v31 = vpop.f32.mrf.mxu0 }
 0x203   :  { %v896_v32 = vpop.f32.mrf.mxu1  ;;  %1736 = vmatpush.msrb.mxu3 %v1707_v17 }
 0x204   :  { %v3098_v39 = vadd.f32 %v896_v32, %v783_v31  ;;  %v1179_v31 = vpack.c.bf16 %v1093_v6, %v1090_v35 }
 0x205   :  { %1737 = vmatpush.msrb.mxu3 %v1706_v36  ;;  %v3176_v36 = vld [vmem:[%s3269_s5] ss:$0 sm:$0xff] }
 0x206   :  { %v1188_v20 = vpack.c.bf16 %v3098_v39, %v3093_v10 }
 0x207   :  { %1738 = vmatpush.msrb.mxu3 %v1705_v50 }
 0x209   :  { %1739 = vmatpush.msrb.mxu3 %v1704_v13 }
 0x20a   :  { %v1298_v9 = vpop.f32.mrf.mxu0 }
 0x20b   :  { %v1387_v25 = vpop.f32.mrf.mxu1  ;;  %v1299_v7 = vadd.f32 %v3108_v11, %v1298_v9 }
 0x20d   :  { %1337 = vmatmul.bf16.gmra.mxu0 %v1174_v22  ;;  %v1388_v51 = vadd.f32 %v1387_v25, %v1299_v7  ;;  %v982_v22 = vpop.f32.mrf.mxu2 }
 0x20e   :  { %1426 = vmatmul.bf16.gmra.mxu1 %v1175_v26  ;;  %v1096_v23 = vadd.f32 %v1095_v37, %v982_v22 }
 0x20f   :  { %v1467_v57 = vmax.f32 %v1388_v51, 0.0 }
 0x212   :  { %v1300_v34 = vpop.f32.mrf.mxu0 }
 0x213   :  { %v1301_v45 = vadd.f32 %v3108_v11, %v1300_v34  ;;  %v1389_v38 = vpop.f32.mrf.mxu1  ;;  %v1104_v34 = vpop.f32.mrf.mxu3 }
 0x215   :  { %v1390_v56 = vadd.f32 %v1389_v38, %v1301_v45  ;;  %v985_v61 = vpop.f32.mrf.mxu2 }
 0x216   :  { %v1099_v14 = vadd.f32 %v1098_v15, %v985_v61 }
 0x217   :  { %v1468_v27 = vmax.f32 %v1390_v56, 0.0 }
 0x218   :  { %v1181_v38 = vpack.c.bf16 %v1099_v14, %v1096_v23 }
 0x219   :  { %v1516_v58 = vpack.c.bf16 %v1468_v27, %v1467_v57 }
 0x21a   :  { %v1303_v24 = vpop.f32.mrf.mxu0 }
 0x21b   :  { %v1392_v42 = vpop.f32.mrf.mxu1  ;;  %1591 = vmatmul.bf16.vlgmr.msrb.gmra.mxu2 %v1516_v58  ;;  %v1304_v4 = vadd.f32 %v3108_v11, %v1303_v24  ;;  %v1107_v1 = vpop.f32.mrf.mxu3 }
 0x21d   :  { %1342 = vmatmul.bf16.gmra.mxu0 %v1176_v0  ;;  %v1393_v21 = vadd.f32 %v1392_v42, %v1304_v4  ;;  %v988_v32 = vpop.f32.mrf.mxu2 }
 0x21e   :  { %1431 = vmatmul.bf16.gmra.mxu1 %v1177_v5  ;;  %v1102_v28 = vadd.f32 %v1101_v47, %v988_v32 }
 0x21f   :  { %v1469_v8 = vmax.f32 %v1393_v21, 0.0 }
 0x222   :  { %v1305_v18 = vpop.f32.mrf.mxu0 }
 0x223   :  { %v1306_v53 = vadd.f32 %v3108_v11, %v1305_v18  ;;  %v1394_v43 = vpop.f32.mrf.mxu1 }
 0x225   :  { %v1395_v40 = vadd.f32 %v1394_v43, %v1306_v53  ;;  %v991_v16 = vpop.f32.mrf.mxu2  ;;  %v1110_v53 = vpop.f32.mrf.mxu3 }
 0x226   :  { %v1105_v42 = vadd.f32 %v1104_v34, %v991_v16 }
 0x227   :  { %v1470_v49 = vmax.f32 %v1395_v40, 0.0 }
 0x228   :  { %v1183_v18 = vpack.c.bf16 %v1105_v42, %v1102_v28 }
 0x229   :  { %v1517_v19 = vpack.c.bf16 %v1470_v49, %v1469_v8 }
 0x22a   :  { %v1308_v0 = vpop.f32.mrf.mxu0 }
 0x22b   :  { %v1397_v33 = vpop.f32.mrf.mxu1  ;;  %1596 = vmatmul.bf16.gmra.mxu2 %v1517_v19  ;;  %v1309_v63 = vadd.f32 %v3108_v11, %v1308_v0 }
 0x22d   :  { %1347 = vmatmul.bf16.gmra.mxu0 %v1178_v44  ;;  %v1398_v9 = vadd.f32 %v1397_v33, %v1309_v63  ;;  %v994_v57 = vpop.f32.mrf.mxu2  ;;  %v1113_v6 = vpop.f32.mrf.mxu3 }
 0x22e   :  { %1436 = vmatmul.bf16.gmra.mxu1 %v1179_v31  ;;  %v1108_v48 = vadd.f32 %v1107_v1, %v994_v57 }
 0x22f   :  { %v1471_v46 = vmax.f32 %v1398_v9, 0.0 }
 0x232   :  { %v1310_v29 = vpop.f32.mrf.mxu0 }
 0x233   :  { %v1311_v25 = vadd.f32 %v3108_v11, %v1310_v29  ;;  %v1399_v26 = vpop.f32.mrf.mxu1 }
 0x235   :  { %v1400_v7 = vadd.f32 %v1399_v26, %v1311_v25  ;;  %v997_v21 = vpop.f32.mrf.mxu2  ;;  %v1116_v29 = vpop.f32.mrf.mxu3 }
 0x236   :  { %v1111_v0 = vadd.f32 %v1110_v53, %v997_v21 }
 0x237   :  { %v1472_v12 = vmax.f32 %v1400_v7, 0.0 }
 0x238   :  { %v1185_v32 = vpack.c.bf16 %v1111_v0, %v1108_v48 }
 0x239   :  { %v1518_v51 = vpack.c.bf16 %v1472_v12, %v1471_v46 }
 0x23a   :  { %v1313_v44 = vpop.f32.mrf.mxu0 }
 0x23b   :  { %v1402_v45 = vpop.f32.mrf.mxu1  ;;  %1601 = vmatmul.bf16.gmra.mxu2 %v1518_v51  ;;  %v1314_v56 = vadd.f32 %v3108_v11, %v1313_v44 }
 0x23d   :  { %1352 = vmatmul.bf16.gmra.mxu0 %v1180_v54  ;;  %v1403_v59 = vadd.f32 %v1402_v45, %v1314_v56  ;;  %v1000_v2 = vpop.f32.mrf.mxu2  ;;  %v1119_v30 = vpop.f32.mrf.mxu3 }
 0x23e   :  { %1441 = vmatmul.bf16.gmra.mxu1 %v1181_v38  ;;  %v1114_v52 = vadd.f32 %v1113_v6, %v1000_v2 }
 0x23f   :  { %v1473_v24 = vmax.f32 %v1403_v59, 0.0 }
 0x242   :  { %v1315_v27 = vpop.f32.mrf.mxu0 }
 0x243   :  { %v1316_v58 = vadd.f32 %v3108_v11, %v1315_v27  ;;  %v1404_v3 = vpop.f32.mrf.mxu1 }
 0x245   :  { %v1405_v22 = vadd.f32 %v1404_v3, %v1316_v58  ;;  %v1003_v63 = vpop.f32.mrf.mxu2  ;;  %v1122_v59 = vpop.f32.mrf.mxu3 }
 0x246   :  { %v1117_v16 = vadd.f32 %v1116_v29, %v1003_v63 }
 0x247   :  { %v1474_v37 = vmax.f32 %v1405_v22, 0.0 }
 0x248   :  { %v1187_v44 = vpack.c.bf16 %v1117_v16, %v1114_v52 }
 0x249   :  { %v1519_v5 = vpack.c.bf16 %v1474_v37, %v1473_v24 }
 0x24a   :  { %v1318_v54 = vpop.f32.mrf.mxu0 }
 0x24b   :  { %v1407_v4 = vpop.f32.mrf.mxu1  ;;  %1606 = vmatmul.bf16.gmra.mxu2 %v1519_v5  ;;  %v1319_v43 = vadd.f32 %v3108_v11, %v1318_v54 }
 0x24d   :  { %1357 = vmatmul.bf16.gmra.mxu0 %v1182_v62  ;;  %v1408_v15 = vadd.f32 %v1407_v4, %v1319_v43 }
 0x24e   :  { %1446 = vmatmul.bf16.gmra.mxu1 %v1183_v18 }
 0x24f   :  { %v1475_v19 = vmax.f32 %v1408_v15, 0.0 }
 0x252   :  { %v1320_v61 = vpop.f32.mrf.mxu0 }
 0x253   :  { %v1321_v40 = vadd.f32 %v3108_v11, %v1320_v61  ;;  %v1409_v8 = vpop.f32.mrf.mxu1 }
 0x255   :  { %v1410_v49 = vadd.f32 %v1409_v8, %v1321_v40 }
 0x257   :  { %v1476_v35 = vmax.f32 %v1410_v49, 0.0 }
 0x259   :  { %v1520_v33 = vpack.c.bf16 %v1476_v35, %v1475_v19 }
 0x25a   :  { %v1323_v62 = vpop.f32.mrf.mxu0 }
 0x25b   :  { %v1412_v31 = vpop.f32.mrf.mxu1  ;;  %1611 = vmatmul.bf16.gmra.mxu2 %v1520_v33  ;;  %v1324_v47 = vadd.f32 %v3108_v11, %v1323_v62 }
 0x25d   :  { %1362 = vmatmul.bf16.gmra.mxu0 %v1184_v41  ;;  %v1413_v25 = vadd.f32 %v1412_v31, %v1324_v47  ;;  %v1006_v41 = vpop.f32.mrf.mxu2 }
 0x25e   :  { %1451 = vmatmul.bf16.gmra.mxu1 %v1185_v32  ;;  %v1120_v55 = vadd.f32 %v1119_v30, %v1006_v41 }
 0x25f   :  { %v1477_v12 = vmax.f32 %v1413_v25, 0.0 }
 0x262   :  { %v1325_v9 = vpop.f32.mrf.mxu0 }
 0x263   :  { %v1326_v26 = vadd.f32 %v3108_v11, %v1325_v9  ;;  %v1414_v7 = vpop.f32.mrf.mxu1 }
 0x265   :  { %v1415_v46 = vadd.f32 %v1414_v7, %v1326_v26  ;;  %v1009_v1 = vpop.f32.mrf.mxu2 }
 0x266   :  { %v1123_v24 = vadd.f32 %v1122_v59, %v1009_v1 }
 0x267   :  { %v1478_v14 = vmax.f32 %v1415_v46, 0.0 }
 0x268   :  { %v1189_v5 = vpack.c.bf16 %v1123_v24, %v1120_v55 }
 0x269   :  { %v1521_v34 = vpack.c.bf16 %v1478_v14, %v1477_v12 }
 0x26a   :  { %v1328_v51 = vpop.f32.mrf.mxu0 }
 0x26b   :  { %v1417_v23 = vpop.f32.mrf.mxu1  ;;  %1616 = vmatmul.bf16.gmra.mxu2 %v1521_v34  ;;  %v1329_v45 = vadd.f32 %v3108_v11, %v1328_v51 }
 0x26d   :  { %1367 = vmatmul.bf16.gmra.mxu0 %v1186_v60  ;;  %v1418_v56 = vadd.f32 %v1417_v23, %v1329_v45 }
 0x26e   :  { %1456 = vmatmul.bf16.gmra.mxu1 %v1187_v44 }
 0x26f   :  { %v1479_v3 = vmax.f32 %v1418_v56, 0.0 }
 0x272   :  { %v1330_v38 = vpop.f32.mrf.mxu0 }
 0x273   :  { %v1331_v57 = vadd.f32 %v3108_v11, %v1330_v38  ;;  %v1419_v27 = vpop.f32.mrf.mxu1 }
 0x275   :  { %v1420_v58 = vadd.f32 %v1419_v27, %v1331_v57 }
 0x277   :  { %v1480_v22 = vmax.f32 %v1420_v58, 0.0 }
 0x279   :  { %v1522_v37 = vpack.c.bf16 %v1480_v22, %v1479_v3 }
 0x27a   :  { %v1333_v60 = vpop.f32.mrf.mxu0 }
 0x27b   :  { %v1422_v42 = vpop.f32.mrf.mxu1  ;;  %1621 = vmatmul.bf16.gmra.mxu2 %v1522_v37  ;;  %v1334_v17 = vadd.f32 %v3108_v11, %v1333_v60 }
 0x27d   :  { %1372 = vmatmul.bf16.gmra.mxu0 %v1188_v20  ;;  %v1423_v54 = vadd.f32 %v1422_v42, %v1334_v17 }
 0x27e   :  { %1461 = vmatmul.bf16.gmra.mxu1 %v1189_v5 }
 0x27f   :  { %v1481_v53 = vmax.f32 %v1423_v54, 0.0 }
 0x282   :  { %v1335_v28 = vpop.f32.mrf.mxu0 }
 0x283   :  { %v1336_v4 = vadd.f32 %v3108_v11, %v1335_v28  ;;  %v1424_v18 = vpop.f32.mrf.mxu1 }
 0x285   :  { %v1425_v21 = vadd.f32 %v1424_v18, %v1336_v4 }
 0x287   :  { %v1482_v43 = vmax.f32 %v1425_v21, 0.0 }
 0x289   :  { %v1523_v61 = vpack.c.bf16 %v1482_v43, %v1481_v53 }
 0x28a   :  { %v1338_v15 = vpop.f32.mrf.mxu0 }
 0x28b   :  { %v1427_v40 = vpop.f32.mrf.mxu1  ;;  %1626 = vmatmul.bf16.gmra.mxu2 %v1523_v61  ;;  %v1339_v8 = vadd.f32 %v3108_v11, %v1338_v15 }
 0x28d   :  { %v1428_v10 = vadd.f32 %v1427_v40, %v1339_v8 }
 0x28f   :  { %v1483_v6 = vmax.f32 %v1428_v10, 0.0 }
 0x292   :  { %v1340_v49 = vpop.f32.mrf.mxu0 }
 0x293   :  { %v1341_v39 = vadd.f32 %v3108_v11, %v1340_v49  ;;  %v1429_v20 = vpop.f32.mrf.mxu1 }
 0x295   :  { %v1430_v2 = vadd.f32 %v1429_v20, %v1341_v39 }
 0x297   :  { %v1484_v19 = vmax.f32 %v1430_v2, 0.0 }
 0x299   :  { %v1524_v35 = vpack.c.bf16 %v1484_v19, %v1483_v6 }
 0x29a   :  { %v1343_v0 = vpop.f32.mrf.mxu0 }
 0x29b   :  { %v1432_v33 = vpop.f32.mrf.mxu1  ;;  %1631 = vmatmul.bf16.gmra.mxu2 %v1524_v35  ;;  %v1344_v62 = vadd.f32 %v3108_v11, %v1343_v0 }
 0x29d   :  { %v1433_v63 = vadd.f32 %v1432_v33, %v1344_v62 }
 0x29e   :  { %v1592_v48 = vpop.f32.mrf.mxu2 }
 0x29f   :  { %v1593_v31 = vadd.f32 %v3176_v36, %v1592_v48  ;;  %v1485_v7 = vmax.f32 %v1433_v63, 0.0 }
 0x2a1   :  { %v1672_v32 = vmax.f32 %v1593_v31, 0.0 }
 0x2a2   :  { %v1345_v47 = vpop.f32.mrf.mxu0 }
 0x2a3   :  { %v1346_v29 = vadd.f32 %v3108_v11, %v1345_v47  ;;  %v1434_v9 = vpop.f32.mrf.mxu1  ;;  %1740 = vmatmul.f32.vlgmr.msrb.gmra.mxu3 %v1672_v32 }
 0x2a5   :  { %v1435_v25 = vadd.f32 %v1434_v9, %v1346_v29 }
 0x2a6   :  { %v1594_v26 = vpop.f32.mrf.mxu2 }
 0x2a7   :  { %v1486_v46 = vmax.f32 %v1435_v25, 0.0  ;;  %v1595_v12 = vadd.f32 %v3176_v36, %v1594_v26 }
 0x2a9   :  { %v1525_v14 = vpack.c.bf16 %v1486_v46, %v1485_v7  ;;  %v1673_v16 = vmax.f32 %v1595_v12, 0.0 }
 0x2aa   :  { %v1348_v34 = vpop.f32.mrf.mxu0 }
 0x2ab   :  { %v1437_v50 = vpop.f32.mrf.mxu1  ;;  %1636 = vmatmul.bf16.gmra.mxu2 %v1525_v14  ;;  %1743 = vmatmul.f32.gmra.mxu3 %v1673_v16  ;;  %v1349_v41 = vadd.f32 %v3108_v11, %v1348_v34 }
 0x2ad   :  { %v1438_v44 = vadd.f32 %v1437_v50, %v1349_v41 }
 0x2ae   :  { %v1597_v52 = vpop.f32.mrf.mxu2 }
 0x2af   :  { %v1598_v51 = vadd.f32 %v3176_v36, %v1597_v52  ;;  %v1487_v27 = vmax.f32 %v1438_v44, 0.0 }
 0x2b1   :  { %v1674_v30 = vmax.f32 %v1598_v51, 0.0 }
 0x2b2   :  { %v1350_v23 = vpop.f32.mrf.mxu0 }
 0x2b3   :  { %v1351_v45 = vadd.f32 %v3108_v11, %v1350_v23  ;;  %v1439_v38 = vpop.f32.mrf.mxu1  ;;  %1746 = vmatmul.f32.gmra.mxu3 %v1674_v30 }
 0x2b5   :  { %v1440_v56 = vadd.f32 %v1439_v38, %v1351_v45 }
 0x2b6   :  { %v1599_v57 = vpop.f32.mrf.mxu2 }
 0x2b7   :  { %v1488_v1 = vmax.f32 %v1440_v56, 0.0  ;;  %v1600_v59 = vadd.f32 %v3176_v36, %v1599_v57 }
 0x2b9   :  { %v1526_v58 = vpack.c.bf16 %v1488_v1, %v1487_v27  ;;  %v1675_v3 = vmax.f32 %v1600_v59, 0.0 }
 0x2ba   :  { %v1353_v22 = vpop.f32.mrf.mxu0 }
 0x2bb   :  { %v1442_v24 = vpop.f32.mrf.mxu1  ;;  %1641 = vmatmul.bf16.gmra.mxu2 %v1526_v58  ;;  %1749 = vmatmul.f32.gmra.mxu3 %v1675_v3  ;;  %v1354_v13 = vadd.f32 %v3108_v11, %v1353_v22 }
 0x2bd   :  { %v1443_v5 = vadd.f32 %v1442_v24, %v1354_v13 }
 0x2be   :  { %v1602_v37 = vpop.f32.mrf.mxu2 }
 0x2bf   :  { %v1603_v55 = vadd.f32 %v3176_v36, %v1602_v37  ;;  %v1489_v18 = vmax.f32 %v1443_v5, 0.0 }
 0x2c1   :  { %v1676_v60 = vmax.f32 %v1603_v55, 0.0 }
 0x2c2   :  { %v1355_v42 = vpop.f32.mrf.mxu0 }
 0x2c3   :  { %v1356_v17 = vadd.f32 %v3108_v11, %v1355_v42  ;;  %v1444_v28 = vpop.f32.mrf.mxu1  ;;  %1752 = vmatmul.f32.gmra.mxu3 %v1676_v60 }
 0x2c5   :  { %v1445_v54 = vadd.f32 %v1444_v28, %v1356_v17 }
 0x2c6   :  { %v1604_v4 = vpop.f32.mrf.mxu2 }
 0x2c7   :  { %v1490_v21 = vmax.f32 %v1445_v54, 0.0  ;;  %v1605_v53 = vadd.f32 %v3176_v36, %v1604_v4 }
 0x2c9   :  { %v1527_v43 = vpack.c.bf16 %v1490_v21, %v1489_v18  ;;  %v1677_v61 = vmax.f32 %v1605_v53, 0.0 }
 0x2ca   :  { %v1358_v15 = vpop.f32.mrf.mxu0 }
 0x2cb   :  { %v1447_v40 = vpop.f32.mrf.mxu1  ;;  %1646 = vmatmul.bf16.gmra.mxu2 %v1527_v43  ;;  %1755 = vmatmul.f32.gmra.mxu3 %v1677_v61  ;;  %v1359_v49 = vadd.f32 %v3108_v11, %v1358_v15 }
 0x2cd   :  { %v1448_v2 = vadd.f32 %v1447_v40, %v1359_v49 }
 0x2ce   :  { %v1607_v8 = vpop.f32.mrf.mxu2 }
 0x2cf   :  { %v1608_v10 = vadd.f32 %v3176_v36, %v1607_v8  ;;  %v1491_v33 = vmax.f32 %v1448_v2, 0.0 }
 0x2d1   :  { %v1678_v39 = vmax.f32 %v1608_v10, 0.0 }
 0x2d2   :  { %v1360_v20 = vpop.f32.mrf.mxu0 }
 0x2d3   :  { %v1361_v6 = vadd.f32 %v3108_v11, %v1360_v20  ;;  %v1449_v19 = vpop.f32.mrf.mxu1  ;;  %1758 = vmatmul.f32.gmra.mxu3 %v1678_v39 }
 0x2d5   :  { %v1450_v35 = vadd.f32 %v1449_v19, %v1361_v6 }
 0x2d6   :  { %v1609_v0 = vpop.f32.mrf.mxu2 }
 0x2d7   :  { %v1492_v48 = vmax.f32 %v1450_v35, 0.0  ;;  %v1610_v62 = vadd.f32 %v3176_v36, %v1609_v0 }
 0x2d9   :  { %v1528_v31 = vpack.c.bf16 %v1492_v48, %v1491_v33  ;;  %v1679_v32 = vmax.f32 %v1610_v62, 0.0  ;;  %v3212_v62 = vld [vmem:[%s3271_s7] ss:$0 sm:$0xff]  ;;  %s2374_s7 = smov [#allocation7]  }
 0x2da   :  { %v1363_v47 = vpop.f32.mrf.mxu0  ;;  %s1908_s24 = sshll.u32 %s2374_s7, 4  ;;  %s1909_s24 = int_to_ptr.vmem [resolvable:$true] %s1908_s24 }
 0x2db   :  { %v1452_v63 = vpop.f32.mrf.mxu1  ;;  %1651 = vmatmul.bf16.gmra.mxu2 %v1528_v31  ;;  %1761 = vmatmul.f32.gmra.mxu3 %v1679_v32  ;;  %v1364_v9 = vadd.f32 %v3108_v11, %v1363_v47 }
 0x2dd   :  { %v1453_v46 = vadd.f32 %v1452_v63, %v1364_v9 }
 0x2de   :  { %v1612_v29 = vpop.f32.mrf.mxu2 }
 0x2df   :  { %v1613_v25 = vadd.f32 %v3176_v36, %v1612_v29  ;;  %v1493_v50 = vmax.f32 %v1453_v46, 0.0 }
 0x2e1   :  { %v1680_v26 = vmax.f32 %v1613_v25, 0.0 }
 0x2e2   :  { %v1365_v7 = vpop.f32.mrf.mxu0 }
 0x2e3   :  { %v1366_v12 = vadd.f32 %v3108_v11, %v1365_v7  ;;  %v1454_v14 = vpop.f32.mrf.mxu1  ;;  %1764 = vmatmul.f32.gmra.mxu3 %v1680_v26 }
 0x2e5   :  { %v1455_v16 = vadd.f32 %v1454_v14, %v1366_v12 }
 0x2e6   :  { %v1614_v34 = vpop.f32.mrf.mxu2 }
 0x2e7   :  { %v1494_v52 = vmax.f32 %v1455_v16, 0.0  ;;  %v1615_v41 = vadd.f32 %v3176_v36, %v1614_v34 }
 0x2e9   :  { %v1529_v51 = vpack.c.bf16 %v1494_v52, %v1493_v50  ;;  %v1681_v30 = vmax.f32 %v1615_v41, 0.0 }
 0x2ea   :  { %v1368_v23 = vpop.f32.mrf.mxu0 }
 0x2eb   :  { %v1457_v44 = vpop.f32.mrf.mxu1  ;;  %1656 = vmatmul.bf16.gmra.mxu2 %v1529_v51  ;;  %1767 = vmatmul.f32.gmra.mxu3 %v1681_v30  ;;  %v1369_v38 = vadd.f32 %v3108_v11, %v1368_v23 }
 0x2ed   :  { %v1458_v1 = vadd.f32 %v1457_v44, %v1369_v38 }
 0x2ee   :  { %v1617_v45 = vpop.f32.mrf.mxu2 }
 0x2ef   :  { %v1618_v56 = vadd.f32 %v3176_v36, %v1617_v45  ;;  %v1495_v24 = vmax.f32 %v1458_v1, 0.0 }
 0x2f1   :  { %v1682_v57 = vmax.f32 %v1618_v56, 0.0 }
 0x2f2   :  { %v1370_v27 = vpop.f32.mrf.mxu0 }
 0x2f3   :  { %v1371_v59 = vadd.f32 %v3108_v11, %v1370_v27  ;;  %v1459_v58 = vpop.f32.mrf.mxu1  ;;  %1770 = vmatmul.f32.gmra.mxu3 %v1682_v57 }
 0x2f5   :  { %v1460_v3 = vadd.f32 %v1459_v58, %v1371_v59 }
 0x2f6   :  { %v1619_v22 = vpop.f32.mrf.mxu2 }
 0x2f7   :  { %v1496_v37 = vmax.f32 %v1460_v3, 0.0  ;;  %v1620_v13 = vadd.f32 %v3176_v36, %v1619_v22 }
 0x2f9   :  { %v1530_v55 = vpack.c.bf16 %v1496_v37, %v1495_v24  ;;  %v1683_v60 = vmax.f32 %v1620_v13, 0.0 }
 0x2fa   :  { %v1373_v42 = vpop.f32.mrf.mxu0 }
 0x2fb   :  { %v1462_v5 = vpop.f32.mrf.mxu1  ;;  %1661 = vmatmul.bf16.gmra.mxu2 %v1530_v55  ;;  %1773 = vmatmul.f32.gmra.mxu3 %v1683_v60  ;;  %v1374_v28 = vadd.f32 %v3108_v11, %v1373_v42 }
 0x2fd   :  { %v1463_v21 = vadd.f32 %v1462_v5, %v1374_v28 }
 0x2fe   :  { %v1622_v17 = vpop.f32.mrf.mxu2 }
 0x2ff   :  { %v1623_v54 = vadd.f32 %v3176_v36, %v1622_v17  ;;  %v1497_v40 = vmax.f32 %v1463_v21, 0.0 }
 0x301   :  { %v1684_v4 = vmax.f32 %v1623_v54, 0.0 }
 0x302   :  { %v1375_v18 = vpop.f32.mrf.mxu0 }
 0x303   :  { %v1376_v53 = vadd.f32 %v3108_v11, %v1375_v18  ;;  %1776 = vmatmul.f32.gmra.mxu3 %v1684_v4  ;;  %v1464_v43 = vpop.f32.mrf.mxu1 }
 0x305   :  { %v1465_v61 = vadd.f32 %v1464_v43, %v1376_v53 }
 0x306   :  { %v1624_v15 = vpop.f32.mrf.mxu2 }
 0x307   :  { %v1498_v8 = vmax.f32 %v1465_v61, 0.0  ;;  %v1625_v49 = vadd.f32 %v3176_v36, %v1624_v15 }
 0x309   :  { %v1531_v10 = vpack.c.bf16 %v1498_v8, %v1497_v40  ;;  %v1685_v39 = vmax.f32 %v1625_v49, 0.0 }
 0x30b   :  { %1666 = vmatmul.bf16.gmra.mxu2 %v1531_v10  ;;  %1779 = vmatmul.f32.gmra.mxu3 %v1685_v39 }
 0x30e   :  { %v1627_v20 = vpop.f32.mrf.mxu2 }
 0x30f   :  { %v1628_v2 = vadd.f32 %v3176_v36, %v1627_v20 }
 0x311   :  { %v1686_v6 = vmax.f32 %v1628_v2, 0.0 }
 0x313   :  { %1782 = vmatmul.f32.gmra.mxu3 %v1686_v6 }
 0x316   :  { %v1629_v19 = vpop.f32.mrf.mxu2 }
 0x317   :  { %v1630_v11 = vadd.f32 %v3176_v36, %v1629_v19 }
 0x319   :  { %v1687_v35 = vmax.f32 %v1630_v11, 0.0 }
 0x31b   :  { %1785 = vmatmul.f32.gmra.mxu3 %v1687_v35 }
 0x31e   :  { %v1632_v0 = vpop.f32.mrf.mxu2 }
 0x31f   :  { %v1633_v33 = vadd.f32 %v3176_v36, %v1632_v0 }
 0x321   :  { %v1688_v48 = vmax.f32 %v1633_v33, 0.0 }
 0x323   :  { %1788 = vmatmul.f32.gmra.mxu3 %v1688_v48 }
 0x326   :  { %v1634_v31 = vpop.f32.mrf.mxu2  ;;  %v1741_v32 = vpop.f32.mrf.mxu3 }
 0x327   :  { %v1635_v47 = vadd.f32 %v3176_v36, %v1634_v31  ;;  %v1742_v63 = vadd.f32 %v3212_v62, %v1741_v32 }
 0x329   :  { %v1689_v29 = vmax.f32 %v1635_v47, 0.0  ;;  %1837 = vxpose.xlu1.b32.start [1/16] (narrow) %v1742_v63, 8 }
 0x32b   :  { %1791 = vmatmul.f32.gmra.mxu3 %v1689_v29 }
 0x32e   :  { %v1637_v9 = vpop.f32.mrf.mxu2  ;;  %v1744_v25 = vpop.f32.mrf.mxu3 }
 0x32f   :  { %v1638_v26 = vadd.f32 %v3176_v36, %v1637_v9  ;;  %v1745_v7 = vadd.f32 %v3212_v62, %v1744_v25 }
 0x331   :  { %v1690_v46 = vmax.f32 %v1638_v26, 0.0  ;;  %1838 = vxpose.xlu1.b32.cont [2/16] (narrow) %v1745_v7, 8 }
 0x333   :  { %1794 = vmatmul.f32.gmra.mxu3 %v1690_v46 }
 0x336   :  { %v1639_v12 = vpop.f32.mrf.mxu2  ;;  %v1747_v14 = vpop.f32.mrf.mxu3 }
 0x337   :  { %v1640_v16 = vadd.f32 %v3176_v36, %v1639_v12  ;;  %v1748_v34 = vadd.f32 %v3212_v62, %v1747_v14 }
 0x339   :  { %v1691_v50 = vmax.f32 %v1640_v16, 0.0  ;;  %1839 = vxpose.xlu1.b32.cont [3/16] (narrow) %v1748_v34, 8 }
 0x33b   :  { %1797 = vmatmul.f32.gmra.mxu3 %v1691_v50 }
 0x33e   :  { %v1642_v52 = vpop.f32.mrf.mxu2  ;;  %v1750_v41 = vpop.f32.mrf.mxu3 }
 0x33f   :  { %v1643_v51 = vadd.f32 %v3176_v36, %v1642_v52  ;;  %v1751_v30 = vadd.f32 %v3212_v62, %v1750_v41 }
 0x341   :  { %v1692_v23 = vmax.f32 %v1643_v51, 0.0  ;;  %1840 = vxpose.xlu1.b32.cont [4/16] (narrow) %v1751_v30, 8 }
 0x343   :  { %1800 = vmatmul.f32.gmra.mxu3 %v1692_v23 }
 0x346   :  { %v1644_v44 = vpop.f32.mrf.mxu2  ;;  %v1753_v45 = vpop.f32.mrf.mxu3 }
 0x347   :  { %v1645_v38 = vadd.f32 %v3176_v36, %v1644_v44  ;;  %v1754_v56 = vadd.f32 %v3212_v62, %v1753_v45 }
 0x349   :  { %v1693_v57 = vmax.f32 %v1645_v38, 0.0  ;;  %1841 = vxpose.xlu1.b32.cont [5/16] (narrow) %v1754_v56, 8 }
 0x34b   :  { %1803 = vmatmul.f32.gmra.mxu3 %v1693_v57 }
 0x34e   :  { %v1647_v27 = vpop.f32.mrf.mxu2  ;;  %v1756_v1 = vpop.f32.mrf.mxu3 }
 0x34f   :  { %v1648_v59 = vadd.f32 %v3176_v36, %v1647_v27  ;;  %v1757_v58 = vadd.f32 %v3212_v62, %v1756_v1 }
 0x351   :  { %v1694_v3 = vmax.f32 %v1648_v59, 0.0  ;;  %1842 = vxpose.xlu1.b32.cont [6/16] (narrow) %v1757_v58, 8 }
 0x353   :  { %1806 = vmatmul.f32.gmra.mxu3 %v1694_v3 }
 0x356   :  { %v1649_v22 = vpop.f32.mrf.mxu2  ;;  %v1759_v24 = vpop.f32.mrf.mxu3 }
 0x357   :  { %v1650_v37 = vadd.f32 %v3176_v36, %v1649_v22  ;;  %v1760_v13 = vadd.f32 %v3212_v62, %v1759_v24 }
 0x359   :  { %v1695_v55 = vmax.f32 %v1650_v37, 0.0  ;;  %1843 = vxpose.xlu1.b32.cont [7/16] (narrow) %v1760_v13, 8 }
 0x35b   :  { %1809 = vmatmul.f32.gmra.mxu3 %v1695_v55 }
 0x35e   :  { %v1652_v60 = vpop.f32.mrf.mxu2  ;;  %v1762_v42 = vpop.f32.mrf.mxu3 }
 0x35f   :  { %v1653_v5 = vadd.f32 %v3176_v36, %v1652_v60  ;;  %v1763_v17 = vadd.f32 %v3212_v62, %v1762_v42 }
 0x361   :  { %v1696_v28 = vmax.f32 %v1653_v5, 0.0  ;;  %1844 = vxpose.xlu1.b32.cont [8/16] (narrow) %v1763_v17, 8 }
 0x363   :  { %1812 = vmatmul.f32.gmra.mxu3 %v1696_v28 }
 0x366   :  { %v1654_v54 = vpop.f32.mrf.mxu2  ;;  %v1765_v4 = vpop.f32.mrf.mxu3 }
 0x367   :  { %v1655_v18 = vadd.f32 %v3176_v36, %v1654_v54  ;;  %v1766_v21 = vadd.f32 %v3212_v62, %v1765_v4 }
 0x369   :  { %v1697_v53 = vmax.f32 %v1655_v18, 0.0  ;;  %1845 = vxpose.xlu1.b32.cont [9/16] (narrow) %v1766_v21, 8 }
 0x36b   :  { %1815 = vmatmul.f32.gmra.mxu3 %v1697_v53 }
 0x36e   :  { %v1657_v43 = vpop.f32.mrf.mxu2  ;;  %v1768_v61 = vpop.f32.mrf.mxu3 }
 0x36f   :  { %v1658_v15 = vadd.f32 %v3176_v36, %v1657_v43  ;;  %v1769_v40 = vadd.f32 %v3212_v62, %v1768_v61 }
 0x371   :  { %v1698_v8 = vmax.f32 %v1658_v15, 0.0  ;;  %1846 = vxpose.xlu1.b32.cont [10/16] (narrow) %v1769_v40, 8 }
 0x373   :  { %1818 = vmatmul.f32.gmra.mxu3 %v1698_v8 }
 0x376   :  { %v1659_v49 = vpop.f32.mrf.mxu2  ;;  %v1771_v10 = vpop.f32.mrf.mxu3 }
 0x377   :  { %v1660_v39 = vadd.f32 %v3176_v36, %v1659_v49  ;;  %v1772_v20 = vadd.f32 %v3212_v62, %v1771_v10 }
 0x379   :  { %v1699_v2 = vmax.f32 %v1660_v39, 0.0  ;;  %1847 = vxpose.xlu1.b32.cont [11/16] (narrow) %v1772_v20, 8 }
 0x37b   :  { %1821 = vmatmul.f32.gmra.mxu3 %v1699_v2 }
 0x37e   :  { %v1662_v6 = vpop.f32.mrf.mxu2  ;;  %v1774_v19 = vpop.f32.mrf.mxu3 }
 0x37f   :  { %v1663_v11 = vadd.f32 %v3176_v36, %v1662_v6  ;;  %v1775_v35 = vadd.f32 %v3212_v62, %v1774_v19 }
 0x381   :  { %v1700_v0 = vmax.f32 %v1663_v11, 0.0  ;;  %1848 = vxpose.xlu1.b32.cont [12/16] (narrow) %v1775_v35, 8 }
 0x383   :  { %1824 = vmatmul.f32.gmra.mxu3 %v1700_v0 }
 0x386   :  { %v1664_v33 = vpop.f32.mrf.mxu2  ;;  %v1777_v48 = vpop.f32.mrf.mxu3 }
 0x387   :  { %v1665_v31 = vadd.f32 %v3176_v36, %v1664_v33  ;;  %v1778_v32 = vadd.f32 %v3212_v62, %v1777_v48 }
 0x389   :  { %v1701_v47 = vmax.f32 %v1665_v31, 0.0  ;;  %1849 = vxpose.xlu1.b32.cont [13/16] (narrow) %v1778_v32, 8 }
 0x38b   :  { %1827 = vmatmul.f32.gmra.mxu3 %v1701_v47 }
 0x38e   :  { %v1667_v63 = vpop.f32.mrf.mxu2  ;;  %v1780_v29 = vpop.f32.mrf.mxu3 }
 0x38f   :  { %v1668_v9 = vadd.f32 %v3176_v36, %v1667_v63  ;;  %v1781_v25 = vadd.f32 %v3212_v62, %v1780_v29 }
 0x391   :  { %v1702_v26 = vmax.f32 %v1668_v9, 0.0  ;;  %1850 = vxpose.xlu1.b32.cont [14/16] (narrow) %v1781_v25, 8 }
 0x393   :  { %1830 = vmatmul.f32.gmra.mxu3 %v1702_v26 }
 0x396   :  { %v1669_v7 = vpop.f32.mrf.mxu2  ;;  %v1783_v46 = vpop.f32.mrf.mxu3 }
 0x397   :  { %v1670_v12 = vadd.f32 %v3176_v36, %v1669_v7  ;;  %v1784_v14 = vadd.f32 %v3212_v62, %v1783_v46 }
 0x399   :  { %v1703_v16 = vmax.f32 %v1670_v12, 0.0  ;;  %1851 = vxpose.xlu1.b32.cont [15/16] (narrow) %v1784_v14, 8 }
 0x39b   :  { %1833 = vmatmul.f32.gmra.mxu3 %v1703_v16 }
 0x39e   :  { %v1786_v34 = vpop.f32.mrf.mxu3 }
 0x39f   :  { %v1787_v50 = vadd.f32 %v3212_v62, %v1786_v34 }
 0x3a1   :  { %1852 = vxpose.xlu1.b32.end [16/16] (narrow) %v1787_v50, 8 }
 0x3a6   :  { %v1789_v52 = vpop.f32.mrf.mxu3 }
 0x3a7   :  { %v1790_v41 = vadd.f32 %v3212_v62, %v1789_v52 }
 0x3a9   :  { %1869 = vxpose.xlu2.b32.start [1/16] (narrow) %v1790_v41, 8 }
 0x3ae   :  { %v1792_v51 = vpop.f32.mrf.mxu3 }
 0x3af   :  { %v1793_v30 = vadd.f32 %v3212_v62, %v1792_v51 }
 0x3b1   :  { %1870 = vxpose.xlu2.b32.cont [2/16] (narrow) %v1793_v30, 8 }
 0x3b6   :  { %v1795_v23 = vpop.f32.mrf.mxu3 }
 0x3b7   :  { %v1796_v36 = vadd.f32 %v3212_v62, %v1795_v23 }
 0x3b9   :  { %1871 = vxpose.xlu2.b32.cont [3/16] (narrow) %v1796_v36, 8 }
 0x3be   :  { %v1798_v44 = vpop.f32.mrf.mxu3 }
 0x3bf   :  { %v1799_v45 = vadd.f32 %v3212_v62, %v1798_v44 }
 0x3c1   :  { %1872 = vxpose.xlu2.b32.cont [4/16] (narrow) %v1799_v45, 8 }
 0x3c6   :  { %v1801_v38 = vpop.f32.mrf.mxu3 }
 0x3c7   :  { %v1802_v56 = vadd.f32 %v3212_v62, %v1801_v38 }
 0x3c9   :  { %1873 = vxpose.xlu2.b32.cont [5/16] (narrow) %v1802_v56, 8 }
 0x3cd   :  { %v1853_v17 = vpop.trf.xlu1 }
 0x3ce   :  { %v1804_v57 = vpop.f32.mrf.mxu3  ;;  %1901 = vst [vmem:[#allocation7] sm:$0xff] %v1853_v17 }
 0x3cf   :  { %v1805_v27 = vadd.f32 %v3212_v62, %v1804_v57 }
 0x3d1   :  { %1874 = vxpose.xlu2.b32.cont [6/16] (narrow) %v1805_v27, 8 }
 0x3d6   :  { %v1807_v1 = vpop.f32.mrf.mxu3 }
 0x3d7   :  { %v1808_v59 = vadd.f32 %v3212_v62, %v1807_v1 }
 0x3d9   :  { %1875 = vxpose.xlu2.b32.cont [7/16] (narrow) %v1808_v59, 8 }
 0x3de   :  { %v1810_v58 = vpop.f32.mrf.mxu3 }
 0x3df   :  { %v1811_v3 = vadd.f32 %v3212_v62, %v1810_v58 }
 0x3e1   :  { %1876 = vxpose.xlu2.b32.cont [8/16] (narrow) %v1811_v3, 8 }
 0x3e6   :  { %v1813_v22 = vpop.f32.mrf.mxu3 }
 0x3e7   :  { %v1814_v24 = vadd.f32 %v3212_v62, %v1813_v22 }
 0x3e9   :  { %1877 = vxpose.xlu2.b32.cont [9/16] (narrow) %v1814_v24, 8 }
 0x3ee   :  { %v1816_v37 = vpop.f32.mrf.mxu3 }
 0x3ef   :  { %v1817_v13 = vadd.f32 %v3212_v62, %v1816_v37 }
 0x3f1   :  { %1878 = vxpose.xlu2.b32.cont [10/16] (narrow) %v1817_v13, 8 }
 0x3f6   :  { %v1819_v55 = vpop.f32.mrf.mxu3 }
 0x3f7   :  { %v1820_v60 = vadd.f32 %v3212_v62, %v1819_v55 }
 0x3f9   :  { %1879 = vxpose.xlu2.b32.cont [11/16] (narrow) %v1820_v60, 8 }
 0x3fe   :  { %v1822_v42 = vpop.f32.mrf.mxu3 }
 0x3ff   :  { %v1823_v5 = vadd.f32 %v3212_v62, %v1822_v42 }
 0x401   :  { %1880 = vxpose.xlu2.b32.cont [12/16] (narrow) %v1823_v5, 8 }
 0x406   :  { %v1825_v28 = vpop.f32.mrf.mxu3 }
 0x407   :  { %v1826_v54 = vadd.f32 %v3212_v62, %v1825_v28 }
 0x409   :  { %1881 = vxpose.xlu2.b32.cont [13/16] (narrow) %v1826_v54, 8 }
 0x40e   :  { %v1828_v4 = vpop.f32.mrf.mxu3 }
 0x40f   :  { %v1829_v18 = vadd.f32 %v3212_v62, %v1828_v4 }
 0x411   :  { %1882 = vxpose.xlu2.b32.cont [14/16] (narrow) %v1829_v18, 8 }
 0x416   :  { %v1831_v21 = vpop.f32.mrf.mxu3 }
 0x417   :  { %v1832_v53 = vadd.f32 %v3212_v62, %v1831_v21 }
 0x419   :  { %1883 = vxpose.xlu2.b32.cont [15/16] (narrow) %v1832_v53, 8 }
 0x41e   :  { %v1834_v43 = vpop.f32.mrf.mxu3 }
 0x41f   :  { %v1835_v61 = vadd.f32 %v3212_v62, %v1834_v43 }
 0x421   :  { %1884 = vxpose.xlu2.b32.end [16/16] (narrow) %v1835_v61, 8 }
 0x442   :  { %v1885_v15 = vpop.trf.xlu2 }
 0x443   :  { %1902 = vst [vmem:[#allocation7 + $0x8] sm:$0xff] %v1885_v15 }
 0x444   :  { %1913 = dma.vmem_to_hbm [thread:$0]  %s1909_s24, 256, %s1911_s26, [#allocation4]  }
 0x445   :  { %2363 = dma.done.wait [#allocation4], 256  }
 0x446   :  { %2364 = vsyncadd [#allocation4], 4294967040 }
 0x447   :  { %1918 = vsyncpa [#allocation3], 1 }
 0x448   :  { %1919 = vsyncpa [#allocation6], 1 }
 0x449   :  { %1920 = vsyncpa [#allocation4], 1 }

</bundles_post_ra>
